<compile_context>
chip_gen: v6e
topology: v6e:2x2x1
jax: 0.10.0
libtpu: 0.0.40
codegen_flags: <defaults>
</compile_context>

<pallas_src>
import functools

import jax
import jax.numpy as jnp
from jax.experimental import pallas as pl
from jax.experimental.pallas import tpu as pltpu

EPS = 1e-5          # PyTorch BatchNorm2d default
LANE = 128          # lane-dense padded channel / class width
NUM_CLASSES = 10
_COMPILER_PARAMS = pltpu.CompilerParams(vmem_limit_bytes=32 * 1024 * 1024)


def _round_up(n, m):
    return (n + m - 1) // m * m


def _pad_to(a, shape):
    return jnp.pad(a, [(0, t - s) for s, t in zip(a.shape, shape)])


def conv_bn_relu_pool_kernel(p_ref, w_ref, g_ref, b_ref, o_ref, *, inv_count):
    """Fused conv(as one matmul) + BatchNorm(train) + ReLU + 2x2 maxpool.

    p_ref: [4*Pp, Kd]  bf16 im2col patches, 4 pool quadrants stacked on rows
                       (rows beyond the true row count are exactly zero).
    w_ref: [Kd, 128]   bf16 conv weights (real Cout columns, rest zero).
    g_ref, b_ref: [1, 128] f32 BatchNorm gamma / beta.
    o_ref: [Pp, 128]   f32 pooled output.
    """
    pp, cpad = o_ref.shape

    # Single long MXU matmul covering all 4 pooling quadrants, f32 accumulate.
    y = jnp.dot(p_ref[...], w_ref[...], preferred_element_type=jnp.float32)

    # One-pass batch statistics over N*H*W. Zero-padded rows contribute 0 to
    # both sums (exact, because the conv bias is omitted); inv_count = 1/(4*P)
    # divides by the true element count. Conv bias itself cancels under
    # train-mode BN mean subtraction, so it is not applied at all.
    s1 = jnp.sum(y, axis=0, keepdims=True)           # [1, 128]
    s2 = jnp.sum(y * y, axis=0, keepdims=True)       # [1, 128]
    mean = s1 * inv_count
    var = s2 * inv_count - mean * mean               # biased variance
    inv = jax.lax.rsqrt(var + EPS) * g_ref[...]      # [1, 128]  (EUP rsqrt)
    shift = b_ref[...] - mean * inv                  # [1, 128]

    a = y * inv + shift                              # one broadcast over all rows
    a = a.reshape(4, pp, cpad)                       # Pp is a multiple of 8
    pooled = jnp.maximum(jnp.maximum(a[0], a[1]), jnp.maximum(a[2], a[3]))
    o_ref[...] = jnp.maximum(pooled, 0.0)            # ReLU (== pool-then-ReLU)


def fc_kernel(x_ref, w_ref, b_ref, o_ref):
    o_ref[...] = (jnp.dot(x_ref[...], w_ref[...],
                          preferred_element_type=jnp.float32) + b_ref[...])


def _conv_layer(x_nhwc, w_mat, gamma, beta, *, cout, K=5, pad=2):
    """x_nhwc: [B, H, W, Cin] f32 -> [B, H//2, W//2, cout] f32."""
    B, H, W, Cin = x_nhwc.shape
    Kd = K * K * Cin
    Kd_pad, C_pad = w_mat.shape
    Ho, Wo = H // 2, W // 2
    P = B * Ho * Wo
    Pp = _round_up(P, 8)                     # sublane-aligned row count

    # im2col in bf16 (XLA glue): patch feature order (kh, kw, cin).
    xb = x_nhwc.astype(jnp.bfloat16)
    xp = jnp.pad(xb, ((0, 0), (pad, pad), (pad, pad), (0, 0)))
    ih = jnp.arange(H)[:, None] + jnp.arange(K)[None, :]          # [H, K]
    iw = jnp.arange(W)[:, None] + jnp.arange(K)[None, :]          # [W, K]
    pt = xp[:, ih]                                                # [B,H,K,Wp,Cin]
    pt = pt[:, :, :, iw]                                          # [B,H,K,W,K,Cin]
    pt = jnp.transpose(pt, (0, 1, 3, 2, 4, 5))                    # [B,H,W,K,K,Cin]
    pt = pt.reshape(B, Ho, 2, Wo, 2, Kd)
    # Stack the four pool quadrants (dh, dw) along a leading axis; rows=(b,ho,wo).
    pt = jnp.transpose(pt, (2, 4, 0, 1, 3, 5)).reshape(4, P, Kd)
    pt = jnp.pad(pt, ((0, 0), (0, Pp - P), (0, Kd_pad - Kd)))     # zero pad rows + K
    patches = pt.reshape(4 * Pp, Kd_pad)

    out = pl.pallas_call(
        functools.partial(conv_bn_relu_pool_kernel,
                          inv_count=1.0 / float(4 * P)),
        out_shape=jax.ShapeDtypeStruct((Pp, C_pad), jnp.float32),
        in_specs=[pl.BlockSpec(memory_space=pltpu.MemorySpace.VMEM)] * 4,
        out_specs=pl.BlockSpec(memory_space=pltpu.MemorySpace.VMEM),
        compiler_params=_COMPILER_PARAMS,
    )(patches, w_mat.astype(jnp.bfloat16), gamma, beta)
    return out[:P, :cout].reshape(B, Ho, Wo, cout)


def _fc_layer(x, w_pad, b_pad):
    B = x.shape[0]
    Np = w_pad.shape[1]
    return pl.pallas_call(
        fc_kernel,
        out_shape=jax.ShapeDtypeStruct((B, Np), jnp.float32),
        in_specs=[pl.BlockSpec(memory_space=pltpu.MemorySpace.VMEM)] * 3,
        out_specs=pl.BlockSpec(memory_space=pltpu.MemorySpace.VMEM),
        compiler_params=_COMPILER_PARAMS,
    )(x.astype(jnp.bfloat16), w_pad.astype(jnp.bfloat16), b_pad)


@jax.jit
def convnet_forward(x_nchw, params):
    # NCHW (PyTorch) -> NHWC for the conv path.
    x = jnp.transpose(x_nchw, (0, 2, 3, 1))
    x = _conv_layer(x, params["w1"], params["g1"], params["be1"], cout=16)
    x = _conv_layer(x, params["w2"], params["g2"], params["be2"], cout=32)
    # Flatten in NHWC order; wfc rows are laid out in the same (h, w, c) order,
    # so no NCHW transpose is needed before the FC.
    B = x.shape[0]
    x = x.reshape(B, -1)                              # [B, 7*7*32]
    logits = _fc_layer(x, params["wfc"], params["bfc"])
    return logits[:, :NUM_CLASSES]                    # drop lane padding


def init_params(key):
    k1, k2, k3, k4 = jax.random.split(key, 4)
    # Conv weights in matmul layout [K*K*Cin, Cout], feature order (kh, kw, cin)
    # (== PyTorch weight.transpose(2,3,1,0).reshape), then zero-padded:
    # Cout -> 128 lanes; layer-2's K dim 400 -> 512 for unmasked MXU tiling.
    w1 = jax.random.normal(k1, (5 * 5 * 1, 16), jnp.float32) * 0.1
    w2 = jax.random.normal(k2, (5 * 5 * 16, 32), jnp.float32) * 0.05
    # FC weight rows in NHWC-flatten order (h, w, c); a PyTorch checkpoint
    # (flattened in (c, h, w) order) would need a one-time row permutation.
    wfc = jax.random.normal(k3, (7 * 7 * 32, NUM_CLASSES), jnp.float32) * 0.02
    bfc = jax.random.normal(k4, (1, NUM_CLASSES), jnp.float32) * 0.02
    # Conv biases are intentionally absent: a per-channel constant added before
    # train-mode BatchNorm is cancelled exactly by the batch-mean subtraction.
    return {
        "w1": _pad_to(w1, (5 * 5 * 1, LANE)),
        "g1": jnp.ones((1, LANE), jnp.float32),    # BatchNorm2d default weight=1
        "be1": jnp.zeros((1, LANE), jnp.float32),  # BatchNorm2d default bias=0
        "w2": _pad_to(w2, (512, LANE)),
        "g2": jnp.ones((1, LANE), jnp.float32),
        "be2": jnp.zeros((1, LANE), jnp.float32),
        "wfc": _pad_to(wfc, (7 * 7 * 32, LANE)),
        "bfc": _pad_to(bfc, (1, LANE)),
    }


if __name__ == "__main__":
    key = jax.random.PRNGKey(0)
    kp, kx = jax.random.split(key)
    params = init_params(kp)
    # The FC dimension (7*7*32) implies a 28x28 spatial input with 1 channel.
    x = jax.random.normal(kx, (2, 1, 28, 28), jnp.float32)
    out = convnet_forward(x, params)
    jax.block_until_ready(out)
    assert out.shape == (2, NUM_CLASSES), out.shape
    print("KERNEL_OK")
</pallas_src>

<mosaic_0001>
module attributes {stable_mosaic.version = 11 : i64} {
  func.func @conv_bn_relu_pool_kernel(%arg0: memref<1568x25xbf16, #tpu.memory_space<vmem>>, %arg1: memref<25x128xbf16, #tpu.memory_space<vmem>>, %arg2: memref<1x128xf32, #tpu.memory_space<vmem>>, %arg3: memref<1x128xf32, #tpu.memory_space<vmem>>, %arg4: memref<392x128xf32, #tpu.memory_space<vmem>>) attributes {dimension_semantics = [], scalar_prefetch = 0 : i64, scratch_operands = 0 : i64, tpu.core_type = #tpu.core_type<tc>} {
    %c0 = arith.constant 0 : index
    %c0_0 = arith.constant 0 : index
    %0 = vector.load %arg0[%c0, %c0_0] : memref<1568x25xbf16, #tpu.memory_space<vmem>>, vector<1568x25xbf16>
    %c0_1 = arith.constant 0 : index
    %c0_2 = arith.constant 0 : index
    %1 = vector.load %arg1[%c0_1, %c0_2] : memref<25x128xbf16, #tpu.memory_space<vmem>>, vector<25x128xbf16>
    %cst = arith.constant dense<0.000000e+00> : vector<1568x128xf32>
    %2 = tpu.matmul %0, %1, %cst {dimension_numbers = #tpu.dot_dimension_numbers<[1], [0], [0], [1], [0, 0, 1, 1], [], []>} : vector<1568x25xbf16>, vector<25x128xbf16>, vector<1568x128xf32> -> vector<1568x128xf32>
    %cst_3 = arith.constant dense<0.000000e+00> : vector<128xf32>
    %3 = vector.multi_reduction <add>, %2, %cst_3 [0] : vector<1568x128xf32> to vector<128xf32>
    %4 = vector.shape_cast %3 : vector<128xf32> to vector<1x128xf32>
    %5 = arith.mulf %2, %2 : vector<1568x128xf32>
    %cst_4 = arith.constant dense<0.000000e+00> : vector<128xf32>
    %6 = vector.multi_reduction <add>, %5, %cst_4 [0] : vector<1568x128xf32> to vector<128xf32>
    %7 = vector.shape_cast %6 : vector<128xf32> to vector<1x128xf32>
    %cst_5 = arith.constant 6.37755089E-4 : f32
    %8 = vector.broadcast %cst_5 : f32 to vector<1x128xf32>
    %9 = arith.mulf %4, %8 : vector<1x128xf32>
    %cst_6 = arith.constant 6.37755089E-4 : f32
    %10 = vector.broadcast %cst_6 : f32 to vector<1x128xf32>
    %11 = arith.mulf %7, %10 : vector<1x128xf32>
    %12 = arith.mulf %9, %9 : vector<1x128xf32>
    %13 = arith.subf %11, %12 : vector<1x128xf32>
    %cst_7 = arith.constant 9.99999974E-6 : f32
    %14 = vector.broadcast %cst_7 : f32 to vector<1x128xf32>
    %15 = arith.addf %13, %14 : vector<1x128xf32>
    %16 = math.rsqrt %15 : vector<1x128xf32>
    %c0_8 = arith.constant 0 : index
    %c0_9 = arith.constant 0 : index
    %17 = vector.load %arg2[%c0_8, %c0_9] : memref<1x128xf32, #tpu.memory_space<vmem>>, vector<1x128xf32>
    %18 = arith.mulf %16, %17 : vector<1x128xf32>
    %c0_10 = arith.constant 0 : index
    %c0_11 = arith.constant 0 : index
    %19 = vector.load %arg3[%c0_10, %c0_11] : memref<1x128xf32, #tpu.memory_space<vmem>>, vector<1x128xf32>
    %20 = arith.mulf %9, %18 : vector<1x128xf32>
    %21 = arith.subf %19, %20 : vector<1x128xf32>
    %22 = vector.broadcast %18 : vector<1x128xf32> to vector<1568x128xf32>
    %23 = arith.mulf %2, %22 : vector<1568x128xf32>
    %24 = vector.broadcast %21 : vector<1x128xf32> to vector<1568x128xf32>
    %25 = arith.addf %23, %24 : vector<1568x128xf32>
    %26 = vector.shape_cast %25 : vector<1568x128xf32> to vector<4x392x128xf32>
    %27 = vector.extract_strided_slice %26 {offsets = [0, 0, 0], sizes = [1, 392, 128], strides = [1, 1, 1]} : vector<4x392x128xf32> to vector<1x392x128xf32>
    %28 = vector.shape_cast %27 : vector<1x392x128xf32> to vector<392x128xf32>
    %29 = vector.extract_strided_slice %26 {offsets = [1, 0, 0], sizes = [1, 392, 128], strides = [1, 1, 1]} : vector<4x392x128xf32> to vector<1x392x128xf32>
    %30 = vector.shape_cast %29 : vector<1x392x128xf32> to vector<392x128xf32>
    %31 = arith.maximumf %28, %30 : vector<392x128xf32>
    %32 = vector.extract_strided_slice %26 {offsets = [2, 0, 0], sizes = [1, 392, 128], strides = [1, 1, 1]} : vector<4x392x128xf32> to vector<1x392x128xf32>
    %33 = vector.shape_cast %32 : vector<1x392x128xf32> to vector<392x128xf32>
    %34 = vector.extract_strided_slice %26 {offsets = [3, 0, 0], sizes = [1, 392, 128], strides = [1, 1, 1]} : vector<4x392x128xf32> to vector<1x392x128xf32>
    %35 = vector.shape_cast %34 : vector<1x392x128xf32> to vector<392x128xf32>
    %36 = arith.maximumf %33, %35 : vector<392x128xf32>
    %37 = arith.maximumf %31, %36 : vector<392x128xf32>
    %cst_12 = arith.constant 0.000000e+00 : f32
    %38 = vector.broadcast %cst_12 : f32 to vector<392x128xf32>
    %39 = arith.maximumf %37, %38 : vector<392x128xf32>
    %c0_13 = arith.constant 0 : index
    %c0_14 = arith.constant 0 : index
    %40 = vector.load %arg4[%c0_13, %c0_14] : memref<392x128xf32, #tpu.memory_space<vmem>>, vector<392x128xf32>
    tpu.vector_store %arg4[%c0_13, %c0_14], %39 {strides = array<i32>} : memref<392x128xf32, #tpu.memory_space<vmem>>, vector<392x128xf32>,
    return
  }
}

module attributes {stable_mosaic.version = 11 : i64} {
  func.func @conv_bn_relu_pool_kernel(%arg0: memref<416x512xbf16, #tpu.memory_space<vmem>>, %arg1: memref<512x128xbf16, #tpu.memory_space<vmem>>, %arg2: memref<1x128xf32, #tpu.memory_space<vmem>>, %arg3: memref<1x128xf32, #tpu.memory_space<vmem>>, %arg4: memref<104x128xf32, #tpu.memory_space<vmem>>) attributes {dimension_semantics = [], scalar_prefetch = 0 : i64, scratch_operands = 0 : i64, tpu.core_type = #tpu.core_type<tc>} {
    %c0 = arith.constant 0 : index
    %c0_0 = arith.constant 0 : index
    %0 = vector.load %arg0[%c0, %c0_0] : memref<416x512xbf16, #tpu.memory_space<vmem>>, vector<416x512xbf16>
    %c0_1 = arith.constant 0 : index
    %c0_2 = arith.constant 0 : index
    %1 = vector.load %arg1[%c0_1, %c0_2] : memref<512x128xbf16, #tpu.memory_space<vmem>>, vector<512x128xbf16>
    %cst = arith.constant dense<0.000000e+00> : vector<416x128xf32>
    %2 = tpu.matmul %0, %1, %cst {dimension_numbers = #tpu.dot_dimension_numbers<[1], [0], [0], [1], [0, 0, 1, 1], [], []>} : vector<416x512xbf16>, vector<512x128xbf16>, vector<416x128xf32> -> vector<416x128xf32>
    %cst_3 = arith.constant dense<0.000000e+00> : vector<128xf32>
    %3 = vector.multi_reduction <add>, %2, %cst_3 [0] : vector<416x128xf32> to vector<128xf32>
    %4 = vector.shape_cast %3 : vector<128xf32> to vector<1x128xf32>
    %5 = arith.mulf %2, %2 : vector<416x128xf32>
    %cst_4 = arith.constant dense<0.000000e+00> : vector<128xf32>
    %6 = vector.multi_reduction <add>, %5, %cst_4 [0] : vector<416x128xf32> to vector<128xf32>
    %7 = vector.shape_cast %6 : vector<128xf32> to vector<1x128xf32>
    %cst_5 = arith.constant 0.00255102036 : f32
    %8 = vector.broadcast %cst_5 : f32 to vector<1x128xf32>
    %9 = arith.mulf %4, %8 : vector<1x128xf32>
    %cst_6 = arith.constant 0.00255102036 : f32
    %10 = vector.broadcast %cst_6 : f32 to vector<1x128xf32>
    %11 = arith.mulf %7, %10 : vector<1x128xf32>
    %12 = arith.mulf %9, %9 : vector<1x128xf32>
    %13 = arith.subf %11, %12 : vector<1x128xf32>
    %cst_7 = arith.constant 9.99999974E-6 : f32
    %14 = vector.broadcast %cst_7 : f32 to vector<1x128xf32>
    %15 = arith.addf %13, %14 : vector<1x128xf32>
    %16 = math.rsqrt %15 : vector<1x128xf32>
    %c0_8 = arith.constant 0 : index
    %c0_9 = arith.constant 0 : index
    %17 = vector.load %arg2[%c0_8, %c0_9] : memref<1x128xf32, #tpu.memory_space<vmem>>, vector<1x128xf32>
    %18 = arith.mulf %16, %17 : vector<1x128xf32>
    %c0_10 = arith.constant 0 : index
    %c0_11 = arith.constant 0 : index
    %19 = vector.load %arg3[%c0_10, %c0_11] : memref<1x128xf32, #tpu.memory_space<vmem>>, vector<1x128xf32>
    %20 = arith.mulf %9, %18 : vector<1x128xf32>
    %21 = arith.subf %19, %20 : vector<1x128xf32>
    %22 = vector.broadcast %18 : vector<1x128xf32> to vector<416x128xf32>
    %23 = arith.mulf %2, %22 : vector<416x128xf32>
    %24 = vector.broadcast %21 : vector<1x128xf32> to vector<416x128xf32>
    %25 = arith.addf %23, %24 : vector<416x128xf32>
    %26 = vector.shape_cast %25 : vector<416x128xf32> to vector<4x104x128xf32>
    %27 = vector.extract_strided_slice %26 {offsets = [0, 0, 0], sizes = [1, 104, 128], strides = [1, 1, 1]} : vector<4x104x128xf32> to vector<1x104x128xf32>
    %28 = vector.shape_cast %27 : vector<1x104x128xf32> to vector<104x128xf32>
    %29 = vector.extract_strided_slice %26 {offsets = [1, 0, 0], sizes = [1, 104, 128], strides = [1, 1, 1]} : vector<4x104x128xf32> to vector<1x104x128xf32>
    %30 = vector.shape_cast %29 : vector<1x104x128xf32> to vector<104x128xf32>
    %31 = arith.maximumf %28, %30 : vector<104x128xf32>
    %32 = vector.extract_strided_slice %26 {offsets = [2, 0, 0], sizes = [1, 104, 128], strides = [1, 1, 1]} : vector<4x104x128xf32> to vector<1x104x128xf32>
    %33 = vector.shape_cast %32 : vector<1x104x128xf32> to vector<104x128xf32>
    %34 = vector.extract_strided_slice %26 {offsets = [3, 0, 0], sizes = [1, 104, 128], strides = [1, 1, 1]} : vector<4x104x128xf32> to vector<1x104x128xf32>
    %35 = vector.shape_cast %34 : vector<1x104x128xf32> to vector<104x128xf32>
    %36 = arith.maximumf %33, %35 : vector<104x128xf32>
    %37 = arith.maximumf %31, %36 : vector<104x128xf32>
    %cst_12 = arith.constant 0.000000e+00 : f32
    %38 = vector.broadcast %cst_12 : f32 to vector<104x128xf32>
    %39 = arith.maximumf %37, %38 : vector<104x128xf32>
    %c0_13 = arith.constant 0 : index
    %c0_14 = arith.constant 0 : index
    %40 = vector.load %arg4[%c0_13, %c0_14] : memref<104x128xf32, #tpu.memory_space<vmem>>, vector<104x128xf32>
    tpu.vector_store %arg4[%c0_13, %c0_14], %39 {strides = array<i32>} : memref<104x128xf32, #tpu.memory_space<vmem>>, vector<104x128xf32>,
    return
  }
}

module attributes {stable_mosaic.version = 11 : i64} {
  func.func @fc_kernel(%arg0: memref<2x1568xbf16, #tpu.memory_space<vmem>>, %arg1: memref<1568x128xbf16, #tpu.memory_space<vmem>>, %arg2: memref<1x128xf32, #tpu.memory_space<vmem>>, %arg3: memref<2x128xf32, #tpu.memory_space<vmem>>) attributes {dimension_semantics = [], scalar_prefetch = 0 : i64, scratch_operands = 0 : i64, tpu.core_type = #tpu.core_type<tc>} {
    %c0 = arith.constant 0 : index
    %c0_0 = arith.constant 0 : index
    %0 = vector.load %arg0[%c0, %c0_0] : memref<2x1568xbf16, #tpu.memory_space<vmem>>, vector<2x1568xbf16>
    %c0_1 = arith.constant 0 : index
    %c0_2 = arith.constant 0 : index
    %1 = vector.load %arg1[%c0_1, %c0_2] : memref<1568x128xbf16, #tpu.memory_space<vmem>>, vector<1568x128xbf16>
    %cst = arith.constant dense<0.000000e+00> : vector<2x128xf32>
    %2 = tpu.matmul %0, %1, %cst {dimension_numbers = #tpu.dot_dimension_numbers<[1], [0], [0], [1], [0, 0, 1, 1], [], []>} : vector<2x1568xbf16>, vector<1568x128xbf16>, vector<2x128xf32> -> vector<2x128xf32>
    %c0_3 = arith.constant 0 : index
    %c0_4 = arith.constant 0 : index
    %3 = vector.load %arg2[%c0_3, %c0_4] : memref<1x128xf32, #tpu.memory_space<vmem>>, vector<1x128xf32>
    %4 = vector.broadcast %3 : vector<1x128xf32> to vector<2x128xf32>
    %5 = arith.addf %2, %4 : vector<2x128xf32>
    %c0_5 = arith.constant 0 : index
    %c0_6 = arith.constant 0 : index
    %6 = vector.load %arg3[%c0_5, %c0_6] : memref<2x128xf32, #tpu.memory_space<vmem>>, vector<2x128xf32>
    tpu.vector_store %arg3[%c0_5, %c0_6], %5 {strides = array<i32>} : memref<2x128xf32, #tpu.memory_space<vmem>>, vector<2x128xf32>,
    return
  }
}

</mosaic_0001>

<bundles_post_ra>
// kernel: convnet_forward.3
= control target key start
LH: loop header
LB: loop body
LE: loop exit
PB: predicated region body
PF: predicated region fallthrough
CT: control target
= control target key end

     0   :  { %vm1014_vm0 = vcmask 1043456   ;;  %vm1015_vm1 = vcmask 1044480   ;;  %v3703_v1 = vmov 65535   ;;  %vm719_vm2 = vcmask 203776   ;;  %s7335_s1 = inlined_call_operand.vmem [shape: bf16[25,128], index: 1, kind: input, shape index: {}]   ;;  %s7336_s0 = inlined_call_operand.vmem [shape: bf16[1568,25], index: 0, kind: input, shape index: {}]   ;;  %s7337_s2 = inlined_call_operand.vmem [shape: f32[1,128], index: 2, kind: input, shape index: {}]   ;;  %s7338_s3 = inlined_call_operand.vmem [shape: f32[1,128], index: 3, kind: input, shape index: {}]   ;;  %s7339_s4 = inlined_call_operand.vmem [shape: f32[392,128], index: 4, kind: output, shape index: {}]  }
   0x1   :  { %v3601_v0 = vld [vmem:[%s7335_s1 + $0x8] sm:$0x1f]   ;;  %v1016_v2 = vsel %vm1014_vm0, 4294967295, %v3703_v1  ;;  %v3603_v4 = vld [vmem:[%s7336_s0] sm:$0xff]   ;;  %v3605_v8 = vld [vmem:[%s7336_s0 + $0x10] sm:$0xff]  }
   0x2   :  { %v1017_v3 = vsel %vm1015_vm1, %v1016_v2, 0  ;;  %v3602_v6 = vld [vmem:[%s7335_s1] sm:$0xff]   ;;  %3400 = vmatprep.mubr.msk.bf16.mxu0 %vm719_vm2, %v3603_v4  ;;  %v3604_v7 = vld [vmem:[%s7336_s0 + $0x8] sm:$0xff]   ;;  %v3606_v9 = vld [vmem:[%s7336_s0 + $0x18] sm:$0xff]  }
   0x3   :  { %v1019_v5 = vand.u32 %v3601_v0, %v1017_v3  ;;  %v3607_v10 = vld [vmem:[%s7336_s0 + $0x20] sm:$0xff]   ;;  %v3608_v11 = vld [vmem:[%s7336_s0 + $0x28] sm:$0xff]   ;;  %v3609_v12 = vld [vmem:[%s7336_s0 + $0x30] sm:$0xff]  }
   0x4   :  { %v3610_v13 = vld [vmem:[%s7336_s0 + $0x38] sm:$0xff]   ;;  %v3611_v14 = vld [vmem:[%s7336_s0 + $0x40] sm:$0xff]   ;;  %v3612_v15 = vld [vmem:[%s7336_s0 + $0x48] sm:$0xff]  }
   0x5   :  { %3396 = vmatprep.subr.bf16.mxu0 %v1019_v5  ;;  %3596 = vmatprep.subr.bf16.mxu1 %v1019_v5  ;;  %v3613_v16 = vld [vmem:[%s7336_s0 + $0x50] sm:$0xff]   ;;  %v3614_v17 = vld [vmem:[%s7336_s0 + $0x58] sm:$0xff]   ;;  %v3615_v18 = vld [vmem:[%s7336_s0 + $0x60] sm:$0xff]  }
   0x6   :  { %3397 = vmatpush3.bf16.msra.mxu0 %v1019_v5  ;;  %3598 = vmatpush3.bf16.msra.mxu1 %v1019_v5  ;;  %v3616_v19 = vld [vmem:[%s7336_s0 + $0x68] sm:$0xff]   ;;  %v3617_v20 = vld [vmem:[%s7336_s0 + $0x70] sm:$0xff]   ;;  %v3618_v21 = vld [vmem:[%s7336_s0 + $0x78] sm:$0xff]  }
   0x7   :  { %3398 = vmatprep.subr.bf16.mxu0 %v3602_v6  ;;  %3597 = vmatprep.subr.bf16.mxu1 %v3602_v6  ;;  %v3619_v22 = vld [vmem:[%s7336_s0 + $0x80] sm:$0xff]   ;;  %v3620_v23 = vld [vmem:[%s7336_s0 + $0x88] sm:$0xff]   ;;  %v3621_v24 = vld [vmem:[%s7336_s0 + $0x90] sm:$0xff]  }
   0x8   :  { %v3653_v25 = vld [vmem:[%s7336_s0 + $0x190] sm:$0xff]   ;;  %v3654_v26 = vld [vmem:[%s7336_s0 + $0x198] sm:$0xff]   ;;  %v3623_v28 = vld [vmem:[%s7336_s0 + $0xa0] sm:$0xff]  }
   0x9   :  { %3500 = vmatprep.mubr.msk.bf16.mxu1 %vm719_vm2, %v3653_v25  ;;  %v3622_v27 = vld [vmem:[%s7336_s0 + $0x98] sm:$0xff]   ;;  %v3655_v29 = vld [vmem:[%s7336_s0 + $0x1a0] sm:$0xff]   ;;  %v3656_v30 = vld [vmem:[%s7336_s0 + $0x1a8] sm:$0xff]  }
   0xa   :  { %3399 = vmatpush3.bf16.msra.mxu0 %v3602_v6  ;;  %3599 = vmatpush3.bf16.msra.mxu1 %v3602_v6  ;;  %v3624_v31 = vld [vmem:[%s7336_s0 + $0xa8] sm:$0xff]   ;;  %v3625_v32 = vld [vmem:[%s7336_s0 + $0xb0] sm:$0xff]   ;;  %v3658_v34 = vld [vmem:[%s7336_s0 + $0x1b8] sm:$0xff]  }
   0xb   :  { %v3657_v33 = vld [vmem:[%s7336_s0 + $0x1b0] sm:$0xff]   ;;  %v3626_v35 = vld [vmem:[%s7336_s0 + $0xb8] sm:$0xff]   ;;  %v3627_v36 = vld [vmem:[%s7336_s0 + $0xc0] sm:$0xff]  }
   0xc   :  { %v3659_v37 = vld [vmem:[%s7336_s0 + $0x1c0] sm:$0xff]   ;;  %v3660_v38 = vld [vmem:[%s7336_s0 + $0x1c8] sm:$0xff]   ;;  %v3629_v40 = vld [vmem:[%s7336_s0 + $0xd0] sm:$0xff]  }
   0xd   :  { %3401 = vmatmul.mubr.msk.bf16.vlgmr.msra.gmra.mxu0 %vm719_vm2, %v3604_v7  ;;  %3501 = vmatmul.mubr.msk.bf16.vlgmr.msra.gmra.mxu1 %vm719_vm2, %v3654_v26  ;;  %v3628_v39 = vld [vmem:[%s7336_s0 + $0xc8] sm:$0xff]   ;;  %v3661_v41 = vld [vmem:[%s7336_s0 + $0x1d0] sm:$0xff]   ;;  %v3662_v42 = vld [vmem:[%s7336_s0 + $0x1d8] sm:$0xff]  }
   0xe   :  { %3404 = vmatprep.mubr.msk.bf16.mxu0 %vm719_vm2, %v3605_v8  ;;  %3504 = vmatprep.mubr.msk.bf16.mxu1 %vm719_vm2, %v3655_v29  ;;  %v3630_v43 = vld [vmem:[%s7336_s0 + $0xd8] sm:$0xff]   ;;  %v3631_v44 = vld [vmem:[%s7336_s0 + $0xe0] sm:$0xff]   ;;  %v3664_v46 = vld [vmem:[%s7336_s0 + $0x1e8] sm:$0xff]  }
   0xf   :  { %v3663_v45 = vld [vmem:[%s7336_s0 + $0x1e0] sm:$0xff]   ;;  %v3632_v47 = vld [vmem:[%s7336_s0 + $0xe8] sm:$0xff]   ;;  %v3633_v48 = vld [vmem:[%s7336_s0 + $0xf0] sm:$0xff]  }
  0x10   :  { %v3665_v49 = vld [vmem:[%s7336_s0 + $0x1f0] sm:$0xff]   ;;  %v3666_v50 = vld [vmem:[%s7336_s0 + $0x1f8] sm:$0xff]   ;;  %v3635_v52 = vld [vmem:[%s7336_s0 + $0x100] sm:$0xff]  }
  0x11   :  { %v3634_v51 = vld [vmem:[%s7336_s0 + $0xf8] sm:$0xff]   ;;  %v3667_v53 = vld [vmem:[%s7336_s0 + $0x200] sm:$0xff]   ;;  %v3668_v54 = vld [vmem:[%s7336_s0 + $0x208] sm:$0xff]  }
  0x12   :  { %v3636_v55 = vld [vmem:[%s7336_s0 + $0x108] sm:$0xff]   ;;  %v3637_v56 = vld [vmem:[%s7336_s0 + $0x110] sm:$0xff]   ;;  %v3670_v58 = vld [vmem:[%s7336_s0 + $0x218] sm:$0xff]  }
  0x13   :  { %v3669_v57 = vld [vmem:[%s7336_s0 + $0x210] sm:$0xff]   ;;  %v3638_v59 = vld [vmem:[%s7336_s0 + $0x118] sm:$0xff]   ;;  %v3639_v60 = vld [vmem:[%s7336_s0 + $0x120] sm:$0xff]  }
  0x14   :  { %v3671_v61 = vld [vmem:[%s7336_s0 + $0x220] sm:$0xff]   ;;  %v3672_v62 = vld [vmem:[%s7336_s0 + $0x228] sm:$0xff]   ;;  %v3641_v0 = vld [vmem:[%s7336_s0 + $0x130] sm:$0xff]  }
  0x15   :  { %3405 = vmatmul.mubr.msk.bf16.gmra.mxu0 %vm719_vm2, %v3606_v9  ;;  %3505 = vmatmul.mubr.msk.bf16.gmra.mxu1 %vm719_vm2, %v3656_v30  ;;  %v3640_v63 = vld [vmem:[%s7336_s0 + $0x128] sm:$0xff]   ;;  %v3673_v1 = vld [vmem:[%s7336_s0 + $0x230] sm:$0xff]   ;;  %v3674_v2 = vld [vmem:[%s7336_s0 + $0x238] sm:$0xff]  }
  0x16   :  { %3408 = vmatprep.mubr.msk.bf16.mxu0 %vm719_vm2, %v3607_v10  ;;  %3508 = vmatprep.mubr.msk.bf16.mxu1 %vm719_vm2, %v3657_v33  ;;  %v3642_v3 = vld [vmem:[%s7336_s0 + $0x138] sm:$0xff]   ;;  %v3643_v4 = vld [vmem:[%s7336_s0 + $0x140] sm:$0xff]   ;;  %v3676_v6 = vld [vmem:[%s7336_s0 + $0x248] sm:$0xff]  }
  0x17   :  { %v3675_v5 = vld [vmem:[%s7336_s0 + $0x240] sm:$0xff]   ;;  %v3644_v7 = vld [vmem:[%s7336_s0 + $0x148] sm:$0xff]   ;;  %v3645_v8 = vld [vmem:[%s7336_s0 + $0x150] sm:$0xff]  }
  0x18   :  { %v3677_v9 = vld [vmem:[%s7336_s0 + $0x250] sm:$0xff]   ;;  %v3678_v10 = vld [vmem:[%s7336_s0 + $0x258] sm:$0xff]   ;;  %v3687_v33 = vld [vmem:[%s7336_s0 + $0x2a0] sm:$0xff]  }
  0x19   :  { %v3686_v26 = vld [vmem:[%s7336_s0 + $0x298] sm:$0xff]  }
  0x1d   :  { %3409 = vmatmul.mubr.msk.bf16.gmra.mxu0 %vm719_vm2, %v3608_v11  ;;  %3509 = vmatmul.mubr.msk.bf16.gmra.mxu1 %vm719_vm2, %v3658_v34  ;;  %v3646_v11 = vld [vmem:[%s7336_s0 + $0x158] sm:$0xff]  }
  0x1e   :  { %3412 = vmatprep.mubr.msk.bf16.mxu0 %vm719_vm2, %v3609_v12  ;;  %3512 = vmatprep.mubr.msk.bf16.mxu1 %vm719_vm2, %v3659_v37  ;;  %v3647_v12 = vld [vmem:[%s7336_s0 + $0x160] sm:$0xff]  }
  0x25   :  { %3413 = vmatmul.mubr.msk.bf16.gmra.mxu0 %vm719_vm2, %v3610_v13  ;;  %3513 = vmatmul.mubr.msk.bf16.gmra.mxu1 %vm719_vm2, %v3660_v38  ;;  %v3679_v13 = vld [vmem:[%s7336_s0 + $0x260] sm:$0xff]  }
  0x26   :  { %3416 = vmatprep.mubr.msk.bf16.mxu0 %vm719_vm2, %v3611_v14  ;;  %3516 = vmatprep.mubr.msk.bf16.mxu1 %vm719_vm2, %v3661_v41  ;;  %v3680_v14 = vld [vmem:[%s7336_s0 + $0x268] sm:$0xff]  }
  0x2d   :  { %3417 = vmatmul.mubr.msk.bf16.gmra.mxu0 %vm719_vm2, %v3612_v15  ;;  %3517 = vmatmul.mubr.msk.bf16.gmra.mxu1 %vm719_vm2, %v3662_v42  ;;  %v3648_v15 = vld [vmem:[%s7336_s0 + $0x168] sm:$0xff]  }
  0x2e   :  { %3420 = vmatprep.mubr.msk.bf16.mxu0 %vm719_vm2, %v3613_v16  ;;  %3520 = vmatprep.mubr.msk.bf16.mxu1 %vm719_vm2, %v3663_v45  ;;  %v3649_v16 = vld [vmem:[%s7336_s0 + $0x170] sm:$0xff]  }
  0x35   :  { %3421 = vmatmul.mubr.msk.bf16.gmra.mxu0 %vm719_vm2, %v3614_v17  ;;  %3521 = vmatmul.mubr.msk.bf16.gmra.mxu1 %vm719_vm2, %v3664_v46  ;;  %v3681_v17 = vld [vmem:[%s7336_s0 + $0x270] sm:$0xff]  }
  0x36   :  { %3424 = vmatprep.mubr.msk.bf16.mxu0 %vm719_vm2, %v3615_v18  ;;  %3524 = vmatprep.mubr.msk.bf16.mxu1 %vm719_vm2, %v3665_v49  ;;  %v3682_v18 = vld [vmem:[%s7336_s0 + $0x278] sm:$0xff]  }
  0x3d   :  { %3425 = vmatmul.mubr.msk.bf16.gmra.mxu0 %vm719_vm2, %v3616_v19  ;;  %3525 = vmatmul.mubr.msk.bf16.gmra.mxu1 %vm719_vm2, %v3666_v50  ;;  %v3650_v19 = vld [vmem:[%s7336_s0 + $0x178] sm:$0xff]  }
  0x3e   :  { %3428 = vmatprep.mubr.msk.bf16.mxu0 %vm719_vm2, %v3617_v20  ;;  %3528 = vmatprep.mubr.msk.bf16.mxu1 %vm719_vm2, %v3667_v53  ;;  %v3651_v20 = vld [vmem:[%s7336_s0 + $0x180] sm:$0xff]   ;;  %v3690_v53 = vld [vmem:[%s7336_s0 + $0x2b8] sm:$0xff]  }
  0x45   :  { %3429 = vmatmul.mubr.msk.bf16.gmra.mxu0 %vm719_vm2, %v3618_v21  ;;  %3529 = vmatmul.mubr.msk.bf16.gmra.mxu1 %vm719_vm2, %v3668_v54  ;;  %v3683_v21 = vld [vmem:[%s7336_s0 + $0x280] sm:$0xff]  }
  0x46   :  { %3432 = vmatprep.mubr.msk.bf16.mxu0 %vm719_vm2, %v3619_v22  ;;  %3532 = vmatprep.mubr.msk.bf16.mxu1 %vm719_vm2, %v3669_v57  ;;  %v3684_v22 = vld [vmem:[%s7336_s0 + $0x288] sm:$0xff]  }
  0x4d   :  { %3433 = vmatmul.mubr.msk.bf16.gmra.mxu0 %vm719_vm2, %v3620_v23  ;;  %3533 = vmatmul.mubr.msk.bf16.gmra.mxu1 %vm719_vm2, %v3670_v58  ;;  %v3652_v23 = vld [vmem:[%s7336_s0 + $0x188] sm:$0xff]  }
  0x4e   :  { %3436 = vmatprep.mubr.msk.bf16.mxu0 %vm719_vm2, %v3621_v24  ;;  %3536 = vmatprep.mubr.msk.bf16.mxu1 %vm719_vm2, %v3671_v61  ;;  %v3685_v24 = vld [vmem:[%s7336_s0 + $0x290] sm:$0xff]  }
  0x55   :  { %3437 = vmatmul.mubr.msk.bf16.gmra.mxu0 %vm719_vm2, %v3622_v27  ;;  %3537 = vmatmul.mubr.msk.bf16.gmra.mxu1 %vm719_vm2, %v3672_v62 }
  0x56   :  { %3440 = vmatprep.mubr.msk.bf16.mxu0 %vm719_vm2, %v3623_v28  ;;  %3540 = vmatprep.mubr.msk.bf16.mxu1 %vm719_vm2, %v3673_v1 }
  0x5d   :  { %3441 = vmatmul.mubr.msk.bf16.gmra.mxu0 %vm719_vm2, %v3624_v31  ;;  %3541 = vmatmul.mubr.msk.bf16.gmra.mxu1 %vm719_vm2, %v3674_v2 }
  0x5e   :  { %3444 = vmatprep.mubr.msk.bf16.mxu0 %vm719_vm2, %v3625_v32  ;;  %3544 = vmatprep.mubr.msk.bf16.mxu1 %vm719_vm2, %v3675_v5  ;;  %v3691_v5 = vld [vmem:[%s7336_s0 + $0x2c0] sm:$0xff]  }
  0x65   :  { %3445 = vmatmul.mubr.msk.bf16.gmra.mxu0 %vm719_vm2, %v3626_v35  ;;  %3545 = vmatmul.mubr.msk.bf16.gmra.mxu1 %vm719_vm2, %v3676_v6  ;;  %v3688_v35 = vld [vmem:[%s7336_s0 + $0x2a8] sm:$0xff]  }
  0x66   :  { %3448 = vmatprep.mubr.msk.bf16.mxu0 %vm719_vm2, %v3627_v36  ;;  %3548 = vmatprep.mubr.msk.bf16.mxu1 %vm719_vm2, %v3677_v9 }
  0x6d   :  { %3449 = vmatmul.mubr.msk.bf16.gmra.mxu0 %vm719_vm2, %v3628_v39  ;;  %3549 = vmatmul.mubr.msk.bf16.gmra.mxu1 %vm719_vm2, %v3678_v10 }
  0x6e   :  { %3452 = vmatprep.mubr.msk.bf16.mxu0 %vm719_vm2, %v3629_v40  ;;  %3552 = vmatprep.mubr.msk.bf16.mxu1 %vm719_vm2, %v3679_v13 }
  0x75   :  { %3453 = vmatmul.mubr.msk.bf16.gmra.mxu0 %vm719_vm2, %v3630_v43  ;;  %3553 = vmatmul.mubr.msk.bf16.gmra.mxu1 %vm719_vm2, %v3680_v14 }
  0x76   :  { %3456 = vmatprep.mubr.msk.bf16.mxu0 %vm719_vm2, %v3631_v44  ;;  %3556 = vmatprep.mubr.msk.bf16.mxu1 %vm719_vm2, %v3681_v17 }
  0x7d   :  { %3457 = vmatmul.mubr.msk.bf16.gmra.mxu0 %vm719_vm2, %v3632_v47  ;;  %3557 = vmatmul.mubr.msk.bf16.gmra.mxu1 %vm719_vm2, %v3682_v18 }
  0x7e   :  { %3460 = vmatprep.mubr.msk.bf16.mxu0 %vm719_vm2, %v3633_v48  ;;  %3560 = vmatprep.mubr.msk.bf16.mxu1 %vm719_vm2, %v3683_v21 }
  0x85   :  { %3461 = vmatmul.mubr.msk.bf16.gmra.mxu0 %vm719_vm2, %v3634_v51  ;;  %3561 = vmatmul.mubr.msk.bf16.gmra.mxu1 %vm719_vm2, %v3684_v22  ;;  %v3689_v51 = vld [vmem:[%s7336_s0 + $0x2b0] sm:$0xff]  }
  0x86   :  { %3464 = vmatprep.mubr.msk.bf16.mxu0 %vm719_vm2, %v3635_v52  ;;  %3564 = vmatprep.mubr.msk.bf16.mxu1 %vm719_vm2, %v3685_v24 }
  0x8d   :  { %3465 = vmatmul.mubr.msk.bf16.gmra.mxu0 %vm719_vm2, %v3636_v55  ;;  %3565 = vmatmul.mubr.msk.bf16.gmra.mxu1 %vm719_vm2, %v3686_v26  ;;  %v3694_v26 = vld [vmem:[%s7336_s0 + $0x2d8] sm:$0xff]  }
  0x8e   :  { %3468 = vmatprep.mubr.msk.bf16.mxu0 %vm719_vm2, %v3637_v56  ;;  %3568 = vmatprep.mubr.msk.bf16.mxu1 %vm719_vm2, %v3687_v33 }
  0x95   :  { %3469 = vmatmul.mubr.msk.bf16.gmra.mxu0 %vm719_vm2, %v3638_v59  ;;  %3569 = vmatmul.mubr.msk.bf16.gmra.mxu1 %vm719_vm2, %v3688_v35 }
  0x96   :  { %3472 = vmatprep.mubr.msk.bf16.mxu0 %vm719_vm2, %v3639_v60  ;;  %3572 = vmatprep.mubr.msk.bf16.mxu1 %vm719_vm2, %v3689_v51  ;;  %v3696_v51 = vld [vmem:[%s7336_s0 + $0x2e8] sm:$0xff]  }
  0x9d   :  { %3473 = vmatmul.mubr.msk.bf16.gmra.mxu0 %vm719_vm2, %v3640_v63  ;;  %3573 = vmatmul.mubr.msk.bf16.gmra.mxu1 %vm719_vm2, %v3690_v53 }
  0x9e   :  { %3476 = vmatprep.mubr.msk.bf16.mxu0 %vm719_vm2, %v3641_v0  ;;  %3576 = vmatprep.mubr.msk.bf16.mxu1 %vm719_vm2, %v3691_v5 }
  0xa5   :  { %3477 = vmatmul.mubr.msk.bf16.gmra.mxu0 %vm719_vm2, %v3642_v3 }
  0xa6   :  { %3480 = vmatprep.mubr.msk.bf16.mxu0 %vm719_vm2, %v3643_v4 }
  0xad   :  { %3481 = vmatmul.mubr.msk.bf16.gmra.mxu0 %vm719_vm2, %v3644_v7  ;;  %v3692_v7 = vld [vmem:[%s7336_s0 + $0x2c8] sm:$0xff]  }
  0xae   :  { %3484 = vmatprep.mubr.msk.bf16.mxu0 %vm719_vm2, %v3645_v8  ;;  %3577 = vmatmul.mubr.msk.bf16.gmra.mxu1 %vm719_vm2, %v3692_v7 }
  0xb5   :  { %3485 = vmatmul.mubr.msk.bf16.gmra.mxu0 %vm719_vm2, %v3646_v11 }
  0xb6   :  { %3488 = vmatprep.mubr.msk.bf16.mxu0 %vm719_vm2, %v3647_v12 }
  0xbd   :  { %3489 = vmatmul.mubr.msk.bf16.gmra.mxu0 %vm719_vm2, %v3648_v15 }
  0xbe   :  { %3492 = vmatprep.mubr.msk.bf16.mxu0 %vm719_vm2, %v3649_v16 }
  0xc5   :  { %3493 = vmatmul.mubr.msk.bf16.gmra.mxu0 %vm719_vm2, %v3650_v19 }
  0xc6   :  { %3496 = vmatprep.mubr.msk.bf16.mxu0 %vm719_vm2, %v3651_v20 }
  0xcd   :  { %v4065_v25 = vpop.f32.mrf.mxu0  ;;  %3497 = vmatmul.mubr.msk.bf16.gmra.mxu0 %vm719_vm2, %v3652_v23  ;;  %v3693_v23 = vld [vmem:[%s7336_s0 + $0x2d0] sm:$0xff]  }
  0xce   :  { %7597 = vst [vmem:[#allocation2_spill] sm:$0xff] %v4065_v25  ;;  %v2041_v36 = vmul.f32 %v4065_v25, %v4065_v25  ;;  %3580 = vmatprep.mubr.msk.bf16.mxu1 %vm719_vm2, %v3693_v23 }
  0xcf   :  { %v4072_v27 = vpop.f32.mrf.mxu0  ;;  %3581 = vmatmul.mubr.msk.bf16.gmra.mxu1 %vm719_vm2, %v3694_v26 }
  0xd0   :  { %7598 = vst [vmem:[#allocation3_spill] sm:$0xff] %v4072_v27  ;;  %v2039_v30 = vmul.f32 %v4072_v27, %v4072_v27 }
  0xd1   :  { %v4075_v28 = vpop.f32.mrf.mxu0 }
  0xd2   :  { %7599 = vst [vmem:[#allocation4_spill] sm:$0xff] %v4075_v28  ;;  %v2042_v40 = vmul.f32 %v4075_v28, %v4075_v28 }
  0xd3   :  { %v4077_v29 = vpop.f32.mrf.mxu0 }
  0xd4   :  { %7600 = vst [vmem:[#allocation5_spill] sm:$0xff] %v4077_v29  ;;  %v1838_v31 = vadd.f32 %v4077_v29, %v4072_v27  ;;  %v2040_v32 = vmul.f32 %v4077_v29, %v4077_v29 }
  0xd5   :  { %v4088_v34 = vpop.f32.mrf.mxu0 }
  0xd6   :  { %7601 = vst [vmem:[#allocation6_spill] sm:$0xff] %v4088_v34  ;;  %v1839_v37 = vadd.f32 %v4065_v25, %v1838_v31  ;;  %v2235_v38 = vadd.f32 %v2040_v32, %v2039_v30  ;;  %v2045_v54 = vmul.f32 %v4088_v34, %v4088_v34 }
  0xd7   :  { %v4097_v39 = vpop.f32.mrf.mxu0 }
  0xd8   :  { %7602 = vst [vmem:[#allocation7_spill] sm:$0xff] %v4097_v39  ;;  %v1840_v41 = vadd.f32 %v4075_v28, %v1839_v37  ;;  %v2236_v42 = vadd.f32 %v2235_v38, %v2041_v36  ;;  %v2043_v46 = vmul.f32 %v4097_v39, %v4097_v39 }
  0xd9   :  { %v4103_v43 = vpop.f32.mrf.mxu0 }
  0xda   :  { %7603 = vst [vmem:[#allocation8_spill] sm:$0xff] %v4103_v43  ;;  %v2237_v44 = vadd.f32 %v2236_v42, %v2042_v40  ;;  %v1841_v45 = vadd.f32 %v1840_v41, %v4097_v39  ;;  %v2046_v58 = vmul.f32 %v4103_v43, %v4103_v43 }
  0xdb   :  { %v4108_v47 = vpop.f32.mrf.mxu0 }
  0xdc   :  { %7604 = vst [vmem:[#allocation9_spill] sm:$0xff] %v4108_v47  ;;  %v2238_v48 = vadd.f32 %v2237_v44, %v2043_v46  ;;  %v1842_v49 = vadd.f32 %v1841_v45, %v4108_v47  ;;  %v2044_v50 = vmul.f32 %v4108_v47, %v4108_v47 }
  0xdd   :  { %v4116_v52 = vpop.f32.mrf.mxu0 }
  0xde   :  { %7605 = vst [vmem:[#allocation10_spill] sm:$0xff] %v4116_v52  ;;  %v1843_v55 = vadd.f32 %v4088_v34, %v1842_v49  ;;  %v2239_v56 = vadd.f32 %v2238_v48, %v2044_v50  ;;  %v2049_v8 = vmul.f32 %v4116_v52, %v4116_v52  ;;  %v3695_v49 = vld [vmem:[%s7336_s0 + $0x2e0] sm:$0xff]  }
  0xdf   :  { %v4125_v57 = vpop.f32.mrf.mxu0  ;;  %3584 = vmatprep.mubr.msk.bf16.mxu1 %vm719_vm2, %v3695_v49 }
  0xe0   :  { %7606 = vst [vmem:[#allocation11_spill] sm:$0xff] %v4125_v57  ;;  %v1844_v59 = vadd.f32 %v4103_v43, %v1843_v55  ;;  %v2240_v60 = vadd.f32 %v2239_v56, %v2045_v54  ;;  %v2047_v0 = vmul.f32 %v4125_v57, %v4125_v57  ;;  %3585 = vmatmul.mubr.msk.bf16.gmra.mxu1 %vm719_vm2, %v3696_v51 }
  0xe1   :  { %v4131_v61 = vpop.f32.mrf.mxu0 }
  0xe2   :  { %7607 = vst [vmem:[#allocation12_spill] sm:$0xff] %v4131_v61  ;;  %v2241_v62 = vadd.f32 %v2240_v60, %v2046_v58  ;;  %v1845_v63 = vadd.f32 %v1844_v59, %v4125_v57  ;;  %v2050_v12 = vmul.f32 %v4131_v61, %v4131_v61 }
  0xe3   :  { %v4136_v1 = vpop.f32.mrf.mxu0 }
  0xe4   :  { %7608 = vst [vmem:[#allocation13_spill] sm:$0xff] %v4136_v1  ;;  %v2242_v2 = vadd.f32 %v2241_v62, %v2047_v0  ;;  %v1846_v3 = vadd.f32 %v1845_v63, %v4136_v1  ;;  %v2048_v4 = vmul.f32 %v4136_v1, %v4136_v1 }
  0xe5   :  { %v4144_v6 = vpop.f32.mrf.mxu0 }
  0xe6   :  { %7609 = vst [vmem:[#allocation14_spill] sm:$0xff] %v4144_v6  ;;  %v1847_v9 = vadd.f32 %v4116_v52, %v1846_v3  ;;  %v2243_v10 = vadd.f32 %v2242_v2, %v2048_v4  ;;  %v2053_v30 = vmul.f32 %v4144_v6, %v4144_v6 }
  0xe7   :  { %v4153_v11 = vpop.f32.mrf.mxu0 }
  0xe8   :  { %7610 = vst [vmem:[#allocation15_spill] sm:$0xff] %v4153_v11  ;;  %v1848_v13 = vadd.f32 %v4131_v61, %v1847_v9  ;;  %v2244_v14 = vadd.f32 %v2243_v10, %v2049_v8  ;;  %v2051_v18 = vmul.f32 %v4153_v11, %v4153_v11  ;;  %v3697_v8 = vld [vmem:[%s7336_s0 + $0x2f0] sm:$0xff]   ;;  %v3698_v10 = vld [vmem:[%s7336_s0 + $0x2f8] sm:$0xff]  }
  0xe9   :  { %v4159_v15 = vpop.f32.mrf.mxu0  ;;  %3588 = vmatprep.mubr.msk.bf16.mxu1 %vm719_vm2, %v3697_v8 }
  0xea   :  { %7611 = vst [vmem:[#allocation16_spill] sm:$0xff] %v4159_v15  ;;  %v2245_v16 = vadd.f32 %v2244_v14, %v2050_v12  ;;  %v1849_v17 = vadd.f32 %v1848_v13, %v4153_v11  ;;  %v2054_v35 = vmul.f32 %v4159_v15, %v4159_v15  ;;  %3589 = vmatmul.mubr.msk.bf16.gmra.mxu1 %vm719_vm2, %v3698_v10  ;;  %v4288_v10 = vpop.f32.mrf.mxu1 }
  0xeb   :  { %v4164_v19 = vpop.f32.mrf.mxu0 }
  0xec   :  { %7612 = vst [vmem:[#allocation17_spill] sm:$0xff] %v4164_v19  ;;  %v2246_v20 = vadd.f32 %v2245_v16, %v2051_v18  ;;  %v1850_v21 = vadd.f32 %v1849_v17, %v4164_v19  ;;  %v2052_v22 = vmul.f32 %v4164_v19, %v4164_v19 }
  0xed   :  { %v4172_v24 = vpop.f32.mrf.mxu0 }
  0xee   :  { %7613 = vst [vmem:[#allocation18_spill] sm:$0xff] %v4172_v24  ;;  %v1851_v31 = vadd.f32 %v4144_v6, %v1850_v21  ;;  %v2247_v32 = vadd.f32 %v2246_v20, %v2052_v22  ;;  %v2057_v53 = vmul.f32 %v4172_v24, %v4172_v24 }
  0xef   :  { %v4181_v33 = vpop.f32.mrf.mxu0 }
  0xf0   :  { %7614 = vst [vmem:[#allocation19_spill] sm:$0xff] %v4181_v33  ;;  %v1852_v36 = vadd.f32 %v4159_v15, %v1851_v31  ;;  %v2248_v37 = vadd.f32 %v2247_v32, %v2053_v30  ;;  %v2055_v42 = vmul.f32 %v4181_v33, %v4181_v33 }
  0xf1   :  { %v4187_v38 = vpop.f32.mrf.mxu0 }
  0xf2   :  { %7615 = vst [vmem:[#allocation20_spill] sm:$0xff] %v4187_v38  ;;  %v2249_v40 = vadd.f32 %v2248_v37, %v2054_v35  ;;  %v1853_v41 = vadd.f32 %v1852_v36, %v4181_v33  ;;  %v2058_v58 = vmul.f32 %v4187_v38, %v4187_v38  ;;  %v3699_v36 = vld [vmem:[%s7336_s0 + $0x300] sm:$0xff]  }
  0xf3   :  { %v4192_v44 = vpop.f32.mrf.mxu0  ;;  %3592 = vmatprep.mubr.msk.bf16.mxu1 %vm719_vm2, %v3699_v36 }
  0xf4   :  { %7616 = vst [vmem:[#allocation21_spill] sm:$0xff] %v4192_v44  ;;  %v2250_v45 = vadd.f32 %v2249_v40, %v2055_v42  ;;  %v1854_v46 = vadd.f32 %v1853_v41, %v4192_v44  ;;  %v2056_v48 = vmul.f32 %v4192_v44, %v4192_v44  ;;  %v3700_v40 = vld [vmem:[%s7336_s0 + $0x308] sm:$0xff]  }
  0xf5   :  { %v4200_v50 = vpop.f32.mrf.mxu0  ;;  %3593 = vmatmul.mubr.msk.bf16.gmra.mxu1 %vm719_vm2, %v3700_v40 }
  0xf6   :  { %7617 = vst [vmem:[#allocation22_spill] sm:$0xff] %v4200_v50  ;;  %v1855_v54 = vadd.f32 %v4172_v24, %v1854_v46  ;;  %v2251_v55 = vadd.f32 %v2250_v45, %v2056_v48  ;;  %v2061_v12 = vmul.f32 %v4200_v50, %v4200_v50 }
  0xf7   :  { %v4209_v56 = vpop.f32.mrf.mxu0 }
  0xf8   :  { %7618 = vst [vmem:[#allocation23_spill] sm:$0xff] %v4209_v56  ;;  %v1856_v59 = vadd.f32 %v4187_v38, %v1855_v54  ;;  %v2252_v60 = vadd.f32 %v2251_v55, %v2057_v53  ;;  %v2059_v2 = vmul.f32 %v4209_v56, %v4209_v56 }
  0xf9   :  { %v4215_v62 = vpop.f32.mrf.mxu0 }
  0xfa   :  { %7619 = vst [vmem:[#allocation24_spill] sm:$0xff] %v4215_v62  ;;  %v2253_v63 = vadd.f32 %v2252_v60, %v2058_v58  ;;  %v1857_v0 = vadd.f32 %v1856_v59, %v4209_v56  ;;  %v2062_v17 = vmul.f32 %v4215_v62, %v4215_v62 }
  0xfb   :  { %v4220_v3 = vpop.f32.mrf.mxu0 }
  0xfc   :  { %7620 = vst [vmem:[#allocation25_spill] sm:$0xff] %v4220_v3  ;;  %v2254_v4 = vadd.f32 %v2253_v63, %v2059_v2  ;;  %v1858_v5 = vadd.f32 %v1857_v0, %v4220_v3  ;;  %v2060_v7 = vmul.f32 %v4220_v3, %v4220_v3 }
  0xfd   :  { %v4228_v9 = vpop.f32.mrf.mxu0 }
  0xfe   :  { %7621 = vst [vmem:[#allocation26_spill] sm:$0xff] %v4228_v9  ;;  %v1859_v13 = vadd.f32 %v4200_v50, %v1858_v5  ;;  %v2255_v14 = vadd.f32 %v2254_v4, %v2060_v7  ;;  %v2065_v41 = vmul.f32 %v4228_v9, %v4228_v9 }
  0xff   :  { %v4237_v16 = vpop.f32.mrf.mxu0 }
 0x100   :  { %7622 = vst [vmem:[#allocation27_spill] sm:$0xff] %v4237_v16  ;;  %v1860_v18 = vadd.f32 %v4215_v62, %v1859_v13  ;;  %v2256_v20 = vadd.f32 %v2255_v14, %v2061_v12  ;;  %v2063_v26 = vmul.f32 %v4237_v16, %v4237_v16 }
 0x101   :  { %v4243_v21 = vpop.f32.mrf.mxu0 }
 0x102   :  { %7623 = vst [vmem:[#allocation28_spill] sm:$0xff] %v4243_v21  ;;  %v2257_v22 = vadd.f32 %v2256_v20, %v2062_v17  ;;  %v1861_v23 = vadd.f32 %v1860_v18, %v4237_v16  ;;  %v2066_v48 = vmul.f32 %v4243_v21, %v4243_v21  ;;  %v4295_v18 = vpop.f32.mrf.mxu1 }
 0x103   :  { %v4248_v30 = vpop.f32.mrf.mxu0  ;;  %7632 = vst [vmem:[#allocation37_spill] sm:$0xff] %v4295_v18 }
 0x104   :  { %7624 = vst [vmem:[#allocation29_spill] sm:$0xff] %v4248_v30  ;;  %v2258_v31 = vadd.f32 %v2257_v22, %v2063_v26  ;;  %v1862_v32 = vadd.f32 %v1861_v23, %v4248_v30  ;;  %v2064_v35 = vmul.f32 %v4248_v30, %v4248_v30 }
 0x105   :  { %v4256_v37 = vpop.f32.mrf.mxu0 }
 0x106   :  { %7625 = vst [vmem:[#allocation30_spill] sm:$0xff] %v4256_v37  ;;  %v1863_v42 = vadd.f32 %v4228_v9, %v1862_v32  ;;  %v2259_v45 = vadd.f32 %v2258_v31, %v2064_v35  ;;  %v2069_v4 = vmul.f32 %v4256_v37, %v4256_v37  ;;  %v4302_v31 = vpop.f32.mrf.mxu1 }
 0x107   :  { %v4265_v46 = vpop.f32.mrf.mxu0 }
 0x108   :  { %7626 = vst [vmem:[#allocation31_spill] sm:$0xff] %v4265_v46  ;;  %v1864_v49 = vadd.f32 %v4243_v21, %v1863_v42  ;;  %v2260_v51 = vadd.f32 %v2259_v45, %v2065_v41  ;;  %v2067_v58 = vmul.f32 %v4265_v46, %v4265_v46  ;;  %v4309_v41 = vpop.f32.mrf.mxu1 }
 0x109   :  { %v4271_v53 = vpop.f32.mrf.mxu0  ;;  %7635 = vst [vmem:[#allocation40_spill] sm:$0xff] %v4309_v41 }
 0x10a   :  { %7627 = vst [vmem:[#allocation32_spill] sm:$0xff] %v4271_v53  ;;  %v2261_v54 = vadd.f32 %v2260_v51, %v2066_v48  ;;  %v1865_v55 = vadd.f32 %v1864_v49, %v4265_v46  ;;  %v2070_v12 = vmul.f32 %v4271_v53, %v4271_v53  ;;  %v4316_v51 = vpop.f32.mrf.mxu1 }
 0x10b   :  { %v4276_v59 = vpop.f32.mrf.mxu0 }
 0x10c   :  { %7628 = vst [vmem:[#allocation33_spill] sm:$0xff] %v4276_v59  ;;  %v2262_v60 = vadd.f32 %v2261_v54, %v2067_v58  ;;  %v1866_v63 = vadd.f32 %v1865_v55, %v4276_v59  ;;  %v2068_v0 = vmul.f32 %v4276_v59, %v4276_v59 }
 0x10d   :  { %v4281_v2 = vpop.f32.mrf.mxu0 }
 0x10e   :  { %7629 = vst [vmem:[#allocation34_spill] sm:$0xff] %v4281_v2  ;;  %v1867_v5 = vadd.f32 %v4256_v37, %v1866_v63  ;;  %v2263_v7 = vadd.f32 %v2262_v60, %v2068_v0  ;;  %v2073_v42 = vmul.f32 %v4281_v2, %v4281_v2  ;;  %v4323_v63 = vpop.f32.mrf.mxu1 }
 0x10f   :  { %v4286_v8 = vpop.f32.mrf.mxu0  ;;  %7638 = vst [vmem:[#allocation43_spill] sm:$0xff] %v4323_v63 }
 0x110   :  { %7630 = vst [vmem:[#allocation35_spill] sm:$0xff] %v4286_v8  ;;  %v1868_v13 = vadd.f32 %v4271_v53, %v1867_v5  ;;  %v2264_v14 = vadd.f32 %v2263_v7, %v2069_v4  ;;  %v2071_v23 = vmul.f32 %v4286_v8, %v4286_v8 }
 0x111   :  { %v4293_v17 = vpop.f32.mrf.mxu0 }
 0x112   :  { %7631 = vst [vmem:[#allocation36_spill] sm:$0xff] %v4293_v17  ;;  %v2265_v20 = vadd.f32 %v2264_v14, %v2070_v12  ;;  %v1869_v22 = vadd.f32 %v1868_v13, %v4286_v8  ;;  %v2074_v54 = vmul.f32 %v4293_v17, %v4293_v17  ;;  %v4330_v12 = vpop.f32.mrf.mxu1 }
 0x113   :  { %v4300_v26 = vpop.f32.mrf.mxu0 }
 0x114   :  { %7633 = vst [vmem:[#allocation38_spill] sm:$0xff] %v4300_v26  ;;  %v2266_v32 = vadd.f32 %v2265_v20, %v2071_v23  ;;  %v1870_v35 = vadd.f32 %v1869_v22, %v4300_v26  ;;  %v2072_v36 = vmul.f32 %v4300_v26, %v4300_v26  ;;  %v4337_v23 = vpop.f32.mrf.mxu1 }
 0x115   :  { %v4307_v40 = vpop.f32.mrf.mxu0  ;;  %7641 = vst [vmem:[#allocation46_spill] sm:$0xff] %v4337_v23 }
 0x116   :  { %7634 = vst [vmem:[#allocation39_spill] sm:$0xff] %v4307_v40  ;;  %v1871_v45 = vadd.f32 %v4281_v2, %v1870_v35  ;;  %v2267_v48 = vadd.f32 %v2266_v32, %v2072_v36  ;;  %v2077_v32 = vmul.f32 %v4307_v40, %v4307_v40 }
 0x117   :  { %v4314_v49 = vpop.f32.mrf.mxu0 }
 0x118   :  { %7636 = vst [vmem:[#allocation41_spill] sm:$0xff] %v4314_v49  ;;  %v1872_v55 = vadd.f32 %v4293_v17, %v1871_v45  ;;  %v2268_v58 = vadd.f32 %v2267_v48, %v2073_v42  ;;  %v2075_v5 = vmul.f32 %v4314_v49, %v4314_v49  ;;  %v4344_v45 = vpop.f32.mrf.mxu1 }
 0x119   :  { %v4321_v60 = vpop.f32.mrf.mxu0 }
 0x11a   :  { %7637 = vst [vmem:[#allocation42_spill] sm:$0xff] %v4321_v60  ;;  %v2269_v0 = vadd.f32 %v2268_v58, %v2074_v54  ;;  %v1873_v4 = vadd.f32 %v1872_v55, %v4314_v49  ;;  %v2078_v48 = vmul.f32 %v4321_v60, %v4321_v60 }
 0x11b   :  { %v4328_v7 = vpop.f32.mrf.mxu0 }
 0x11c   :  { %7639 = vst [vmem:[#allocation44_spill] sm:$0xff] %v4328_v7  ;;  %v2270_v13 = vadd.f32 %v2269_v0, %v2075_v5  ;;  %v1874_v14 = vadd.f32 %v1873_v4, %v4328_v7  ;;  %v2076_v20 = vmul.f32 %v4328_v7, %v4328_v7  ;;  %v4351_v0 = vpop.f32.mrf.mxu1 }
 0x11d   :  { %v4335_v22 = vpop.f32.mrf.mxu0  ;;  %7644 = vst [vmem:[#allocation49_spill] sm:$0xff] %v4351_v0 }
 0x11e   :  { %7640 = vst [vmem:[#allocation45_spill] sm:$0xff] %v4335_v22  ;;  %v1875_v35 = vadd.f32 %v4307_v40, %v1874_v14  ;;  %v2271_v36 = vadd.f32 %v2270_v13, %v2076_v20  ;;  %v4358_v20 = vpop.f32.mrf.mxu1 }
 0x11f   :  { %v4342_v42 = vpop.f32.mrf.mxu0 }
 0x120   :  { %7642 = vst [vmem:[#allocation47_spill] sm:$0xff] %v4342_v42  ;;  %v1876_v54 = vadd.f32 %v4321_v60, %v1875_v35  ;;  %v2272_v55 = vadd.f32 %v2271_v36, %v2077_v32  ;;  %v2079_v13 = vmul.f32 %v4342_v42, %v4342_v42  ;;  %v4365_v36 = vpop.f32.mrf.mxu1 }
 0x121   :  { %v4349_v58 = vpop.f32.mrf.mxu0  ;;  %7647 = vst [vmem:[#allocation52_spill] sm:$0xff] %v4365_v36 }
 0x122   :  { %7643 = vst [vmem:[#allocation48_spill] sm:$0xff] %v4349_v58  ;;  %v2273_v4 = vadd.f32 %v2272_v55, %v2078_v48  ;;  %v1877_v5 = vadd.f32 %v1876_v54, %v4342_v42  ;;  %v2081_v48 = vmul.f32 %v4335_v22, %v4335_v22  ;;  %v4372_v60 = vpop.f32.mrf.mxu1 }
 0x123   :  { %v4356_v14 = vpop.f32.mrf.mxu0 }
 0x124   :  { %7645 = vst [vmem:[#allocation50_spill] sm:$0xff] %v4356_v14  ;;  %v2274_v40 = vadd.f32 %v2273_v4, %v2079_v13  ;;  %v1878_v7 = vadd.f32 %v1877_v5, %v4356_v14  ;;  %v2080_v32 = vmul.f32 %v4356_v14, %v4356_v14  ;;  %v2082_v4 = vmul.f32 %v4349_v58, %v4349_v58  ;;  %v4379_v49 = vpop.f32.mrf.mxu1 }
 0x125   :  { %v4363_v35 = vpop.f32.mrf.mxu0  ;;  %7650 = vst [vmem:[#allocation55_spill] sm:$0xff] %v4379_v49 }
 0x126   :  { %7646 = vst [vmem:[#allocation51_spill] sm:$0xff] %v4363_v35  ;;  %v1879_v54 = vadd.f32 %v4335_v22, %v1878_v7  ;;  %v2275_v55 = vadd.f32 %v2274_v40, %v2080_v32  ;;  %v4386_v22 = vpop.f32.mrf.mxu1 }
 0x127   :  { %v4370_v42 = vpop.f32.mrf.mxu0 }
 0x128   :  { %7648 = vst [vmem:[#allocation53_spill] sm:$0xff] %v4370_v42  ;;  %v2276_v5 = vadd.f32 %v2275_v55, %v2081_v48  ;;  %v1880_v13 = vadd.f32 %v4349_v58, %v1879_v54  ;;  %v2083_v7 = vmul.f32 %v4370_v42, %v4370_v42  ;;  %v4393_v55 = vpop.f32.mrf.mxu1 }
 0x129   :  { %v4377_v14 = vpop.f32.mrf.mxu0  ;;  %7653 = vst [vmem:[#allocation58_spill] sm:$0xff] %v4393_v55 }
 0x12a   :  { %7649 = vst [vmem:[#allocation54_spill] sm:$0xff] %v4377_v14  ;;  %v1881_v17 = vadd.f32 %v1880_v13, %v4370_v42  ;;  %v2277_v40 = vadd.f32 %v2276_v5, %v2082_v4  ;;  %v2085_v13 = vmul.f32 %v4363_v35, %v4363_v35  ;;  %v4400_v58 = vpop.f32.mrf.mxu1 }
 0x12b   :  { %v4384_v32 = vpop.f32.mrf.mxu0 }
 0x12c   :  { %7651 = vst [vmem:[#allocation56_spill] sm:$0xff] %v4384_v32  ;;  %v2278_v2 = vadd.f32 %v2277_v40, %v2083_v7  ;;  %v1882_v26 = vadd.f32 %v1881_v17, %v4384_v32  ;;  %v2084_v48 = vmul.f32 %v4384_v32, %v4384_v32  ;;  %v2086_v17 = vmul.f32 %v4377_v14, %v4377_v14  ;;  %v4407_v8 = vpop.f32.mrf.mxu1 }
 0x12d   :  { %v4391_v54 = vpop.f32.mrf.mxu0  ;;  %7656 = vst [vmem:[#allocation61_spill] sm:$0xff] %v4407_v8 }
 0x12e   :  { %7652 = vst [vmem:[#allocation57_spill] sm:$0xff] %v4391_v54  ;;  %v1883_v42 = vadd.f32 %v4363_v35, %v1882_v26  ;;  %v2279_v4 = vadd.f32 %v2278_v2, %v2084_v48  ;;  %v4414_v35 = vpop.f32.mrf.mxu1 }
 0x12f   :  { %v4398_v5 = vpop.f32.mrf.mxu0 }
 0x130   :  { %7654 = vst [vmem:[#allocation59_spill] sm:$0xff] %v4398_v5  ;;  %v2280_v7 = vadd.f32 %v2279_v4, %v2085_v13  ;;  %v1884_v40 = vadd.f32 %v4377_v14, %v1883_v42  ;;  %v2087_v26 = vmul.f32 %v4398_v5, %v4398_v5  ;;  %v4421_v4 = vpop.f32.mrf.mxu1 }
 0x131   :  { %v4405_v32 = vpop.f32.mrf.mxu0  ;;  %7659 = vst [vmem:[#allocation64_spill] sm:$0xff] %v4421_v4 }
 0x132   :  { %7655 = vst [vmem:[#allocation60_spill] sm:$0xff] %v4405_v32  ;;  %v1885_v53 = vadd.f32 %v1884_v40, %v4398_v5  ;;  %v2281_v2 = vadd.f32 %v2280_v7, %v2086_v17  ;;  %v2089_v40 = vmul.f32 %v4391_v54, %v4391_v54  ;;  %v4428_v14 = vpop.f32.mrf.mxu1 }
 0x133   :  { %v4412_v48 = vpop.f32.mrf.mxu0 }
 0x134   :  { %7657 = vst [vmem:[#allocation62_spill] sm:$0xff] %v4412_v48  ;;  %v2282_v37 = vadd.f32 %v2281_v2, %v2087_v26  ;;  %v1886_v59 = vadd.f32 %v1885_v53, %v4412_v48  ;;  %v2088_v42 = vmul.f32 %v4412_v48, %v4412_v48  ;;  %v2090_v53 = vmul.f32 %v4405_v32, %v4405_v32  ;;  %v4435_v46 = vpop.f32.mrf.mxu1 }
 0x135   :  { %v4419_v13 = vpop.f32.mrf.mxu0  ;;  %7662 = vst [vmem:[#allocation67_spill] sm:$0xff] %v4435_v46 }
 0x136   :  { %7658 = vst [vmem:[#allocation63_spill] sm:$0xff] %v4419_v13  ;;  %v1887_v5 = vadd.f32 %v4391_v54, %v1886_v59  ;;  %v2283_v17 = vadd.f32 %v2282_v37, %v2088_v42  ;;  %v4442_v54 = vpop.f32.mrf.mxu1 }
 0x137   :  { %v4426_v7 = vpop.f32.mrf.mxu0 }
 0x138   :  { %7660 = vst [vmem:[#allocation65_spill] sm:$0xff] %v4426_v7  ;;  %v2284_v26 = vadd.f32 %v2283_v17, %v2089_v40  ;;  %v1888_v2 = vadd.f32 %v4405_v32, %v1887_v5  ;;  %v2091_v59 = vmul.f32 %v4426_v7, %v4426_v7  ;;  %v4449_v17 = vpop.f32.mrf.mxu1 }
 0x139   :  { %v4433_v48 = vpop.f32.mrf.mxu0  ;;  %7665 = vst [vmem:[#allocation70_spill] sm:$0xff] %v4449_v17 }
 0x13a   :  { %7661 = vst [vmem:[#allocation66_spill] sm:$0xff] %v4433_v48  ;;  %v1889_v21 = vadd.f32 %v1888_v2, %v4426_v7  ;;  %v2285_v37 = vadd.f32 %v2284_v26, %v2090_v53  ;;  %v2093_v2 = vmul.f32 %v4419_v13, %v4419_v13  ;;  %v4456_v32 = vpop.f32.mrf.mxu1 }
 0x13b   :  { %v4440_v42 = vpop.f32.mrf.mxu0 }
 0x13c   :  { %7663 = vst [vmem:[#allocation68_spill] sm:$0xff] %v4440_v42  ;;  %v2286_v9 = vadd.f32 %v2285_v37, %v2091_v59  ;;  %v1890_v30 = vadd.f32 %v1889_v21, %v4440_v42  ;;  %v2092_v5 = vmul.f32 %v4440_v42, %v4440_v42  ;;  %v2094_v21 = vmul.f32 %v4433_v48, %v4433_v48  ;;  %v4463_v16 = vpop.f32.mrf.mxu1 }
 0x13d   :  { %v4447_v40 = vpop.f32.mrf.mxu0  ;;  %7668 = vst [vmem:[#allocation73_spill] sm:$0xff] %v4463_v16 }
 0x13e   :  { %7664 = vst [vmem:[#allocation69_spill] sm:$0xff] %v4447_v40  ;;  %v1891_v7 = vadd.f32 %v4419_v13, %v1890_v30  ;;  %v2287_v53 = vadd.f32 %v2286_v9, %v2092_v5  ;;  %v4470_v13 = vpop.f32.mrf.mxu1 }
 0x13f   :  { %v4454_v26 = vpop.f32.mrf.mxu0 }
 0x140   :  { %7666 = vst [vmem:[#allocation71_spill] sm:$0xff] %v4454_v26  ;;  %v2288_v59 = vadd.f32 %v2287_v53, %v2093_v2  ;;  %v1892_v37 = vadd.f32 %v4433_v48, %v1891_v7  ;;  %v2095_v30 = vmul.f32 %v4454_v26, %v4454_v26  ;;  %v4477_v53 = vpop.f32.mrf.mxu1 }
 0x141   :  { %v4461_v42 = vpop.f32.mrf.mxu0  ;;  %7671 = vst [vmem:[#allocation76_spill] sm:$0xff] %v4477_v53 }
 0x142   :  { %7667 = vst [vmem:[#allocation72_spill] sm:$0xff] %v4461_v42  ;;  %v1893_v62 = vadd.f32 %v1892_v37, %v4454_v26  ;;  %v2289_v9 = vadd.f32 %v2288_v59, %v2094_v21  ;;  %v2097_v37 = vmul.f32 %v4447_v40, %v4447_v40  ;;  %v4484_v48 = vpop.f32.mrf.mxu1 }
 0x143   :  { %v4468_v5 = vpop.f32.mrf.mxu0 }
 0x144   :  { %7669 = vst [vmem:[#allocation74_spill] sm:$0xff] %v4468_v5  ;;  %v2290_v50 = vadd.f32 %v2289_v9, %v2095_v30  ;;  %v1894_v3 = vadd.f32 %v1893_v62, %v4468_v5  ;;  %v2096_v7 = vmul.f32 %v4468_v5, %v4468_v5  ;;  %v2098_v62 = vmul.f32 %v4461_v42, %v4461_v42  ;;  %v4491_v56 = vpop.f32.mrf.mxu1 }
 0x145   :  { %v4475_v2 = vpop.f32.mrf.mxu0  ;;  %7674 = vst [vmem:[#allocation79_spill] sm:$0xff] %v4491_v56 }
 0x146   :  { %7670 = vst [vmem:[#allocation75_spill] sm:$0xff] %v4475_v2  ;;  %v1895_v26 = vadd.f32 %v4447_v40, %v1894_v3  ;;  %v2291_v21 = vadd.f32 %v2290_v50, %v2096_v7 }
 0x147   :  { %v4482_v59 = vpop.f32.mrf.mxu0 }
 0x148   :  { %7672 = vst [vmem:[#allocation77_spill] sm:$0xff] %v4482_v59  ;;  %v2292_v30 = vadd.f32 %v2291_v21, %v2097_v37  ;;  %v1896_v9 = vadd.f32 %v4461_v42, %v1895_v26  ;;  %v2099_v3 = vmul.f32 %v4482_v59, %v4482_v59  ;;  %v4503_v26 = vpop.f32.mrf.mxu1  ;;  %v2101_v42 = vmul.f32 %v4475_v2, %v4475_v2 }
 0x149   :  { %v4489_v5 = vpop.f32.mrf.mxu0 }
 0x14a   :  { %7673 = vst [vmem:[#allocation78_spill] sm:$0xff] %v4489_v5  ;;  %v1897_v38 = vadd.f32 %v1896_v9, %v4482_v59  ;;  %v2293_v50 = vadd.f32 %v2292_v30, %v2098_v62  ;;  %v2102_v62 = vmul.f32 %v4489_v5, %v4489_v5 }
 0x14b   :  { %v4496_v7 = vpop.f32.mrf.mxu0 }
 0x14c   :  { %7675 = vst [vmem:[#allocation80_spill] sm:$0xff] %v4496_v7  ;;  %v2294_v40 = vadd.f32 %v2293_v50, %v2099_v3  ;;  %v1898_v24 = vadd.f32 %v1897_v38, %v4496_v7  ;;  %v2100_v37 = vmul.f32 %v4496_v7, %v4496_v7  ;;  %v4515_v50 = vpop.f32.mrf.mxu1 }
 0x14d   :  { %v4501_v21 = vpop.f32.mrf.mxu0  ;;  %7679 = vst [vmem:[#allocation84_spill] sm:$0xff] %v4515_v50 }
 0x14e   :  { %7676 = vst [vmem:[#allocation81_spill] sm:$0xff] %v4501_v21  ;;  %v1899_v9 = vadd.f32 %v4475_v2, %v1898_v24  ;;  %v2295_v44 = vadd.f32 %v2294_v40, %v2100_v37 }
 0x14f   :  { %v4508_v59 = vpop.f32.mrf.mxu0 }
 0x150   :  { %7677 = vst [vmem:[#allocation82_spill] sm:$0xff] %v4508_v59  ;;  %v2296_v30 = vadd.f32 %v2295_v44, %v2101_v42  ;;  %v1900_v38 = vadd.f32 %v4489_v5, %v1899_v9  ;;  %v2103_v33 = vmul.f32 %v4508_v59, %v4508_v59  ;;  %v4527_v9 = vpop.f32.mrf.mxu1  ;;  %v2105_v5 = vmul.f32 %v4501_v21, %v4501_v21 }
 0x151   :  { %v4513_v3 = vpop.f32.mrf.mxu0 }
 0x152   :  { %7678 = vst [vmem:[#allocation83_spill] sm:$0xff] %v4513_v3  ;;  %v1901_v7 = vadd.f32 %v1900_v38, %v4508_v59  ;;  %v2297_v15 = vadd.f32 %v2296_v30, %v2102_v62  ;;  %v4539_v30 = vpop.f32.mrf.mxu1 }
 0x153   :  { %v4520_v24 = vpop.f32.mrf.mxu0  ;;  %7684 = vst [vmem:[#allocation89_spill] sm:$0xff] %v4539_v30 }
 0x154   :  { %7680 = vst [vmem:[#allocation85_spill] sm:$0xff] %v4520_v24  ;;  %v2298_v40 = vadd.f32 %v2297_v15, %v2103_v33  ;;  %v1902_v37 = vadd.f32 %v1901_v7, %v4520_v24  ;;  %v2104_v44 = vmul.f32 %v4520_v24, %v4520_v24  ;;  %v2106_v15 = vmul.f32 %v4513_v3, %v4513_v3 }
 0x155   :  { %v4525_v42 = vpop.f32.mrf.mxu0 }
 0x156   :  { %7681 = vst [vmem:[#allocation86_spill] sm:$0xff] %v4525_v42  ;;  %v1903_v38 = vadd.f32 %v4501_v21, %v1902_v37  ;;  %v2299_v2 = vadd.f32 %v2298_v40, %v2104_v44 }
 0x157   :  { %v4532_v59 = vpop.f32.mrf.mxu0 }
 0x158   :  { %7682 = vst [vmem:[#allocation87_spill] sm:$0xff] %v4532_v59  ;;  %v2300_v33 = vadd.f32 %v2299_v2, %v2105_v5  ;;  %v1904_v7 = vadd.f32 %v4513_v3, %v1903_v38  ;;  %v2107_v6 = vmul.f32 %v4532_v59, %v4532_v59  ;;  %v4551_v38 = vpop.f32.mrf.mxu1  ;;  %v2109_v3 = vmul.f32 %v4525_v42, %v4525_v42 }
 0x159   :  { %v4537_v62 = vpop.f32.mrf.mxu0 }
 0x15a   :  { %7683 = vst [vmem:[#allocation88_spill] sm:$0xff] %v4537_v62  ;;  %v1905_v24 = vadd.f32 %v1904_v7, %v4532_v59  ;;  %v2301_v19 = vadd.f32 %v2300_v33, %v2106_v15  ;;  %v4563_v33 = vpop.f32.mrf.mxu1 }
 0x15b   :  { %v4544_v37 = vpop.f32.mrf.mxu0  ;;  %7689 = vst [vmem:[#allocation94_spill] sm:$0xff] %v4563_v33 }
 0x15c   :  { %7685 = vst [vmem:[#allocation90_spill] sm:$0xff] %v4544_v37  ;;  %v2302_v40 = vadd.f32 %v2301_v19, %v2107_v6  ;;  %v1906_v44 = vadd.f32 %v1905_v24, %v4544_v37  ;;  %v2108_v5 = vmul.f32 %v4544_v37, %v4544_v37  ;;  %v2110_v6 = vmul.f32 %v4537_v62, %v4537_v62 }
 0x15d   :  { %v4549_v2 = vpop.f32.mrf.mxu0 }
 0x15e   :  { %7686 = vst [vmem:[#allocation91_spill] sm:$0xff] %v4549_v2  ;;  %v1907_v7 = vadd.f32 %v4525_v42, %v1906_v44  ;;  %v2303_v21 = vadd.f32 %v2302_v40, %v2108_v5 }
 0x15f   :  { %v4556_v59 = vpop.f32.mrf.mxu0 }
 0x160   :  { %7687 = vst [vmem:[#allocation92_spill] sm:$0xff] %v4556_v59  ;;  %v2304_v19 = vadd.f32 %v2303_v21, %v2109_v3  ;;  %v1908_v24 = vadd.f32 %v4537_v62, %v1907_v7  ;;  %v2111_v11 = vmul.f32 %v4556_v59, %v4556_v59  ;;  %v4575_v7 = vpop.f32.mrf.mxu1  ;;  %v2113_v62 = vmul.f32 %v4549_v2, %v4549_v2 }
 0x161   :  { %v4561_v15 = vpop.f32.mrf.mxu0 }
 0x162   :  { %7688 = vst [vmem:[#allocation93_spill] sm:$0xff] %v4561_v15  ;;  %v1909_v37 = vadd.f32 %v1908_v24, %v4556_v59  ;;  %v2305_v61 = vadd.f32 %v2304_v19, %v2110_v6  ;;  %v4587_v19 = vpop.f32.mrf.mxu1 }
 0x163   :  { %v4568_v44 = vpop.f32.mrf.mxu0  ;;  %7694 = vst [vmem:[#allocation99_spill] sm:$0xff] %v4587_v19 }
 0x164   :  { %7690 = vst [vmem:[#allocation95_spill] sm:$0xff] %v4568_v44  ;;  %v2306_v40 = vadd.f32 %v2305_v61, %v2111_v11  ;;  %v1910_v5 = vadd.f32 %v1909_v37, %v4568_v44  ;;  %v2112_v21 = vmul.f32 %v4568_v44, %v4568_v44  ;;  %v2114_v61 = vmul.f32 %v4561_v15, %v4561_v15 }
 0x165   :  { %v4573_v3 = vpop.f32.mrf.mxu0 }
 0x166   :  { %7691 = vst [vmem:[#allocation96_spill] sm:$0xff] %v4573_v3  ;;  %v1911_v24 = vadd.f32 %v4549_v2, %v1910_v5  ;;  %v2307_v42 = vadd.f32 %v2306_v40, %v2112_v21 }
 0x167   :  { %v4580_v59 = vpop.f32.mrf.mxu0 }
 0x168   :  { %7692 = vst [vmem:[#allocation97_spill] sm:$0xff] %v4580_v59  ;;  %v2308_v11 = vadd.f32 %v2307_v42, %v2113_v62  ;;  %v1912_v37 = vadd.f32 %v4561_v15, %v1911_v24  ;;  %v2115_v52 = vmul.f32 %v4580_v59, %v4580_v59  ;;  %v4599_v24 = vpop.f32.mrf.mxu1  ;;  %v2117_v15 = vmul.f32 %v4573_v3, %v4573_v3 }
 0x169   :  { %v4585_v6 = vpop.f32.mrf.mxu0 }
 0x16a   :  { %7693 = vst [vmem:[#allocation98_spill] sm:$0xff] %v4585_v6  ;;  %v1913_v44 = vadd.f32 %v1912_v37, %v4580_v59  ;;  %v2309_v1 = vadd.f32 %v2308_v11, %v2114_v61  ;;  %v4611_v11 = vpop.f32.mrf.mxu1 }
 0x16b   :  { %v4592_v5 = vpop.f32.mrf.mxu0  ;;  %7699 = vst [vmem:[#allocation104_spill] sm:$0xff] %v4611_v11 }
 0x16c   :  { %7695 = vst [vmem:[#allocation100_spill] sm:$0xff] %v4592_v5  ;;  %v2310_v40 = vadd.f32 %v2309_v1, %v2115_v52  ;;  %v1914_v21 = vadd.f32 %v1913_v44, %v4592_v5  ;;  %v2116_v42 = vmul.f32 %v4592_v5, %v4592_v5  ;;  %v2118_v52 = vmul.f32 %v4585_v6, %v4585_v6 }
 0x16d   :  { %v4597_v62 = vpop.f32.mrf.mxu0 }
 0x16e   :  { %7696 = vst [vmem:[#allocation101_spill] sm:$0xff] %v4597_v62  ;;  %v1915_v37 = vadd.f32 %v4573_v3, %v1914_v21  ;;  %v2311_v2 = vadd.f32 %v2310_v40, %v2116_v42 }
 0x16f   :  { %v4604_v59 = vpop.f32.mrf.mxu0 }
 0x170   :  { %7697 = vst [vmem:[#allocation102_spill] sm:$0xff] %v4604_v59  ;;  %v2312_v1 = vadd.f32 %v2311_v2, %v2117_v15  ;;  %v1916_v44 = vadd.f32 %v4585_v6, %v1915_v37  ;;  %v2119_v57 = vmul.f32 %v4604_v59, %v4604_v59  ;;  %v4623_v37 = vpop.f32.mrf.mxu1  ;;  %v2121_v6 = vmul.f32 %v4597_v62, %v4597_v62 }
 0x171   :  { %v4609_v61 = vpop.f32.mrf.mxu0 }
 0x172   :  { %7698 = vst [vmem:[#allocation103_spill] sm:$0xff] %v4609_v61  ;;  %v1917_v5 = vadd.f32 %v1916_v44, %v4604_v59  ;;  %v2313_v43 = vadd.f32 %v2312_v1, %v2118_v52  ;;  %v4635_v1 = vpop.f32.mrf.mxu1 }
 0x173   :  { %v4616_v21 = vpop.f32.mrf.mxu0  ;;  %7704 = vst [vmem:[#allocation109_spill] sm:$0xff] %v4635_v1 }
 0x174   :  { %7700 = vst [vmem:[#allocation105_spill] sm:$0xff] %v4616_v21  ;;  %v2314_v40 = vadd.f32 %v2313_v43, %v2119_v57  ;;  %v1918_v42 = vadd.f32 %v1917_v5, %v4616_v21  ;;  %v2120_v2 = vmul.f32 %v4616_v21, %v4616_v21  ;;  %v2122_v43 = vmul.f32 %v4609_v61, %v4609_v61 }
 0x175   :  { %v4621_v15 = vpop.f32.mrf.mxu0 }
 0x176   :  { %7701 = vst [vmem:[#allocation106_spill] sm:$0xff] %v4621_v15  ;;  %v1919_v44 = vadd.f32 %v4597_v62, %v1918_v42  ;;  %v2315_v3 = vadd.f32 %v2314_v40, %v2120_v2 }
 0x177   :  { %v4628_v59 = vpop.f32.mrf.mxu0 }
 0x178   :  { %7702 = vst [vmem:[#allocation107_spill] sm:$0xff] %v4628_v59  ;;  %v2316_v57 = vadd.f32 %v2315_v3, %v2121_v6  ;;  %v1920_v5 = vadd.f32 %v4609_v61, %v1919_v44  ;;  %v2123_v34 = vmul.f32 %v4628_v59, %v4628_v59  ;;  %v4647_v44 = vpop.f32.mrf.mxu1  ;;  %v2125_v61 = vmul.f32 %v4621_v15, %v4621_v15 }
 0x179   :  { %v4633_v52 = vpop.f32.mrf.mxu0  ;;  %7707 = vst [vmem:[#allocation112_spill] sm:$0xff] %v4647_v44 }
 0x17a   :  { %7703 = vst [vmem:[#allocation108_spill] sm:$0xff] %v4633_v52  ;;  %v1921_v21 = vadd.f32 %v1920_v5, %v4628_v59  ;;  %v2317_v47 = vadd.f32 %v2316_v57, %v2122_v43  ;;  %v4659_v57 = vpop.f32.mrf.mxu1 }
 0x17b   :  { %v4640_v42 = vpop.f32.mrf.mxu0  ;;  %7710 = vst [vmem:[#allocation115_spill] sm:$0xff] %v4659_v57 }
 0x17c   :  { %7705 = vst [vmem:[#allocation110_spill] sm:$0xff] %v4640_v42  ;;  %v2318_v40 = vadd.f32 %v2317_v47, %v2123_v34  ;;  %v1922_v2 = vadd.f32 %v1921_v21, %v4640_v42  ;;  %v2124_v3 = vmul.f32 %v4640_v42, %v4640_v42  ;;  %v2126_v34 = vmul.f32 %v4633_v52, %v4633_v52 }
 0x17d   :  { %v4645_v6 = vpop.f32.mrf.mxu0 }
 0x17e   :  { %7706 = vst [vmem:[#allocation111_spill] sm:$0xff] %v4645_v6  ;;  %v1923_v5 = vadd.f32 %v4621_v15, %v1922_v2  ;;  %v2319_v62 = vadd.f32 %v2318_v40, %v2124_v3 }
 0x17f   :  { %v4652_v59 = vpop.f32.mrf.mxu0 }
 0x180   :  { %7708 = vst [vmem:[#allocation113_spill] sm:$0xff] %v4652_v59  ;;  %v2320_v47 = vadd.f32 %v2319_v62, %v2125_v61  ;;  %v1924_v21 = vadd.f32 %v4633_v52, %v1923_v5  ;;  %v2127_v39 = vmul.f32 %v4652_v59, %v4652_v59  ;;  %v4671_v5 = vpop.f32.mrf.mxu1  ;;  %v2129_v52 = vmul.f32 %v4645_v6, %v4645_v6 }
 0x181   :  { %v4657_v43 = vpop.f32.mrf.mxu0 }
 0x182   :  { %7709 = vst [vmem:[#allocation114_spill] sm:$0xff] %v4657_v43  ;;  %v1925_v42 = vadd.f32 %v1924_v21, %v4652_v59  ;;  %v2321_v28 = vadd.f32 %v2320_v47, %v2126_v34  ;;  %v4683_v47 = vpop.f32.mrf.mxu1 }
 0x183   :  { %v4664_v2 = vpop.f32.mrf.mxu0  ;;  %7715 = vst [vmem:[#allocation120_spill] sm:$0xff] %v4683_v47 }
 0x184   :  { %7711 = vst [vmem:[#allocation116_spill] sm:$0xff] %v4664_v2  ;;  %v2322_v40 = vadd.f32 %v2321_v28, %v2127_v39  ;;  %v1926_v3 = vadd.f32 %v1925_v42, %v4664_v2  ;;  %v2128_v62 = vmul.f32 %v4664_v2, %v4664_v2  ;;  %v2130_v28 = vmul.f32 %v4657_v43, %v4657_v43 }
 0x185   :  { %v4669_v61 = vpop.f32.mrf.mxu0 }
 0x186   :  { %7712 = vst [vmem:[#allocation117_spill] sm:$0xff] %v4669_v61  ;;  %v1927_v21 = vadd.f32 %v4645_v6, %v1926_v3  ;;  %v2323_v15 = vadd.f32 %v2322_v40, %v2128_v62 }
 0x187   :  { %v4676_v59 = vpop.f32.mrf.mxu0 }
 0x188   :  { %7713 = vst [vmem:[#allocation118_spill] sm:$0xff] %v4676_v59  ;;  %v2324_v39 = vadd.f32 %v2323_v15, %v2129_v52  ;;  %v1928_v42 = vadd.f32 %v4657_v43, %v1927_v21  ;;  %v2131_v25 = vmul.f32 %v4676_v59, %v4676_v59  ;;  %v4695_v21 = vpop.f32.mrf.mxu1  ;;  %v2133_v43 = vmul.f32 %v4669_v61, %v4669_v61 }
 0x189   :  { %v4681_v34 = vpop.f32.mrf.mxu0  ;;  %7717 = vst [vmem:[#allocation122_spill] sm:$0xff] %v4695_v21 }
 0x18a   :  { %7714 = vst [vmem:[#allocation119_spill] sm:$0xff] %v4681_v34  ;;  %v1929_v2 = vadd.f32 %v1928_v42, %v4676_v59  ;;  %v2325_v29 = vadd.f32 %v2324_v39, %v2130_v28  ;;  %v4707_v39 = vpop.f32.mrf.mxu1 }
 0x18b   :  { %v4688_v3 = vpop.f32.mrf.mxu0  ;;  %7719 = vst [vmem:[#allocation124_spill] sm:$0xff] %v4707_v39 }
 0x18c   :  { %7716 = vst [vmem:[#allocation121_spill] sm:$0xff] %v4688_v3  ;;  %v2326_v40 = vadd.f32 %v2325_v29, %v2131_v25  ;;  %v1930_v62 = vadd.f32 %v1929_v2, %v4688_v3  ;;  %v2132_v15 = vmul.f32 %v4688_v3, %v4688_v3  ;;  %v2134_v25 = vmul.f32 %v4681_v34, %v4681_v34 }
 0x18d   :  { %v4693_v52 = vpop.f32.mrf.mxu0 }
 0x18e   :  { %v1931_v42 = vadd.f32 %v4669_v61, %v1930_v62  ;;  %v2327_v6 = vadd.f32 %v2326_v40, %v2132_v15 }
 0x18f   :  { %v4700_v59 = vpop.f32.mrf.mxu0 }
 0x190   :  { %7718 = vst [vmem:[#allocation123_spill] sm:$0xff] %v4700_v59  ;;  %v2328_v29 = vadd.f32 %v2327_v6, %v2133_v43  ;;  %v1932_v2 = vadd.f32 %v4681_v34, %v1931_v42  ;;  %v2135_v27 = vmul.f32 %v4700_v59, %v4700_v59  ;;  %v4717_v43 = vpop.f32.mrf.mxu1  ;;  %v2137_v42 = vmul.f32 %v4693_v52, %v4693_v52 }
 0x191   :  { %v4705_v28 = vpop.f32.mrf.mxu0  ;;  %7721 = vst [vmem:[#allocation126_spill] sm:$0xff] %v4717_v43 }
 0x192   :  { %v1933_v3 = vadd.f32 %v1932_v2, %v4700_v59  ;;  %v2329_v21 = vadd.f32 %v2328_v29, %v2134_v25  ;;  %v2138_v59 = vmul.f32 %v4705_v28, %v4705_v28 }
 0x193   :  { %v4712_v62 = vpop.f32.mrf.mxu0 }
 0x194   :  { %7720 = vst [vmem:[#allocation125_spill] sm:$0xff] %v4712_v62  ;;  %v2330_v40 = vadd.f32 %v2329_v21, %v2135_v27  ;;  %v1934_v15 = vadd.f32 %v1933_v3, %v4712_v62  ;;  %v2136_v6 = vmul.f32 %v4712_v62, %v4712_v62  ;;  %v4725_v27 = vpop.f32.mrf.mxu1  ;;  %v2139_v3 = vmul.f32 %v4295_v18, %v4295_v18 }
 0x195   :  { %7722 = vst [vmem:[#allocation127_spill] sm:$0xff] %v4725_v27 }
 0x196   :  { %v1935_v34 = vadd.f32 %v4693_v52, %v1934_v15  ;;  %v2331_v2 = vadd.f32 %v2330_v40, %v2136_v6  ;;  %v2140_v40 = vmul.f32 %v4309_v41, %v4309_v41  ;;  %v4733_v15 = vpop.f32.mrf.mxu1 }
 0x198   :  { %v1936_v25 = vadd.f32 %v4705_v28, %v1935_v34  ;;  %v2332_v29 = vadd.f32 %v2331_v2, %v2137_v42  ;;  %v2141_v34 = vmul.f32 %v4288_v10, %v4288_v10  ;;  %v2142_v2 = vmul.f32 %v4302_v31, %v4302_v31 }
 0x19a   :  { %v1937_v21 = vadd.f32 %v1936_v25, %v4295_v18  ;;  %v2333_v62 = vadd.f32 %v2332_v29, %v2138_v59 }
 0x19c   :  { %v2334_v61 = vadd.f32 %v2333_v62, %v2139_v3  ;;  %v1938_v43 = vadd.f32 %v1937_v21, %v4309_v41  ;;  %v4741_v62 = vpop.f32.mrf.mxu1  ;;  %v2143_v21 = vmul.f32 %v4323_v63, %v4323_v63 }
 0x19d   :  { %7723 = vst [vmem:[#allocation128_spill] sm:$0xff] %v4741_v62 }
 0x19e   :  { %v1939_v6 = vadd.f32 %v4288_v10, %v1938_v43  ;;  %v2335_v42 = vadd.f32 %v2334_v61, %v2140_v40  ;;  %v2144_v61 = vmul.f32 %v4337_v23, %v4337_v23  ;;  %v4749_v43 = vpop.f32.mrf.mxu1  ;;  %v2145_v40 = vmul.f32 %v4316_v51, %v4316_v51 }
 0x1a0   :  { %v1940_v25 = vadd.f32 %v4302_v31, %v1939_v6  ;;  %v2336_v59 = vadd.f32 %v2335_v42, %v2141_v34  ;;  %v2146_v42 = vmul.f32 %v4330_v12, %v4330_v12 }
 0x1a2   :  { %v2337_v29 = vadd.f32 %v2336_v59, %v2142_v2  ;;  %v1941_v3 = vadd.f32 %v1940_v25, %v4323_v63  ;;  %v4757_v59 = vpop.f32.mrf.mxu1 }
 0x1a3   :  { %7724 = vst [vmem:[#allocation129_spill] sm:$0xff] %v4757_v59 }
 0x1a4   :  { %v2338_v41 = vadd.f32 %v2337_v29, %v2143_v21  ;;  %v1942_v18 = vadd.f32 %v1941_v3, %v4337_v23  ;;  %v2147_v21 = vmul.f32 %v4351_v0, %v4351_v0 }
 0x1a6   :  { %v1943_v34 = vadd.f32 %v4316_v51, %v1942_v18  ;;  %v2339_v6 = vadd.f32 %v2338_v41, %v2144_v61  ;;  %v2148_v18 = vmul.f32 %v4365_v36, %v4365_v36  ;;  %v4765_v41 = vpop.f32.mrf.mxu1  ;;  %v2149_v61 = vmul.f32 %v4344_v45, %v4344_v45 }
 0x1a8   :  { %v1944_v2 = vadd.f32 %v4330_v12, %v1943_v34  ;;  %v2340_v25 = vadd.f32 %v2339_v6, %v2145_v40  ;;  %v2150_v6 = vmul.f32 %v4358_v20, %v4358_v20 }
 0x1aa   :  { %v2341_v29 = vadd.f32 %v2340_v25, %v2146_v42  ;;  %v1945_v3 = vadd.f32 %v1944_v2, %v4351_v0  ;;  %v4773_v25 = vpop.f32.mrf.mxu1 }
 0x1ab   :  { %7725 = vst [vmem:[#allocation130_spill] sm:$0xff] %v4773_v25 }
 0x1ac   :  { %v2342_v23 = vadd.f32 %v2341_v29, %v2147_v21  ;;  %v1946_v63 = vadd.f32 %v1945_v3, %v4365_v36  ;;  %v2151_v21 = vmul.f32 %v4379_v49, %v4379_v49 }
 0x1ae   :  { %v1947_v40 = vadd.f32 %v4344_v45, %v1946_v63  ;;  %v2343_v34 = vadd.f32 %v2342_v23, %v2148_v18  ;;  %v2152_v63 = vmul.f32 %v4393_v55, %v4393_v55  ;;  %v4781_v23 = vpop.f32.mrf.mxu1  ;;  %v2153_v18 = vmul.f32 %v4372_v60, %v4372_v60 }
 0x1b0   :  { %v1948_v42 = vadd.f32 %v4358_v20, %v1947_v40  ;;  %v2344_v2 = vadd.f32 %v2343_v34, %v2149_v61  ;;  %v2154_v34 = vmul.f32 %v4386_v22, %v4386_v22 }
 0x1b2   :  { %v2345_v29 = vadd.f32 %v2344_v2, %v2150_v6  ;;  %v1949_v3 = vadd.f32 %v1948_v42, %v4379_v49  ;;  %v4789_v2 = vpop.f32.mrf.mxu1 }
 0x1b3   :  { %7726 = vst [vmem:[#allocation131_spill] sm:$0xff] %v4789_v2 }
 0x1b4   :  { %v2346_v36 = vadd.f32 %v2345_v29, %v2151_v21  ;;  %v1950_v0 = vadd.f32 %v1949_v3, %v4393_v55  ;;  %v2155_v21 = vmul.f32 %v4407_v8, %v4407_v8 }
 0x1b6   :  { %v1951_v61 = vadd.f32 %v4372_v60, %v1950_v0  ;;  %v2347_v40 = vadd.f32 %v2346_v36, %v2152_v63  ;;  %v2156_v0 = vmul.f32 %v4421_v4, %v4421_v4  ;;  %v4797_v36 = vpop.f32.mrf.mxu1  ;;  %v2157_v63 = vmul.f32 %v4400_v58, %v4400_v58 }
 0x1b8   :  { %v1952_v6 = vadd.f32 %v4386_v22, %v1951_v61  ;;  %v2348_v42 = vadd.f32 %v2347_v40, %v2153_v18  ;;  %v2158_v40 = vmul.f32 %v4414_v35, %v4414_v35 }
 0x1ba   :  { %v2349_v29 = vadd.f32 %v2348_v42, %v2154_v34  ;;  %v1953_v3 = vadd.f32 %v1952_v6, %v4407_v8  ;;  %v4805_v42 = vpop.f32.mrf.mxu1 }
 0x1bb   :  { %7727 = vst [vmem:[#allocation132_spill] sm:$0xff] %v4805_v42 }
 0x1bc   :  { %v2350_v55 = vadd.f32 %v2349_v29, %v2155_v21  ;;  %v1954_v49 = vadd.f32 %v1953_v3, %v4421_v4  ;;  %v2159_v21 = vmul.f32 %v4435_v46, %v4435_v46 }
 0x1be   :  { %v1955_v18 = vadd.f32 %v4400_v58, %v1954_v49  ;;  %v2351_v61 = vadd.f32 %v2350_v55, %v2156_v0  ;;  %v2160_v49 = vmul.f32 %v4449_v17, %v4449_v17  ;;  %v4813_v55 = vpop.f32.mrf.mxu1  ;;  %v2161_v0 = vmul.f32 %v4428_v14, %v4428_v14 }
 0x1c0   :  { %v1956_v34 = vadd.f32 %v4414_v35, %v1955_v18  ;;  %v2352_v6 = vadd.f32 %v2351_v61, %v2157_v63  ;;  %v2162_v61 = vmul.f32 %v4442_v54, %v4442_v54 }
 0x1c2   :  { %v2353_v29 = vadd.f32 %v2352_v6, %v2158_v40  ;;  %v1957_v3 = vadd.f32 %v1956_v34, %v4435_v46  ;;  %v4821_v6 = vpop.f32.mrf.mxu1 }
 0x1c3   :  { %7728 = vst [vmem:[#allocation133_spill] sm:$0xff] %v4821_v6 }
 0x1c4   :  { %v2354_v4 = vadd.f32 %v2353_v29, %v2159_v21  ;;  %v1958_v8 = vadd.f32 %v1957_v3, %v4449_v17  ;;  %v2163_v21 = vmul.f32 %v4463_v16, %v4463_v16 }
 0x1c6   :  { %v1959_v63 = vadd.f32 %v4428_v14, %v1958_v8  ;;  %v2355_v18 = vadd.f32 %v2354_v4, %v2160_v49  ;;  %v2164_v8 = vmul.f32 %v4477_v53, %v4477_v53  ;;  %v4829_v4 = vpop.f32.mrf.mxu1  ;;  %v2165_v49 = vmul.f32 %v4456_v32, %v4456_v32 }
 0x1c8   :  { %v1960_v40 = vadd.f32 %v4442_v54, %v1959_v63  ;;  %v2356_v34 = vadd.f32 %v2355_v18, %v2161_v0  ;;  %v2166_v18 = vmul.f32 %v4470_v13, %v4470_v13 }
 0x1ca   :  { %v2357_v29 = vadd.f32 %v2356_v34, %v2162_v61  ;;  %v1961_v3 = vadd.f32 %v1960_v40, %v4463_v16  ;;  %v4837_v34 = vpop.f32.mrf.mxu1 }
 0x1cb   :  { %7729 = vst [vmem:[#allocation134_spill] sm:$0xff] %v4837_v34 }
 0x1cc   :  { %v2358_v17 = vadd.f32 %v2357_v29, %v2163_v21  ;;  %v1962_v46 = vadd.f32 %v1961_v3, %v4477_v53  ;;  %v2167_v21 = vmul.f32 %v4491_v56, %v4491_v56 }
 0x1ce   :  { %v1963_v0 = vadd.f32 %v4456_v32, %v1962_v46  ;;  %v2359_v63 = vadd.f32 %v2358_v17, %v2164_v8  ;;  %v2168_v46 = vmul.f32 %v4515_v50, %v4515_v50  ;;  %v4845_v17 = vpop.f32.mrf.mxu1  ;;  %v2169_v8 = vmul.f32 %v4484_v48, %v4484_v48 }
 0x1d0   :  { %v1964_v61 = vadd.f32 %v4470_v13, %v1963_v0  ;;  %v2360_v40 = vadd.f32 %v2359_v63, %v2165_v49  ;;  %v2170_v63 = vmul.f32 %v4503_v26, %v4503_v26 }
 0x1d2   :  { %v2361_v29 = vadd.f32 %v2360_v40, %v2166_v18  ;;  %v1965_v3 = vadd.f32 %v1964_v61, %v4491_v56  ;;  %v4853_v40 = vpop.f32.mrf.mxu1 }
 0x1d3   :  { %7730 = vst [vmem:[#allocation135_spill] sm:$0xff] %v4853_v40 }
 0x1d4   :  { %v2362_v53 = vadd.f32 %v2361_v29, %v2167_v21  ;;  %v1966_v16 = vadd.f32 %v1965_v3, %v4515_v50  ;;  %v2171_v21 = vmul.f32 %v4539_v30, %v4539_v30 }
 0x1d6   :  { %v1967_v49 = vadd.f32 %v4484_v48, %v1966_v16  ;;  %v2363_v0 = vadd.f32 %v2362_v53, %v2168_v46  ;;  %v2172_v16 = vmul.f32 %v4563_v33, %v4563_v33  ;;  %v4861_v53 = vpop.f32.mrf.mxu1  ;;  %v2173_v46 = vmul.f32 %v4527_v9, %v4527_v9 }
 0x1d8   :  { %v1968_v18 = vadd.f32 %v4503_v26, %v1967_v49  ;;  %v2364_v61 = vadd.f32 %v2363_v0, %v2169_v8  ;;  %v2174_v0 = vmul.f32 %v4551_v38, %v4551_v38 }
 0x1da   :  { %v2365_v29 = vadd.f32 %v2364_v61, %v2170_v63  ;;  %v1969_v3 = vadd.f32 %v1968_v18, %v4539_v30  ;;  %v4869_v61 = vpop.f32.mrf.mxu1 }
 0x1db   :  { %7731 = vst [vmem:[#allocation136_spill] sm:$0xff] %v4869_v61 }
 0x1dc   :  { %v2366_v50 = vadd.f32 %v2365_v29, %v2171_v21  ;;  %v1970_v56 = vadd.f32 %v1969_v3, %v4563_v33  ;;  %v2175_v3 = vmul.f32 %v4587_v19, %v4587_v19 }
 0x1de   :  { %v1971_v8 = vadd.f32 %v4527_v9, %v1970_v56  ;;  %v2367_v49 = vadd.f32 %v2366_v50, %v2172_v16  ;;  %v2176_v56 = vmul.f32 %v4611_v11, %v4611_v11  ;;  %v4877_v50 = vpop.f32.mrf.mxu1  ;;  %v2177_v16 = vmul.f32 %v4575_v7, %v4575_v7 }
 0x1e0   :  { %v2368_v63 = vadd.f32 %v2367_v49, %v2173_v46  ;;  %v1972_v18 = vadd.f32 %v4551_v38, %v1971_v8  ;;  %v2178_v49 = vmul.f32 %v4599_v24, %v4599_v24 }
 0x1e2   :  { %v1973_v29 = vadd.f32 %v1972_v18, %v4587_v19  ;;  %v2369_v21 = vadd.f32 %v2368_v63, %v2174_v0  ;;  %v4885_v63 = vpop.f32.mrf.mxu1 }
 0x1e3   :  { %7732 = vst [vmem:[#allocation137_spill] sm:$0xff] %v4885_v63 }
 0x1e4   :  { %v2370_v33 = vadd.f32 %v2369_v21, %v2175_v3  ;;  %v1974_v30 = vadd.f32 %v1973_v29, %v4611_v11  ;;  %v2179_v3 = vmul.f32 %v4635_v1, %v4635_v1 }
 0x1e6   :  { %v1975_v46 = vadd.f32 %v4575_v7, %v1974_v30  ;;  %v2371_v8 = vadd.f32 %v2370_v33, %v2176_v56  ;;  %v2180_v30 = vmul.f32 %v4659_v57, %v4659_v57  ;;  %v4893_v33 = vpop.f32.mrf.mxu1  ;;  %v2181_v56 = vmul.f32 %v4623_v37, %v4623_v37 }
 0x1e8   :  { %v2372_v18 = vadd.f32 %v2371_v8, %v2177_v16  ;;  %v1976_v0 = vadd.f32 %v4599_v24, %v1975_v46  ;;  %v2182_v8 = vmul.f32 %v4647_v44, %v4647_v44 }
 0x1ea   :  { %v1977_v29 = vadd.f32 %v1976_v0, %v4635_v1  ;;  %v2373_v21 = vadd.f32 %v2372_v18, %v2178_v49  ;;  %v4901_v18 = vpop.f32.mrf.mxu1 }
 0x1eb   :  { %7733 = vst [vmem:[#allocation138_spill] sm:$0xff] %v4901_v18 }
 0x1ec   :  { %v2374_v11 = vadd.f32 %v2373_v21, %v2179_v3  ;;  %v1978_v19 = vadd.f32 %v1977_v29, %v4659_v57  ;;  %v2183_v3 = vmul.f32 %v4683_v47, %v4683_v47 }
 0x1ee   :  { %v1979_v16 = vadd.f32 %v4623_v37, %v1978_v19  ;;  %v2375_v46 = vadd.f32 %v2374_v11, %v2180_v30  ;;  %v2184_v19 = vmul.f32 %v4707_v39, %v4707_v39  ;;  %v4909_v11 = vpop.f32.mrf.mxu1  ;;  %v2185_v30 = vmul.f32 %v4671_v5, %v4671_v5 }
 0x1f0   :  { %v2376_v0 = vadd.f32 %v2375_v46, %v2181_v56  ;;  %v1980_v49 = vadd.f32 %v4647_v44, %v1979_v16  ;;  %v7734_v46 = vld [vmem:[#allocation122_spill] sm:$0xff] }
 0x1f2   :  { %v1981_v29 = vadd.f32 %v1980_v49, %v4683_v47  ;;  %v2377_v21 = vadd.f32 %v2376_v0, %v2182_v8  ;;  %v2186_v49 = vmul.f32 %v7734_v46, %v7734_v46  ;;  %v4917_v0 = vpop.f32.mrf.mxu1 }
 0x1f3   :  { %7735 = vst [vmem:[#allocation139_spill] sm:$0xff] %v4917_v0 }
 0x1f4   :  { %v2378_v57 = vadd.f32 %v2377_v21, %v2183_v3  ;;  %v1982_v1 = vadd.f32 %v1981_v29, %v4707_v39  ;;  %v2187_v3 = vmul.f32 %v4725_v27, %v4725_v27 }
 0x1f6   :  { %v1983_v56 = vadd.f32 %v4671_v5, %v1982_v1  ;;  %v2379_v16 = vadd.f32 %v2378_v57, %v2184_v19  ;;  %v2188_v1 = vmul.f32 %v4741_v62, %v4741_v62  ;;  %v4925_v57 = vpop.f32.mrf.mxu1  ;;  %v7736_v19 = vld [vmem:[#allocation126_spill] sm:$0xff] }
 0x1f8   :  { %v2380_v44 = vadd.f32 %v2379_v16, %v2185_v30  ;;  %v1984_v8 = vadd.f32 %v7734_v46, %v1983_v56  ;;  %v2189_v30 = vmul.f32 %v7736_v19, %v7736_v19 }
 0x1fa   :  { %v1985_v29 = vadd.f32 %v1984_v8, %v4725_v27  ;;  %v2381_v21 = vadd.f32 %v2380_v44, %v2186_v49  ;;  %v2190_v8 = vmul.f32 %v4733_v15, %v4733_v15  ;;  %v4933_v49 = vpop.f32.mrf.mxu1 }
 0x1fb   :  { %7737 = vst [vmem:[#allocation126_spill] sm:$0xff] %v4933_v49 }
 0x1fc   :  { %v2382_v39 = vadd.f32 %v2381_v21, %v2187_v3  ;;  %v1986_v47 = vadd.f32 %v1985_v29, %v4741_v62  ;;  %v2191_v3 = vmul.f32 %v4757_v59, %v4757_v59 }
 0x1fe   :  { %v1987_v56 = vadd.f32 %v7736_v19, %v1986_v47  ;;  %v2383_v16 = vadd.f32 %v2382_v39, %v2188_v1  ;;  %v2192_v47 = vmul.f32 %v4773_v25, %v4773_v25  ;;  %v4941_v39 = vpop.f32.mrf.mxu1  ;;  %v2193_v1 = vmul.f32 %v4749_v43, %v4749_v43 }
 0x200   :  { %v2384_v46 = vadd.f32 %v2383_v16, %v2189_v30  ;;  %v1988_v44 = vadd.f32 %v4733_v15, %v1987_v56  ;;  %v2194_v16 = vmul.f32 %v4765_v41, %v4765_v41 }
 0x202   :  { %v1989_v29 = vadd.f32 %v1988_v44, %v4757_v59  ;;  %v2385_v21 = vadd.f32 %v2384_v46, %v2190_v8  ;;  %v4949_v8 = vpop.f32.mrf.mxu1 }
 0x203   :  { %7738 = vst [vmem:[#allocation140_spill] sm:$0xff] %v4949_v8 }
 0x204   :  { %v2386_v62 = vadd.f32 %v2385_v21, %v2191_v3  ;;  %v1990_v27 = vadd.f32 %v1989_v29, %v4773_v25  ;;  %v2195_v3 = vmul.f32 %v4789_v2, %v4789_v2 }
 0x206   :  { %v1991_v30 = vadd.f32 %v4749_v43, %v1990_v27  ;;  %v2387_v56 = vadd.f32 %v2386_v62, %v2192_v47  ;;  %v2196_v27 = vmul.f32 %v4805_v42, %v4805_v42  ;;  %v4957_v62 = vpop.f32.mrf.mxu1  ;;  %v2197_v47 = vmul.f32 %v4781_v23, %v4781_v23 }
 0x207   :  { %7739 = vst [vmem:[#allocation141_spill] sm:$0xff] %v4957_v62 }
 0x208   :  { %v2388_v44 = vadd.f32 %v2387_v56, %v2193_v1  ;;  %v1992_v46 = vadd.f32 %v4765_v41, %v1991_v30  ;;  %v2198_v56 = vmul.f32 %v4797_v36, %v4797_v36 }
 0x20a   :  { %v1993_v29 = vadd.f32 %v1992_v46, %v4789_v2  ;;  %v2389_v21 = vadd.f32 %v2388_v44, %v2194_v16  ;;  %v4965_v44 = vpop.f32.mrf.mxu1 }
 0x20b   :  { %7740 = vst [vmem:[#allocation142_spill] sm:$0xff] %v4965_v44 }
 0x20c   :  { %v2390_v25 = vadd.f32 %v2389_v21, %v2195_v3  ;;  %v1994_v59 = vadd.f32 %v1993_v29, %v4805_v42  ;;  %v2199_v3 = vmul.f32 %v4821_v6, %v4821_v6 }
 0x20e   :  { %v1995_v1 = vadd.f32 %v4781_v23, %v1994_v59  ;;  %v2391_v30 = vadd.f32 %v2390_v25, %v2196_v27  ;;  %v2200_v59 = vmul.f32 %v4837_v34, %v4837_v34  ;;  %v4973_v25 = vpop.f32.mrf.mxu1  ;;  %v2201_v27 = vmul.f32 %v4813_v55, %v4813_v55 }
 0x20f   :  { %7741 = vst [vmem:[#allocation143_spill] sm:$0xff] %v4973_v25 }
 0x210   :  { %v2392_v46 = vadd.f32 %v2391_v30, %v2197_v47  ;;  %v1996_v16 = vadd.f32 %v4797_v36, %v1995_v1  ;;  %v2202_v30 = vmul.f32 %v4829_v4, %v4829_v4 }
 0x212   :  { %v1997_v29 = vadd.f32 %v1996_v16, %v4821_v6  ;;  %v2393_v21 = vadd.f32 %v2392_v46, %v2198_v56  ;;  %v4981_v46 = vpop.f32.mrf.mxu1 }
 0x213   :  { %7742 = vst [vmem:[#allocation144_spill] sm:$0xff] %v4981_v46 }
 0x214   :  { %v2394_v42 = vadd.f32 %v2393_v21, %v2199_v3  ;;  %v1998_v2 = vadd.f32 %v1997_v29, %v4837_v34  ;;  %v2203_v3 = vmul.f32 %v4853_v40, %v4853_v40 }
 0x216   :  { %v1999_v47 = vadd.f32 %v4813_v55, %v1998_v2  ;;  %v2395_v1 = vadd.f32 %v2394_v42, %v2200_v59  ;;  %v2204_v2 = vmul.f32 %v4869_v61, %v4869_v61  ;;  %v4989_v42 = vpop.f32.mrf.mxu1  ;;  %v2205_v59 = vmul.f32 %v4845_v17, %v4845_v17 }
 0x217   :  { %7743 = vst [vmem:[#allocation145_spill] sm:$0xff] %v4989_v42 }
 0x218   :  { %v2396_v16 = vadd.f32 %v2395_v1, %v2201_v27  ;;  %v2000_v56 = vadd.f32 %v4829_v4, %v1999_v47  ;;  %v2206_v1 = vmul.f32 %v4861_v53, %v4861_v53 }
 0x21a   :  { %v2001_v29 = vadd.f32 %v2000_v56, %v4853_v40  ;;  %v2397_v21 = vadd.f32 %v2396_v16, %v2202_v30  ;;  %v4997_v16 = vpop.f32.mrf.mxu1 }
 0x21b   :  { %7744 = vst [vmem:[#allocation146_spill] sm:$0xff] %v4997_v16 }
 0x21c   :  { %v2398_v34 = vadd.f32 %v2397_v21, %v2203_v3  ;;  %v2002_v6 = vadd.f32 %v2001_v29, %v4869_v61  ;;  %v2207_v3 = vmul.f32 %v4885_v63, %v4885_v63 }
 0x21e   :  { %v2003_v27 = vadd.f32 %v4845_v17, %v2002_v6  ;;  %v2399_v47 = vadd.f32 %v2398_v34, %v2204_v2  ;;  %v2208_v6 = vmul.f32 %v4901_v18, %v4901_v18  ;;  %v5005_v34 = vpop.f32.mrf.mxu1  ;;  %v2209_v2 = vmul.f32 %v4877_v50, %v4877_v50 }
 0x21f   :  { %7745 = vst [vmem:[#allocation147_spill] sm:$0xff] %v5005_v34 }
 0x220   :  { %v2400_v56 = vadd.f32 %v2399_v47, %v2205_v59  ;;  %v2004_v30 = vadd.f32 %v4861_v53, %v2003_v27  ;;  %v2210_v47 = vmul.f32 %v4893_v33, %v4893_v33 }
 0x222   :  { %v2005_v29 = vadd.f32 %v2004_v30, %v4885_v63  ;;  %v2401_v21 = vadd.f32 %v2400_v56, %v2206_v1  ;;  %v5013_v56 = vpop.f32.mrf.mxu1 }
 0x223   :  { %7746 = vst [vmem:[#allocation148_spill] sm:$0xff] %v5013_v56 }
 0x224   :  { %v2402_v61 = vadd.f32 %v2401_v21, %v2207_v3  ;;  %v2006_v40 = vadd.f32 %v2005_v29, %v4901_v18  ;;  %v2211_v3 = vmul.f32 %v4917_v0, %v4917_v0 }
 0x226   :  { %v2007_v59 = vadd.f32 %v4877_v50, %v2006_v40  ;;  %v2403_v27 = vadd.f32 %v2402_v61, %v2208_v6  ;;  %v2212_v40 = vmul.f32 %v4933_v49, %v4933_v49  ;;  %v5021_v61 = vpop.f32.mrf.mxu1  ;;  %v2213_v6 = vmul.f32 %v4909_v11, %v4909_v11 }
 0x227   :  { %7747 = vst [vmem:[#allocation149_spill] sm:$0xff] %v5021_v61 }
 0x228   :  { %v2404_v30 = vadd.f32 %v2403_v27, %v2209_v2  ;;  %v2008_v1 = vadd.f32 %v4893_v33, %v2007_v59  ;;  %v2214_v27 = vmul.f32 %v4925_v57, %v4925_v57 }
 0x22a   :  { %v2009_v29 = vadd.f32 %v2008_v1, %v4917_v0  ;;  %v2405_v21 = vadd.f32 %v2404_v30, %v2210_v47  ;;  %v5029_v30 = vpop.f32.mrf.mxu1 }
 0x22b   :  { %7748 = vst [vmem:[#allocation150_spill] sm:$0xff] %v5029_v30 }
 0x22c   :  { %v2406_v18 = vadd.f32 %v2405_v21, %v2211_v3  ;;  %v2010_v63 = vadd.f32 %v2009_v29, %v4933_v49  ;;  %v2215_v3 = vmul.f32 %v4949_v8, %v4949_v8 }
 0x22e   :  { %v2011_v2 = vadd.f32 %v4909_v11, %v2010_v63  ;;  %v2407_v59 = vadd.f32 %v2406_v18, %v2212_v40  ;;  %v2216_v63 = vmul.f32 %v4965_v44, %v4965_v44  ;;  %v5037_v18 = vpop.f32.mrf.mxu1  ;;  %v2217_v40 = vmul.f32 %v4941_v39, %v4941_v39 }
 0x22f   :  { %7749 = vst [vmem:[#allocation151_spill] sm:$0xff] %v5037_v18 }
 0x230   :  { %v2408_v1 = vadd.f32 %v2407_v59, %v2213_v6  ;;  %v2012_v47 = vadd.f32 %v4925_v57, %v2011_v2  ;;  %v2218_v59 = vmul.f32 %v4957_v62, %v4957_v62 }
 0x232   :  { %v2013_v29 = vadd.f32 %v2012_v47, %v4949_v8  ;;  %v2409_v21 = vadd.f32 %v2408_v1, %v2214_v27  ;;  %v5045_v1 = vpop.f32.mrf.mxu1 }
 0x233   :  { %7750 = vst [vmem:[#allocation152_spill] sm:$0xff] %v5045_v1 }
 0x234   :  { %v2410_v49 = vadd.f32 %v2409_v21, %v2215_v3  ;;  %v2014_v0 = vadd.f32 %v2013_v29, %v4965_v44  ;;  %v2219_v3 = vmul.f32 %v4981_v46, %v4981_v46 }
 0x236   :  { %v2015_v6 = vadd.f32 %v4941_v39, %v2014_v0  ;;  %v2411_v2 = vadd.f32 %v2410_v49, %v2216_v63  ;;  %v2220_v0 = vmul.f32 %v4997_v16, %v4997_v16  ;;  %v5053_v49 = vpop.f32.mrf.mxu1  ;;  %v2221_v63 = vmul.f32 %v4973_v25, %v4973_v25 }
 0x237   :  { %7751 = vst [vmem:[#allocation153_spill] sm:$0xff] %v5053_v49 }
 0x238   :  { %v2412_v47 = vadd.f32 %v2411_v2, %v2217_v40  ;;  %v2016_v27 = vadd.f32 %v4957_v62, %v2015_v6  ;;  %v2222_v2 = vmul.f32 %v4989_v42, %v4989_v42 }
 0x23a   :  { %v2017_v29 = vadd.f32 %v2016_v27, %v4981_v46  ;;  %v2413_v21 = vadd.f32 %v2412_v47, %v2218_v59  ;;  %v5061_v47 = vpop.f32.mrf.mxu1 }
 0x23b   :  { %7752 = vst [vmem:[#allocation154_spill] sm:$0xff] %v5061_v47 }
 0x23c   :  { %v2414_v44 = vadd.f32 %v2413_v21, %v2219_v3  ;;  %v2018_v8 = vadd.f32 %v2017_v29, %v4997_v16  ;;  %v2223_v3 = vmul.f32 %v5013_v56, %v5013_v56 }
 0x23e   :  { %v2019_v40 = vadd.f32 %v4973_v25, %v2018_v8  ;;  %v2415_v6 = vadd.f32 %v2414_v44, %v2220_v0  ;;  %v2224_v8 = vmul.f32 %v5029_v30, %v5029_v30  ;;  %v5069_v44 = vpop.f32.mrf.mxu1  ;;  %v2225_v0 = vmul.f32 %v5005_v34, %v5005_v34 }
 0x23f   :  { %7753 = vst [vmem:[#allocation155_spill] sm:$0xff] %v5069_v44 }
 0x240   :  { %v2416_v27 = vadd.f32 %v2415_v6, %v2221_v63  ;;  %v2020_v59 = vadd.f32 %v4989_v42, %v2019_v40  ;;  %v2226_v6 = vmul.f32 %v5021_v61, %v5021_v61 }
 0x242   :  { %v2021_v29 = vadd.f32 %v2020_v59, %v5013_v56  ;;  %v2417_v21 = vadd.f32 %v2416_v27, %v2222_v2  ;;  %v5077_v27 = vpop.f32.mrf.mxu1 }
 0x243   :  { %7754 = vst [vmem:[#allocation156_spill] sm:$0xff] %v5077_v27 }
 0x244   :  { %v2418_v16 = vadd.f32 %v2417_v21, %v2223_v3  ;;  %v2022_v46 = vadd.f32 %v2021_v29, %v5029_v30  ;;  %v2227_v3 = vmul.f32 %v5045_v1, %v5045_v1 }
 0x246   :  { %v2023_v63 = vadd.f32 %v5005_v34, %v2022_v46  ;;  %v2419_v40 = vadd.f32 %v2418_v16, %v2224_v8  ;;  %v2228_v46 = vmul.f32 %v5061_v47, %v5061_v47  ;;  %v5085_v16 = vpop.f32.mrf.mxu1  ;;  %v2229_v8 = vmul.f32 %v5037_v18, %v5037_v18 }
 0x248   :  { %v2420_v59 = vadd.f32 %v2419_v40, %v2225_v0  ;;  %v2024_v2 = vadd.f32 %v5021_v61, %v2023_v63  ;;  %v2230_v40 = vmul.f32 %v5053_v49, %v5053_v49 }
 0x24a   :  { %v2025_v29 = vadd.f32 %v2024_v2, %v5045_v1  ;;  %v2421_v21 = vadd.f32 %v2420_v59, %v2226_v6  ;;  %v5093_v59 = vpop.f32.mrf.mxu1 }
 0x24b   :  { %7755 = vst [vmem:[#allocation157_spill] sm:$0xff] %v5093_v59 }
 0x24c   :  { %v2422_v30 = vadd.f32 %v2421_v21, %v2227_v3  ;;  %v2026_v56 = vadd.f32 %v2025_v29, %v5061_v47  ;;  %v2231_v3 = vmul.f32 %v5077_v27, %v5077_v27 }
 0x24e   :  { %v2027_v0 = vadd.f32 %v5037_v18, %v2026_v56  ;;  %v2423_v63 = vadd.f32 %v2422_v30, %v2228_v46  ;;  %v2232_v56 = vmul.f32 %v5093_v59, %v5093_v59  ;;  %v2233_v30 = vmul.f32 %v5069_v44, %v5069_v44 }
 0x250   :  { %v2424_v2 = vadd.f32 %v2423_v63, %v2229_v8  ;;  %v2028_v6 = vadd.f32 %v5053_v49, %v2027_v0  ;;  %v2234_v0 = vmul.f32 %v5085_v16, %v5085_v16 }
 0x252   :  { %v2029_v29 = vadd.f32 %v2028_v6, %v5077_v27  ;;  %v2425_v21 = vadd.f32 %v2424_v2, %v2230_v40 }
 0x254   :  { %v2426_v47 = vadd.f32 %v2425_v21, %v2231_v3  ;;  %v2030_v1 = vadd.f32 %v2029_v29, %v5093_v59 }
 0x256   :  { %v2031_v46 = vadd.f32 %v5069_v44, %v2030_v1  ;;  %v2427_v8 = vadd.f32 %v2426_v47, %v2232_v56 }
 0x258   :  { %v2032_v63 = vadd.f32 %v5085_v16, %v2031_v46  ;;  %v2428_v6 = vadd.f32 %v2427_v8, %v2233_v30  ;;  %v2447_v30 = vlaneseq }
 0x25a   :  { %v2033_v27 = vrot.slane %v2032_v63, 4  ;;  %v2429_v40 = vadd.f32 %v2428_v6, %v2234_v0  ;;  %v5107_v46 = vshrl.u32 %v2447_v30, 7  ;;  %v7763_v30 = vld [vmem:[#allocation8_spill] sm:$0xff] }
 0x25c   :  { %v2034_v2 = vadd.f32 %v2033_v27, %v2032_v63  ;;  %v2430_v3 = vrot.slane %v2429_v40, 4  ;;  %v2442_v27 = vld [vmem:[%s7337_s2] sm:$0x1]  ;;  %v7498_v8 = vsub.s32 0, %v5107_v46 }
 0x25d   :  { %v7758_v63 = vld [vmem:[#allocation2_spill] sm:$0xff] }
 0x25e   :  { %v2035_v29 = vrot.slane %v2034_v2, 2  ;;  %v2431_v21 = vadd.f32 %v2430_v3, %v2429_v40  ;;  %v7759_v40 = vld [vmem:[#allocation4_spill] sm:$0xff]  ;;  %v7760_v3 = vld [vmem:[#allocation7_spill] sm:$0xff] }
 0x260   :  { %v2036_v49 = vadd.f32 %v2035_v29, %v2034_v2  ;;  %v2432_v59 = vrot.slane %v2431_v21, 2 }
 0x262   :  { %v2037_v18 = vrot.slane %v2036_v49, 1  ;;  %v2433_v61 = vadd.f32 %v2432_v59, %v2431_v21  ;;  %v7761_v21 = vld [vmem:[#allocation9_spill] sm:$0xff] }
 0x264   :  { %v2038_v34 = vadd.f32 %v2037_v18, %v2036_v49  ;;  %v2434_v42 = vrot.slane %v2433_v61, 1  ;;  %v7757_v49 = vld [vmem:[#allocation5_spill] sm:$0xff] }
 0x266   :  { %v2435_v1 = vadd.f32 %v2434_v42, %v2433_v61  ;;  %v2436_v47 = vmul.f32 0.0006377551, %v2038_v34  ;;  %v5116_v42 = vld [vmem:[%s7338_s3] sm:$0x1]  ;;  %v7756_v61 = vld [vmem:[#allocation3_spill] sm:$0xff] }
 0x268   :  { %v2437_v56 = vmul.f32 0.0006377551, %v2435_v1  ;;  %v2438_v44 = vmul.f32 %v2436_v47, %v2436_v47 }
 0x26a   :  { %v2439_v25 = vsub.f32 %v2437_v56, %v2438_v44 }
 0x26c   :  { %v2440_v62 = vadd.f32 1e-05, %v2439_v25  ;;  %v7773_v25 = vld [vmem:[#allocation17_spill] sm:$0xff] }
 0x26e   :  { %3701 = vrsqrt.f32 %v2440_v62 }
 0x27b   :  { %v3702_v0 = vpop.eup %3701 }
 0x27c   :  { %v2443_v59 = vmul.f32 %v3702_v0, %v2442_v27  ;;  %v7764_v0 = vld [vmem:[#allocation11_spill] sm:$0xff] }
 0x27e   :  { %v5118_v34 = vmul.f32 %v2443_v59, %v2436_v47  ;;  %v5122_v62 = vrot.slane %v2443_v59, %v7498_v8  ;;  %v7762_v47 = vld [vmem:[#allocation6_spill] sm:$0xff] }
 0x27f   :  { %v7775_v8 = vld [vmem:[#allocation14_spill] sm:$0xff] }
 0x280   :  { %v5128_v18 = vmul.f32 %v5122_v62, %v7756_v61  ;;  %v5132_v44 = vmul.f32 %v5122_v62, %v7757_v49  ;;  %v5136_v6 = vmul.f32 %v7758_v63, %v5122_v62  ;;  %v5140_v2 = vmul.f32 %v7759_v40, %v5122_v62  ;;  %v7765_v61 = vld [vmem:[#allocation13_spill] sm:$0xff]  ;;  %v7767_v63 = vld [vmem:[#allocation10_spill] sm:$0xff] }
 0x281   :  { %v5144_v29 = vmul.f32 %v5122_v62, %v7760_v3  ;;  %v5148_v1 = vmul.f32 %v5122_v62, %v7761_v21  ;;  %v5152_v56 = vmul.f32 %v7762_v47, %v5122_v62  ;;  %v5156_v27 = vmul.f32 %v7763_v30, %v5122_v62  ;;  %v7769_v3 = vld [vmem:[#allocation12_spill] sm:$0xff]  ;;  %v7771_v47 = vld [vmem:[#allocation15_spill] sm:$0xff] }
 0x282   :  { %v5160_v59 = vmul.f32 %v5122_v62, %v7764_v0  ;;  %v5164_v49 = vmul.f32 %v5122_v62, %v7765_v61  ;;  %v5168_v40 = vmul.f32 %v7767_v63, %v5122_v62  ;;  %v5172_v21 = vmul.f32 %v7769_v3, %v5122_v62 }
 0x283   :  { %v5176_v30 = vmul.f32 %v5122_v62, %v7771_v47  ;;  %v5180_v0 = vmul.f32 %v5122_v62, %v7773_v25  ;;  %v5184_v61 = vmul.f32 %v7775_v8, %v5122_v62 }
 0x284   :  { %7766 = vst [vmem:[#allocation3_spill] sm:$0xff] %v5164_v49  ;;  %7768 = vst [vmem:[#allocation5_spill] sm:$0xff] %v5168_v40  ;;  %v7777_v49 = vld [vmem:[#allocation16_spill] sm:$0xff]  ;;  %v7779_v40 = vld [vmem:[#allocation19_spill] sm:$0xff] }
 0x285   :  { %7770 = vst [vmem:[#allocation2_spill] sm:$0xff] %v5172_v21  ;;  %7772 = vst [vmem:[#allocation4_spill] sm:$0xff] %v5176_v30  ;;  %v5188_v63 = vmul.f32 %v7777_v49, %v5122_v62  ;;  %v5192_v3 = vmul.f32 %v5122_v62, %v7779_v40  ;;  %v7781_v21 = vld [vmem:[#allocation21_spill] sm:$0xff]  ;;  %v7783_v30 = vld [vmem:[#allocation18_spill] sm:$0xff] }
 0x286   :  { %7774 = vst [vmem:[#allocation7_spill] sm:$0xff] %v5180_v0  ;;  %7776 = vst [vmem:[#allocation9_spill] sm:$0xff] %v5184_v61  ;;  %v5196_v47 = vmul.f32 %v5122_v62, %v7781_v21  ;;  %v5200_v25 = vmul.f32 %v7783_v30, %v5122_v62  ;;  %v7785_v0 = vld [vmem:[#allocation20_spill] sm:$0xff]  ;;  %v7787_v61 = vld [vmem:[#allocation23_spill] sm:$0xff] }
 0x287   :  { %7778 = vst [vmem:[#allocation6_spill] sm:$0xff] %v5188_v63  ;;  %7780 = vst [vmem:[#allocation8_spill] sm:$0xff] %v5192_v3  ;;  %v5204_v8 = vmul.f32 %v7785_v0, %v5122_v62  ;;  %v5208_v49 = vmul.f32 %v5122_v62, %v7787_v61  ;;  %v7789_v63 = vld [vmem:[#allocation25_spill] sm:$0xff]  ;;  %v7791_v3 = vld [vmem:[#allocation22_spill] sm:$0xff] }
 0x288   :  { %7782 = vst [vmem:[#allocation11_spill] sm:$0xff] %v5196_v47  ;;  %7784 = vst [vmem:[#allocation13_spill] sm:$0xff] %v5200_v25  ;;  %v5212_v40 = vmul.f32 %v5122_v62, %v7789_v63  ;;  %v5216_v21 = vmul.f32 %v7791_v3, %v5122_v62  ;;  %v7793_v47 = vld [vmem:[#allocation24_spill] sm:$0xff]  ;;  %v7795_v25 = vld [vmem:[#allocation27_spill] sm:$0xff] }
 0x289   :  { %7786 = vst [vmem:[#allocation10_spill] sm:$0xff] %v5204_v8  ;;  %7788 = vst [vmem:[#allocation12_spill] sm:$0xff] %v5208_v49  ;;  %v5220_v30 = vmul.f32 %v7793_v47, %v5122_v62  ;;  %v5224_v0 = vmul.f32 %v5122_v62, %v7795_v25  ;;  %v7797_v8 = vld [vmem:[#allocation29_spill] sm:$0xff]  ;;  %v7799_v49 = vld [vmem:[#allocation26_spill] sm:$0xff] }
 0x28a   :  { %7790 = vst [vmem:[#allocation15_spill] sm:$0xff] %v5212_v40  ;;  %7792 = vst [vmem:[#allocation17_spill] sm:$0xff] %v5216_v21  ;;  %v5228_v61 = vmul.f32 %v5122_v62, %v7797_v8  ;;  %v5232_v63 = vmul.f32 %v7799_v49, %v5122_v62  ;;  %v7801_v40 = vld [vmem:[#allocation28_spill] sm:$0xff]  ;;  %v7803_v21 = vld [vmem:[#allocation31_spill] sm:$0xff] }
 0x28b   :  { %7794 = vst [vmem:[#allocation14_spill] sm:$0xff] %v5220_v30  ;;  %7796 = vst [vmem:[#allocation16_spill] sm:$0xff] %v5224_v0  ;;  %v5236_v3 = vmul.f32 %v7801_v40, %v5122_v62  ;;  %v5240_v47 = vmul.f32 %v5122_v62, %v7803_v21  ;;  %v7805_v30 = vld [vmem:[#allocation33_spill] sm:$0xff]  ;;  %v7807_v0 = vld [vmem:[#allocation30_spill] sm:$0xff] }
 0x28c   :  { %7798 = vst [vmem:[#allocation19_spill] sm:$0xff] %v5228_v61  ;;  %7800 = vst [vmem:[#allocation21_spill] sm:$0xff] %v5232_v63  ;;  %v5244_v25 = vmul.f32 %v5122_v62, %v7805_v30  ;;  %v5248_v8 = vmul.f32 %v7807_v0, %v5122_v62  ;;  %v7809_v61 = vld [vmem:[#allocation32_spill] sm:$0xff]  ;;  %v7811_v63 = vld [vmem:[#allocation35_spill] sm:$0xff] }
 0x28d   :  { %7802 = vst [vmem:[#allocation18_spill] sm:$0xff] %v5236_v3  ;;  %7804 = vst [vmem:[#allocation20_spill] sm:$0xff] %v5240_v47  ;;  %v5252_v49 = vmul.f32 %v7809_v61, %v5122_v62  ;;  %v5256_v40 = vmul.f32 %v5122_v62, %v7811_v63  ;;  %v7813_v3 = vld [vmem:[#allocation38_spill] sm:$0xff] }
 0x28e   :  { %7806 = vst [vmem:[#allocation23_spill] sm:$0xff] %v5244_v25  ;;  %7808 = vst [vmem:[#allocation25_spill] sm:$0xff] %v5248_v8  ;;  %v5260_v21 = vmul.f32 %v5122_v62, %v7813_v3  ;;  %v7815_v47 = vld [vmem:[#allocation34_spill] sm:$0xff]  ;;  %v7817_v25 = vld [vmem:[#allocation36_spill] sm:$0xff] }
 0x28f   :  { %7810 = vst [vmem:[#allocation22_spill] sm:$0xff] %v5252_v49  ;;  %7812 = vst [vmem:[#allocation24_spill] sm:$0xff] %v5256_v40  ;;  %v5264_v30 = vmul.f32 %v7815_v47, %v5122_v62  ;;  %v5268_v0 = vmul.f32 %v7817_v25, %v5122_v62  ;;  %v7819_v8 = vld [vmem:[#allocation41_spill] sm:$0xff]  ;;  %v7821_v49 = vld [vmem:[#allocation44_spill] sm:$0xff] }
 0x290   :  { %7814 = vst [vmem:[#allocation27_spill] sm:$0xff] %v5260_v21  ;;  %v5272_v61 = vmul.f32 %v5122_v62, %v7819_v8  ;;  %v5276_v63 = vmul.f32 %v5122_v62, %v7821_v49  ;;  %v7823_v40 = vld [vmem:[#allocation39_spill] sm:$0xff]  ;;  %v7825_v21 = vld [vmem:[#allocation42_spill] sm:$0xff] }
 0x291   :  { %7816 = vst [vmem:[#allocation29_spill] sm:$0xff] %v5264_v30  ;;  %7818 = vst [vmem:[#allocation26_spill] sm:$0xff] %v5268_v0  ;;  %v5280_v3 = vmul.f32 %v7823_v40, %v5122_v62  ;;  %v5284_v47 = vmul.f32 %v7825_v21, %v5122_v62  ;;  %v7827_v30 = vld [vmem:[#allocation47_spill] sm:$0xff]  ;;  %v7829_v0 = vld [vmem:[#allocation50_spill] sm:$0xff] }
 0x292   :  { %7820 = vst [vmem:[#allocation28_spill] sm:$0xff] %v5272_v61  ;;  %7822 = vst [vmem:[#allocation31_spill] sm:$0xff] %v5276_v63  ;;  %v5288_v25 = vmul.f32 %v5122_v62, %v7827_v30  ;;  %v5292_v8 = vmul.f32 %v5122_v62, %v7829_v0  ;;  %v7831_v61 = vld [vmem:[#allocation45_spill] sm:$0xff]  ;;  %v7833_v63 = vld [vmem:[#allocation48_spill] sm:$0xff] }
 0x293   :  { %7824 = vst [vmem:[#allocation33_spill] sm:$0xff] %v5280_v3  ;;  %7826 = vst [vmem:[#allocation30_spill] sm:$0xff] %v5284_v47  ;;  %v5296_v49 = vmul.f32 %v7831_v61, %v5122_v62  ;;  %v5300_v40 = vmul.f32 %v7833_v63, %v5122_v62  ;;  %v7835_v3 = vld [vmem:[#allocation53_spill] sm:$0xff]  ;;  %v7837_v47 = vld [vmem:[#allocation56_spill] sm:$0xff] }
 0x294   :  { %7828 = vst [vmem:[#allocation32_spill] sm:$0xff] %v5288_v25  ;;  %7830 = vst [vmem:[#allocation35_spill] sm:$0xff] %v5292_v8  ;;  %v5304_v21 = vmul.f32 %v5122_v62, %v7835_v3  ;;  %v5308_v30 = vmul.f32 %v5122_v62, %v7837_v47  ;;  %v7839_v25 = vld [vmem:[#allocation51_spill] sm:$0xff]  ;;  %v7841_v8 = vld [vmem:[#allocation54_spill] sm:$0xff] }
 0x295   :  { %7832 = vst [vmem:[#allocation38_spill] sm:$0xff] %v5296_v49  ;;  %7834 = vst [vmem:[#allocation34_spill] sm:$0xff] %v5300_v40  ;;  %v5312_v0 = vmul.f32 %v7839_v25, %v5122_v62  ;;  %v5316_v61 = vmul.f32 %v7841_v8, %v5122_v62  ;;  %v7843_v49 = vld [vmem:[#allocation59_spill] sm:$0xff]  ;;  %v7845_v40 = vld [vmem:[#allocation62_spill] sm:$0xff] }
 0x296   :  { %7836 = vst [vmem:[#allocation36_spill] sm:$0xff] %v5304_v21  ;;  %7838 = vst [vmem:[#allocation41_spill] sm:$0xff] %v5308_v30  ;;  %v5320_v63 = vmul.f32 %v5122_v62, %v7843_v49  ;;  %v5324_v3 = vmul.f32 %v5122_v62, %v7845_v40  ;;  %v7847_v21 = vld [vmem:[#allocation57_spill] sm:$0xff]  ;;  %v7849_v30 = vld [vmem:[#allocation60_spill] sm:$0xff] }
 0x297   :  { %7840 = vst [vmem:[#allocation44_spill] sm:$0xff] %v5312_v0  ;;  %7842 = vst [vmem:[#allocation39_spill] sm:$0xff] %v5316_v61  ;;  %v5328_v47 = vmul.f32 %v7847_v21, %v5122_v62  ;;  %v5332_v25 = vmul.f32 %v7849_v30, %v5122_v62  ;;  %v7851_v0 = vld [vmem:[#allocation65_spill] sm:$0xff]  ;;  %v7853_v61 = vld [vmem:[#allocation68_spill] sm:$0xff] }
 0x298   :  { %7844 = vst [vmem:[#allocation42_spill] sm:$0xff] %v5320_v63  ;;  %7846 = vst [vmem:[#allocation47_spill] sm:$0xff] %v5324_v3  ;;  %v5336_v8 = vmul.f32 %v5122_v62, %v7851_v0  ;;  %v5340_v49 = vmul.f32 %v5122_v62, %v7853_v61  ;;  %v7855_v63 = vld [vmem:[#allocation63_spill] sm:$0xff]  ;;  %v7857_v3 = vld [vmem:[#allocation66_spill] sm:$0xff] }
 0x299   :  { %7848 = vst [vmem:[#allocation50_spill] sm:$0xff] %v5328_v47  ;;  %7850 = vst [vmem:[#allocation45_spill] sm:$0xff] %v5332_v25  ;;  %v5344_v40 = vmul.f32 %v7855_v63, %v5122_v62  ;;  %v5348_v21 = vmul.f32 %v7857_v3, %v5122_v62  ;;  %v7859_v47 = vld [vmem:[#allocation71_spill] sm:$0xff]  ;;  %v7861_v25 = vld [vmem:[#allocation74_spill] sm:$0xff] }
 0x29a   :  { %7852 = vst [vmem:[#allocation48_spill] sm:$0xff] %v5336_v8  ;;  %7854 = vst [vmem:[#allocation53_spill] sm:$0xff] %v5340_v49  ;;  %v5352_v30 = vmul.f32 %v5122_v62, %v7859_v47  ;;  %v5356_v0 = vmul.f32 %v5122_v62, %v7861_v25  ;;  %v7863_v8 = vld [vmem:[#allocation69_spill] sm:$0xff]  ;;  %v7865_v49 = vld [vmem:[#allocation72_spill] sm:$0xff] }
 0x29b   :  { %7856 = vst [vmem:[#allocation56_spill] sm:$0xff] %v5344_v40  ;;  %7858 = vst [vmem:[#allocation51_spill] sm:$0xff] %v5348_v21  ;;  %v5360_v61 = vmul.f32 %v7863_v8, %v5122_v62  ;;  %v5364_v63 = vmul.f32 %v7865_v49, %v5122_v62  ;;  %v7867_v40 = vld [vmem:[#allocation77_spill] sm:$0xff]  ;;  %v7869_v21 = vld [vmem:[#allocation80_spill] sm:$0xff] }
 0x29c   :  { %7860 = vst [vmem:[#allocation54_spill] sm:$0xff] %v5352_v30  ;;  %7862 = vst [vmem:[#allocation59_spill] sm:$0xff] %v5356_v0  ;;  %v5368_v3 = vmul.f32 %v5122_v62, %v7867_v40  ;;  %v5372_v47 = vmul.f32 %v5122_v62, %v7869_v21  ;;  %v7871_v30 = vld [vmem:[#allocation75_spill] sm:$0xff]  ;;  %v7873_v0 = vld [vmem:[#allocation78_spill] sm:$0xff] }
 0x29d   :  { %7864 = vst [vmem:[#allocation62_spill] sm:$0xff] %v5360_v61  ;;  %7866 = vst [vmem:[#allocation57_spill] sm:$0xff] %v5364_v63  ;;  %v5376_v25 = vmul.f32 %v7871_v30, %v5122_v62  ;;  %v5380_v8 = vmul.f32 %v7873_v0, %v5122_v62  ;;  %v7875_v61 = vld [vmem:[#allocation82_spill] sm:$0xff]  ;;  %v7877_v63 = vld [vmem:[#allocation85_spill] sm:$0xff] }
 0x29e   :  { %7868 = vst [vmem:[#allocation60_spill] sm:$0xff] %v5368_v3  ;;  %7870 = vst [vmem:[#allocation65_spill] sm:$0xff] %v5372_v47  ;;  %v5384_v49 = vmul.f32 %v5122_v62, %v7875_v61  ;;  %v5388_v40 = vmul.f32 %v5122_v62, %v7877_v63  ;;  %v7879_v3 = vld [vmem:[#allocation81_spill] sm:$0xff]  ;;  %v7881_v47 = vld [vmem:[#allocation83_spill] sm:$0xff] }
 0x29f   :  { %7872 = vst [vmem:[#allocation68_spill] sm:$0xff] %v5376_v25  ;;  %7874 = vst [vmem:[#allocation63_spill] sm:$0xff] %v5380_v8  ;;  %v5392_v21 = vmul.f32 %v7879_v3, %v5122_v62  ;;  %v5396_v30 = vmul.f32 %v7881_v47, %v5122_v62  ;;  %v7883_v25 = vld [vmem:[#allocation87_spill] sm:$0xff]  ;;  %v7885_v8 = vld [vmem:[#allocation90_spill] sm:$0xff] }
 0x2a0   :  { %7876 = vst [vmem:[#allocation66_spill] sm:$0xff] %v5384_v49  ;;  %7878 = vst [vmem:[#allocation71_spill] sm:$0xff] %v5388_v40  ;;  %v5400_v0 = vmul.f32 %v5122_v62, %v7883_v25  ;;  %v5404_v61 = vmul.f32 %v5122_v62, %v7885_v8  ;;  %v7887_v49 = vld [vmem:[#allocation86_spill] sm:$0xff]  ;;  %v7889_v40 = vld [vmem:[#allocation88_spill] sm:$0xff] }
 0x2a1   :  { %7880 = vst [vmem:[#allocation74_spill] sm:$0xff] %v5392_v21  ;;  %7882 = vst [vmem:[#allocation69_spill] sm:$0xff] %v5396_v30  ;;  %v5408_v63 = vmul.f32 %v7887_v49, %v5122_v62  ;;  %v5412_v3 = vmul.f32 %v7889_v40, %v5122_v62  ;;  %v7891_v21 = vld [vmem:[#allocation92_spill] sm:$0xff]  ;;  %v7893_v30 = vld [vmem:[#allocation95_spill] sm:$0xff] }
 0x2a2   :  { %7884 = vst [vmem:[#allocation72_spill] sm:$0xff] %v5400_v0  ;;  %7886 = vst [vmem:[#allocation77_spill] sm:$0xff] %v5404_v61  ;;  %v5416_v47 = vmul.f32 %v5122_v62, %v7891_v21  ;;  %v5420_v25 = vmul.f32 %v5122_v62, %v7893_v30  ;;  %v7895_v0 = vld [vmem:[#allocation91_spill] sm:$0xff]  ;;  %v7897_v61 = vld [vmem:[#allocation93_spill] sm:$0xff] }
 0x2a3   :  { %7888 = vst [vmem:[#allocation80_spill] sm:$0xff] %v5408_v63  ;;  %7890 = vst [vmem:[#allocation75_spill] sm:$0xff] %v5412_v3  ;;  %v5424_v8 = vmul.f32 %v7895_v0, %v5122_v62  ;;  %v5428_v49 = vmul.f32 %v7897_v61, %v5122_v62  ;;  %v7899_v63 = vld [vmem:[#allocation97_spill] sm:$0xff]  ;;  %v7901_v3 = vld [vmem:[#allocation100_spill] sm:$0xff] }
 0x2a4   :  { %7892 = vst [vmem:[#allocation78_spill] sm:$0xff] %v5416_v47  ;;  %7894 = vst [vmem:[#allocation82_spill] sm:$0xff] %v5420_v25  ;;  %v5432_v40 = vmul.f32 %v5122_v62, %v7899_v63  ;;  %v5436_v21 = vmul.f32 %v5122_v62, %v7901_v3  ;;  %v7903_v47 = vld [vmem:[#allocation96_spill] sm:$0xff]  ;;  %v7905_v25 = vld [vmem:[#allocation98_spill] sm:$0xff] }
 0x2a5   :  { %7896 = vst [vmem:[#allocation85_spill] sm:$0xff] %v5424_v8  ;;  %7898 = vst [vmem:[#allocation81_spill] sm:$0xff] %v5428_v49  ;;  %v5440_v30 = vmul.f32 %v7903_v47, %v5122_v62  ;;  %v5444_v0 = vmul.f32 %v7905_v25, %v5122_v62  ;;  %v7907_v8 = vld [vmem:[#allocation102_spill] sm:$0xff]  ;;  %v7909_v49 = vld [vmem:[#allocation105_spill] sm:$0xff] }
 0x2a6   :  { %7900 = vst [vmem:[#allocation83_spill] sm:$0xff] %v5432_v40  ;;  %7902 = vst [vmem:[#allocation87_spill] sm:$0xff] %v5436_v21  ;;  %v5448_v61 = vmul.f32 %v5122_v62, %v7907_v8  ;;  %v5452_v63 = vmul.f32 %v5122_v62, %v7909_v49  ;;  %v7911_v40 = vld [vmem:[#allocation101_spill] sm:$0xff]  ;;  %v7913_v21 = vld [vmem:[#allocation103_spill] sm:$0xff] }
 0x2a7   :  { %7904 = vst [vmem:[#allocation90_spill] sm:$0xff] %v5440_v30  ;;  %7906 = vst [vmem:[#allocation86_spill] sm:$0xff] %v5444_v0  ;;  %v5456_v3 = vmul.f32 %v7911_v40, %v5122_v62  ;;  %v5460_v47 = vmul.f32 %v7913_v21, %v5122_v62  ;;  %v7915_v30 = vld [vmem:[#allocation107_spill] sm:$0xff]  ;;  %v7917_v0 = vld [vmem:[#allocation110_spill] sm:$0xff] }
 0x2a8   :  { %7908 = vst [vmem:[#allocation88_spill] sm:$0xff] %v5448_v61  ;;  %7910 = vst [vmem:[#allocation92_spill] sm:$0xff] %v5452_v63  ;;  %v5464_v25 = vmul.f32 %v5122_v62, %v7915_v30  ;;  %v5468_v8 = vmul.f32 %v5122_v62, %v7917_v0  ;;  %v7919_v61 = vld [vmem:[#allocation106_spill] sm:$0xff]  ;;  %v7921_v63 = vld [vmem:[#allocation108_spill] sm:$0xff] }
 0x2a9   :  { %7912 = vst [vmem:[#allocation95_spill] sm:$0xff] %v5456_v3  ;;  %7914 = vst [vmem:[#allocation91_spill] sm:$0xff] %v5460_v47  ;;  %v5472_v49 = vmul.f32 %v7919_v61, %v5122_v62  ;;  %v5476_v40 = vmul.f32 %v7921_v63, %v5122_v62  ;;  %v7923_v3 = vld [vmem:[#allocation113_spill] sm:$0xff]  ;;  %v7925_v47 = vld [vmem:[#allocation116_spill] sm:$0xff] }
 0x2aa   :  { %7916 = vst [vmem:[#allocation93_spill] sm:$0xff] %v5464_v25  ;;  %7918 = vst [vmem:[#allocation97_spill] sm:$0xff] %v5468_v8  ;;  %v5480_v21 = vmul.f32 %v5122_v62, %v7923_v3  ;;  %v5484_v30 = vmul.f32 %v5122_v62, %v7925_v47  ;;  %v7927_v25 = vld [vmem:[#allocation111_spill] sm:$0xff]  ;;  %v7929_v8 = vld [vmem:[#allocation114_spill] sm:$0xff] }
 0x2ab   :  { %7920 = vst [vmem:[#allocation100_spill] sm:$0xff] %v5472_v49  ;;  %7922 = vst [vmem:[#allocation96_spill] sm:$0xff] %v5476_v40  ;;  %v5488_v0 = vmul.f32 %v7927_v25, %v5122_v62  ;;  %v5492_v61 = vmul.f32 %v7929_v8, %v5122_v62  ;;  %v7931_v49 = vld [vmem:[#allocation118_spill] sm:$0xff]  ;;  %v7932_v40 = vld [vmem:[#allocation121_spill] sm:$0xff] }
 0x2ac   :  { %7924 = vst [vmem:[#allocation98_spill] sm:$0xff] %v5480_v21  ;;  %7926 = vst [vmem:[#allocation102_spill] sm:$0xff] %v5484_v30  ;;  %v5496_v63 = vmul.f32 %v5122_v62, %v7931_v49  ;;  %v5500_v3 = vmul.f32 %v5122_v62, %v7932_v40  ;;  %v7933_v21 = vld [vmem:[#allocation117_spill] sm:$0xff]  ;;  %v7935_v30 = vld [vmem:[#allocation119_spill] sm:$0xff]  ;;  %v5520_v40 = vmul.f32 %v4693_v52, %v5122_v62 }
 0x2ad   :  { %7928 = vst [vmem:[#allocation105_spill] sm:$0xff] %v5488_v0  ;;  %7930 = vst [vmem:[#allocation101_spill] sm:$0xff] %v5492_v61  ;;  %v5504_v47 = vmul.f32 %v7933_v21, %v5122_v62  ;;  %v5508_v25 = vmul.f32 %v7935_v30, %v5122_v62  ;;  %v7937_v0 = vld [vmem:[#allocation123_spill] sm:$0xff]  ;;  %v7938_v61 = vld [vmem:[#allocation125_spill] sm:$0xff]  ;;  %v5524_v21 = vmul.f32 %v4705_v28, %v5122_v62 }
 0x2ae   :  { %v5512_v8 = vmul.f32 %v5122_v62, %v7937_v0  ;;  %v5516_v49 = vmul.f32 %v5122_v62, %v7938_v61  ;;  %7939 = vst [vmem:[#allocation110_spill] sm:$0xff] %v5520_v40  ;;  %v5536_v61 = vmul.f32 %v4288_v10, %v5122_v62  ;;  %v5540_v52 = vmul.f32 %v4302_v31, %v5122_v62  ;;  %v7945_v40 = vld [vmem:[#allocation43_spill] sm:$0xff] }
 0x2af   :  { %7934 = vst [vmem:[#allocation103_spill] sm:$0xff] %v5504_v47  ;;  %7936 = vst [vmem:[#allocation107_spill] sm:$0xff] %v5508_v25  ;;  %v7941_v47 = vld [vmem:[#allocation37_spill] sm:$0xff]  ;;  %v7942_v25 = vld [vmem:[#allocation40_spill] sm:$0xff]  ;;  %v5544_v28 = vmul.f32 %v5122_v62, %v7945_v40  ;;  %v5556_v10 = vmul.f32 %v4330_v12, %v5122_v62 }
 0x2b0   :  { %7940 = vst [vmem:[#allocation106_spill] sm:$0xff] %v5524_v21  ;;  %v5528_v30 = vmul.f32 %v5122_v62, %v7941_v47  ;;  %v5532_v0 = vmul.f32 %v5122_v62, %v7942_v25  ;;  %7943 = vst [vmem:[#allocation108_spill] sm:$0xff] %v5536_v61  ;;  %v7946_v21 = vld [vmem:[#allocation46_spill] sm:$0xff]  ;;  %v5552_v25 = vmul.f32 %v4316_v51, %v5122_v62  ;;  %v7949_v61 = vld [vmem:[#allocation49_spill] sm:$0xff] }
 0x2b1   :  { %7944 = vst [vmem:[#allocation113_spill] sm:$0xff] %v5540_v52  ;;  %v5548_v47 = vmul.f32 %v5122_v62, %v7946_v21  ;;  %7948 = vst [vmem:[#allocation111_spill] sm:$0xff] %v5556_v10  ;;  %v5560_v31 = vmul.f32 %v5122_v62, %v7949_v61  ;;  %v7950_v52 = vld [vmem:[#allocation52_spill] sm:$0xff]  ;;  %v5568_v21 = vmul.f32 %v4344_v45, %v5122_v62  ;;  %v7954_v10 = vld [vmem:[#allocation58_spill] sm:$0xff] }
 0x2b2   :  { %7947 = vst [vmem:[#allocation116_spill] sm:$0xff] %v5552_v25  ;;  %v5564_v40 = vmul.f32 %v5122_v62, %v7950_v52  ;;  %v5572_v51 = vmul.f32 %v4358_v20, %v5122_v62  ;;  %v7953_v25 = vld [vmem:[#allocation55_spill] sm:$0xff]  ;;  %v5580_v61 = vmul.f32 %v5122_v62, %v7954_v10  ;;  %v5584_v52 = vmul.f32 %v4372_v60, %v5122_v62 }
 0x2b3   :  { %7951 = vst [vmem:[#allocation114_spill] sm:$0xff] %v5568_v21  ;;  %v5576_v12 = vmul.f32 %v5122_v62, %v7953_v25  ;;  %v5588_v45 = vmul.f32 %v4386_v22, %v5122_v62  ;;  %v7957_v21 = vld [vmem:[#allocation61_spill] sm:$0xff]  ;;  %v5600_v10 = vmul.f32 %v4400_v58, %v5122_v62  ;;  %v5604_v60 = vmul.f32 %v4414_v35, %v5122_v62 }
 0x2b4   :  { %7952 = vst [vmem:[#allocation118_spill] sm:$0xff] %v5572_v51  ;;  %7955 = vst [vmem:[#allocation121_spill] sm:$0xff] %v5584_v52  ;;  %v5592_v20 = vmul.f32 %v5122_v62, %v7957_v21  ;;  %v7958_v51 = vld [vmem:[#allocation64_spill] sm:$0xff]  ;;  %v7961_v52 = vld [vmem:[#allocation67_spill] sm:$0xff]  ;;  %v5620_v58 = vmul.f32 %v4442_v54, %v5122_v62 }
 0x2b5   :  { %7956 = vst [vmem:[#allocation117_spill] sm:$0xff] %v5588_v45  ;;  %v5596_v25 = vmul.f32 %v5122_v62, %v7958_v51  ;;  %7959 = vst [vmem:[#allocation119_spill] sm:$0xff] %v5600_v10  ;;  %v5608_v22 = vmul.f32 %v5122_v62, %v7961_v52  ;;  %v7962_v45 = vld [vmem:[#allocation70_spill] sm:$0xff]  ;;  %v5616_v51 = vmul.f32 %v4428_v14, %v5122_v62  ;;  %v7965_v10 = vld [vmem:[#allocation73_spill] sm:$0xff] }
 0x2b6   :  { %7960 = vst [vmem:[#allocation123_spill] sm:$0xff] %v5604_v60  ;;  %v5612_v21 = vmul.f32 %v5122_v62, %v7962_v45  ;;  %7964 = vst [vmem:[#allocation37_spill] sm:$0xff] %v5620_v58  ;;  %v5624_v35 = vmul.f32 %v5122_v62, %v7965_v10  ;;  %v7966_v60 = vld [vmem:[#allocation76_spill] sm:$0xff]  ;;  %v5632_v45 = vmul.f32 %v4456_v32, %v5122_v62 }
 0x2b7   :  { %7963 = vst [vmem:[#allocation125_spill] sm:$0xff] %v5616_v51  ;;  %v5628_v52 = vmul.f32 %v5122_v62, %v7966_v60  ;;  %v5636_v14 = vmul.f32 %v4470_v13, %v5122_v62  ;;  %v7969_v51 = vld [vmem:[#allocation79_spill] sm:$0xff]  ;;  %v7970_v58 = vld [vmem:[#allocation84_spill] sm:$0xff]  ;;  %v5648_v60 = vmul.f32 %v4484_v48, %v5122_v62  ;;  %v5652_v32 = vmul.f32 %v4503_v26, %v5122_v62 }
 0x2b8   :  { %7967 = vst [vmem:[#allocation40_spill] sm:$0xff] %v5632_v45  ;;  %v5640_v54 = vmul.f32 %v5122_v62, %v7969_v51  ;;  %v5644_v10 = vmul.f32 %v5122_v62, %v7970_v58  ;;  %v7973_v45 = vld [vmem:[#allocation89_spill] sm:$0xff]  ;;  %v5664_v58 = vmul.f32 %v4527_v9, %v5122_v62  ;;  %v5668_v48 = vmul.f32 %v4551_v38, %v5122_v62 }
 0x2b9   :  { %7968 = vst [vmem:[#allocation43_spill] sm:$0xff] %v5636_v14  ;;  %7971 = vst [vmem:[#allocation46_spill] sm:$0xff] %v5648_v60  ;;  %v5656_v13 = vmul.f32 %v5122_v62, %v7973_v45  ;;  %v7974_v14 = vld [vmem:[#allocation94_spill] sm:$0xff]  ;;  %v7977_v60 = vld [vmem:[#allocation99_spill] sm:$0xff]  ;;  %v5684_v9 = vmul.f32 %v4599_v24, %v5122_v62 }
 0x2ba   :  { %7972 = vst [vmem:[#allocation49_spill] sm:$0xff] %v5652_v32  ;;  %v5660_v51 = vmul.f32 %v5122_v62, %v7974_v14  ;;  %7975 = vst [vmem:[#allocation52_spill] sm:$0xff] %v5664_v58  ;;  %v5672_v26 = vmul.f32 %v5122_v62, %v7977_v60  ;;  %v7978_v32 = vld [vmem:[#allocation104_spill] sm:$0xff]  ;;  %v5680_v14 = vmul.f32 %v4575_v7, %v5122_v62  ;;  %v7982_v58 = vld [vmem:[#allocation109_spill] sm:$0xff] }
 0x2bb   :  { %7976 = vst [vmem:[#allocation55_spill] sm:$0xff] %v5668_v48  ;;  %v5676_v45 = vmul.f32 %v5122_v62, %v7978_v32  ;;  %7981 = vst [vmem:[#allocation64_spill] sm:$0xff] %v5684_v9  ;;  %v5688_v38 = vmul.f32 %v5122_v62, %v7982_v58  ;;  %v7983_v48 = vld [vmem:[#allocation115_spill] sm:$0xff]  ;;  %v5696_v32 = vmul.f32 %v4623_v37, %v5122_v62  ;;  %v7989_v9 = vld [vmem:[#allocation124_spill] sm:$0xff] }
 0x2bc   :  { %7980 = vst [vmem:[#allocation61_spill] sm:$0xff] %v5680_v14  ;;  %v5692_v60 = vmul.f32 %v5122_v62, %v7983_v48  ;;  %v7988_v14 = vld [vmem:[#allocation120_spill] sm:$0xff]  ;;  %v5708_v58 = vmul.f32 %v5122_v62, %v7989_v9  ;;  %v5712_v48 = vmul.f32 %v4671_v5, %v5122_v62  ;;  %v5728_v9 = vmul.f32 %v7736_v19, %v5122_v62 }
 0x2bd   :  { %7979 = vst [vmem:[#allocation58_spill] sm:$0xff] %v5676_v45  ;;  %7985 = vst [vmem:[#allocation70_spill] sm:$0xff] %v5696_v32  ;;  %v7986_v45 = vld [vmem:[#allocation112_spill] sm:$0xff]  ;;  %v5704_v24 = vmul.f32 %v5122_v62, %v7988_v14  ;;  %v7993_v32 = vld [vmem:[#allocation127_spill] sm:$0xff]  ;;  %v5732_v5 = vmul.f32 %v4733_v15, %v5122_v62  ;;  %v5748_v19 = vmul.f32 %v4765_v41, %v5122_v62 }
 0x2be   :  { %7984 = vst [vmem:[#allocation67_spill] sm:$0xff] %v5692_v60  ;;  %v5700_v7 = vmul.f32 %v7986_v45, %v5122_v62  ;;  %7990 = vst [vmem:[#allocation76_spill] sm:$0xff] %v5712_v48  ;;  %v7991_v60 = vld [vmem:[#allocation122_spill] sm:$0xff]  ;;  %v5720_v45 = vmul.f32 %v5122_v62, %v7993_v32  ;;  %v7997_v48 = vld [vmem:[#allocation129_spill] sm:$0xff] }
 0x2bf   :  { %v5716_v37 = vmul.f32 %v7991_v60, %v5122_v62  ;;  %7995 = vst [vmem:[#allocation84_spill] sm:$0xff] %v5728_v9  ;;  %7996 = vst [vmem:[#allocation89_spill] sm:$0xff] %v5732_v5  ;;  %v5736_v60 = vmul.f32 %v5122_v62, %v7997_v48  ;;  %v8001_v9 = vld [vmem:[#allocation131_spill] sm:$0xff]  ;;  %v8002_v5 = vld [vmem:[#allocation132_spill] sm:$0xff] }
 0x2c0   :  { %7987 = vst [vmem:[#allocation73_spill] sm:$0xff] %v5700_v7  ;;  %v7994_v7 = vld [vmem:[#allocation128_spill] sm:$0xff]  ;;  %8000 = vst [vmem:[#allocation99_spill] sm:$0xff] %v5748_v19  ;;  %v5752_v15 = vmul.f32 %v5122_v62, %v8001_v9  ;;  %v5756_v48 = vmul.f32 %v5122_v62, %v8002_v5  ;;  %v8006_v19 = vld [vmem:[#allocation134_spill] sm:$0xff]  ;;  %v5776_v5 = vmul.f32 %v4813_v55, %v5122_v62 }
 0x2c1   :  { %7992 = vst [vmem:[#allocation79_spill] sm:$0xff] %v5716_v37  ;;  %v5724_v14 = vmul.f32 %v5122_v62, %v7994_v7  ;;  %v7998_v37 = vld [vmem:[#allocation130_spill] sm:$0xff]  ;;  %v5744_v7 = vmul.f32 %v4749_v43, %v5122_v62  ;;  %v5764_v43 = vmul.f32 %v4797_v36, %v5122_v62  ;;  %v5772_v9 = vmul.f32 %v5122_v62, %v8006_v19 }
 0x2c2   :  { %v5740_v32 = vmul.f32 %v5122_v62, %v7998_v37  ;;  %v5760_v37 = vmul.f32 %v4781_v23, %v5122_v62  ;;  %8007 = vst [vmem:[#allocation115_spill] sm:$0xff] %v5776_v5  ;;  %v5780_v23 = vmul.f32 %v4829_v4, %v5122_v62  ;;  %v5792_v19 = vmul.f32 %v4845_v17, %v5122_v62  ;;  %v8013_v5 = vld [vmem:[#allocation137_spill] sm:$0xff] }
 0x2c3   :  { %7999 = vst [vmem:[#allocation94_spill] sm:$0xff] %v5744_v7  ;;  %8004 = vst [vmem:[#allocation109_spill] sm:$0xff] %v5764_v43  ;;  %v8005_v7 = vld [vmem:[#allocation133_spill] sm:$0xff]  ;;  %v8010_v43 = vld [vmem:[#allocation136_spill] sm:$0xff]  ;;  %v5796_v55 = vmul.f32 %v4861_v53, %v5122_v62  ;;  %v5800_v4 = vmul.f32 %v5122_v62, %v8013_v5  ;;  %v5812_v17 = vmul.f32 %v4893_v33, %v5122_v62 }
 0x2c4   :  { %8003 = vst [vmem:[#allocation104_spill] sm:$0xff] %v5760_v37  ;;  %v5768_v41 = vmul.f32 %v5122_v62, %v8005_v7  ;;  %8008 = vst [vmem:[#allocation112_spill] sm:$0xff] %v5780_v23  ;;  %v8009_v37 = vld [vmem:[#allocation135_spill] sm:$0xff]  ;;  %v5788_v7 = vmul.f32 %v5122_v62, %v8010_v43  ;;  %v8014_v23 = vld [vmem:[#allocation138_spill] sm:$0xff]  ;;  %v5808_v43 = vmul.f32 %v4877_v50, %v5122_v62 }
 0x2c5   :  { %v5784_v36 = vmul.f32 %v5122_v62, %v8009_v37  ;;  %8011 = vst [vmem:[#allocation120_spill] sm:$0xff] %v5792_v19  ;;  %8012 = vst [vmem:[#allocation124_spill] sm:$0xff] %v5796_v55  ;;  %v5804_v37 = vmul.f32 %v5122_v62, %v8014_v23  ;;  %v8017_v19 = vld [vmem:[#allocation139_spill] sm:$0xff]  ;;  %v8018_v55 = vld [vmem:[#allocation126_spill] sm:$0xff]  ;;  %v5824_v23 = vmul.f32 %v4909_v11, %v5122_v62 }
 0x2c6   :  { %8015 = vst [vmem:[#allocation122_spill] sm:$0xff] %v5808_v43  ;;  %8016 = vst [vmem:[#allocation127_spill] sm:$0xff] %v5812_v17  ;;  %v5816_v53 = vmul.f32 %v5122_v62, %v8017_v19  ;;  %v5820_v5 = vmul.f32 %v5122_v62, %v8018_v55  ;;  %v5828_v50 = vmul.f32 %v4925_v57, %v5122_v62  ;;  %v8022_v43 = vld [vmem:[#allocation140_spill] sm:$0xff]  ;;  %v8024_v17 = vld [vmem:[#allocation142_spill] sm:$0xff] }
 0x2c7   :  { %8020 = vst [vmem:[#allocation129_spill] sm:$0xff] %v5824_v23  ;;  %v5832_v33 = vmul.f32 %v5122_v62, %v8022_v43  ;;  %v5836_v19 = vmul.f32 %v5122_v62, %v8024_v17  ;;  %v5840_v55 = vmul.f32 %v4941_v39, %v5122_v62  ;;  %v8029_v23 = vld [vmem:[#allocation144_spill] sm:$0xff] }
 0x2c8   :  { %8019 = vst [vmem:[#allocation128_spill] sm:$0xff] %v5820_v5  ;;  %8021 = vst [vmem:[#allocation130_spill] sm:$0xff] %v5828_v50  ;;  %v8027_v5 = vld [vmem:[#allocation141_spill] sm:$0xff]  ;;  %v5848_v57 = vmul.f32 %v5122_v62, %v8029_v23  ;;  %v8031_v50 = vld [vmem:[#allocation146_spill] sm:$0xff] }
 0x2c9   :  { %8023 = vst [vmem:[#allocation131_spill] sm:$0xff] %v5832_v33  ;;  %8025 = vst [vmem:[#allocation132_spill] sm:$0xff] %v5836_v19  ;;  %v5844_v11 = vmul.f32 %v8027_v5, %v5122_v62  ;;  %v5852_v43 = vmul.f32 %v5122_v62, %v8031_v50  ;;  %v8033_v33 = vld [vmem:[#allocation143_spill] sm:$0xff]  ;;  %v8035_v19 = vld [vmem:[#allocation145_spill] sm:$0xff] }
 0x2ca   :  { %8026 = vst [vmem:[#allocation133_spill] sm:$0xff] %v5840_v55  ;;  %8030 = vst [vmem:[#allocation135_spill] sm:$0xff] %v5848_v57  ;;  %v5856_v17 = vmul.f32 %v8033_v33, %v5122_v62  ;;  %v5860_v39 = vmul.f32 %v8035_v19, %v5122_v62  ;;  %v8037_v55 = vld [vmem:[#allocation148_spill] sm:$0xff]  ;;  %v8041_v57 = vld [vmem:[#allocation147_spill] sm:$0xff] }
 0x2cb   :  { %8028 = vst [vmem:[#allocation134_spill] sm:$0xff] %v5844_v11  ;;  %8032 = vst [vmem:[#allocation136_spill] sm:$0xff] %v5852_v43  ;;  %v5864_v5 = vmul.f32 %v5122_v62, %v8037_v55  ;;  %v8039_v11 = vld [vmem:[#allocation150_spill] sm:$0xff]  ;;  %v5872_v50 = vmul.f32 %v8041_v57, %v5122_v62  ;;  %v8043_v43 = vld [vmem:[#allocation149_spill] sm:$0xff] }
 0x2cc   :  { %8034 = vst [vmem:[#allocation137_spill] sm:$0xff] %v5856_v17  ;;  %8036 = vst [vmem:[#allocation138_spill] sm:$0xff] %v5860_v39  ;;  %v5868_v23 = vmul.f32 %v5122_v62, %v8039_v11  ;;  %v5876_v33 = vmul.f32 %v8043_v43, %v5122_v62  ;;  %v8045_v17 = vld [vmem:[#allocation152_spill] sm:$0xff]  ;;  %v8047_v39 = vld [vmem:[#allocation154_spill] sm:$0xff]  ;;  %v8053_v43 = vsub.f32 %v5116_v42, %v5118_v34 }
 0x2cd   :  { %8038 = vst [vmem:[#allocation139_spill] sm:$0xff] %v5864_v5  ;;  %8042 = vst [vmem:[#allocation140_spill] sm:$0xff] %v5872_v50  ;;  %v5880_v19 = vmul.f32 %v5122_v62, %v8045_v17  ;;  %v5884_v55 = vmul.f32 %v5122_v62, %v8047_v39  ;;  %v8049_v5 = vld [vmem:[#allocation151_spill] sm:$0xff]  ;;  %v8052_v50 = vsub.s32 0, %v5107_v46  ;;  %v8054_v17 = vld [vmem:[#allocation156_spill] sm:$0xff]  ;;  %v5915_v46 = vmul.f32 %v5085_v16, %v5122_v62 }
 0x2ce   :  { %8040 = vst [vmem:[#allocation126_spill] sm:$0xff] %v5868_v23  ;;  %8044 = vst [vmem:[#allocation142_spill] sm:$0xff] %v5876_v33  ;;  %v5888_v11 = vmul.f32 %v8049_v5, %v5122_v62  ;;  %v8051_v23 = vld [vmem:[#allocation153_spill] sm:$0xff]  ;;  %v8056_v5 = vld [vmem:[#allocation155_spill] sm:$0xff] }
 0x2cf   :  { %8046 = vst [vmem:[#allocation141_spill] sm:$0xff] %v5880_v19  ;;  %8048 = vst [vmem:[#allocation144_spill] sm:$0xff] %v5884_v55  ;;  %v5892_v57 = vmul.f32 %v8051_v23, %v5122_v62  ;;  %v5899_v33 = vrot.slane %v8053_v43, %v8052_v50  ;;  %v5903_v19 = vmul.f32 %v5122_v62, %v8054_v17  ;;  %v8055_v39 = vld [vmem:[#allocation157_spill] sm:$0xff]  ;;  %v8070_v17 = vld [vmem:[#allocation2_spill] sm:$0xff] }
 0x2d0   :  { %8050 = vst [vmem:[#allocation146_spill] sm:$0xff] %v5888_v11  ;;  %v5907_v55 = vmul.f32 %v5122_v62, %v8055_v39  ;;  %v5911_v11 = vmul.f32 %v8056_v5, %v5122_v62  ;;  %v8068_v43 = vld [vmem:[#allocation5_spill] sm:$0xff]  ;;  %v8072_v39 = vld [vmem:[#allocation4_spill] sm:$0xff]  ;;  %v8074_v5 = vld [vmem:[#allocation7_spill] sm:$0xff] }
 0x2d1   :  { %v5919_v42 = vadd.f32 %v5899_v33, %v5128_v18  ;;  %v5923_v34 = vadd.f32 %v5899_v33, %v5132_v44  ;;  %v5927_v23 = vadd.f32 %v5899_v33, %v5136_v6  ;;  %v5931_v50 = vadd.f32 %v5899_v33, %v5140_v2  ;;  %v8066_v2 = vld [vmem:[#allocation3_spill] sm:$0xff] }
 0x2d2   :  { %v5935_v16 = vadd.f32 %v5899_v33, %v5144_v29  ;;  %v5939_v62 = vadd.f32 %v5899_v33, %v5148_v1  ;;  %v5943_v18 = vadd.f32 %v5899_v33, %v5152_v56  ;;  %v5947_v44 = vadd.f32 %v5899_v33, %v5156_v27 }
 0x2d3   :  { %8057 = vst [vmem:[#allocation143_spill] sm:$0xff] %v5919_v42  ;;  %8058 = vst [vmem:[#allocation145_spill] sm:$0xff] %v5923_v34  ;;  %v5951_v6 = vadd.f32 %v5899_v33, %v5160_v59  ;;  %v5955_v29 = vadd.f32 %v5899_v33, %v8066_v2  ;;  %v5959_v1 = vadd.f32 %v5899_v33, %v8068_v43 }
 0x2d4   :  { %8059 = vst [vmem:[#allocation148_spill] sm:$0xff] %v5927_v23  ;;  %8060 = vst [vmem:[#allocation150_spill] sm:$0xff] %v5931_v50  ;;  %v5963_v56 = vadd.f32 %v5899_v33, %v8070_v17  ;;  %v5967_v27 = vadd.f32 %v5899_v33, %v8072_v39  ;;  %v5971_v59 = vadd.f32 %v5899_v33, %v8074_v5 }
 0x2d5   :  { %8061 = vst [vmem:[#allocation147_spill] sm:$0xff] %v5935_v16  ;;  %8062 = vst [vmem:[#allocation149_spill] sm:$0xff] %v5939_v62  ;;  %v8162_v62 = vld [vmem:[#allocation59_spill] sm:$0xff]  ;;  %v8164_v16 = vld [vmem:[#allocation62_spill] sm:$0xff] }
 0x2d6   :  { %8063 = vst [vmem:[#allocation152_spill] sm:$0xff] %v5943_v18  ;;  %8064 = vst [vmem:[#allocation154_spill] sm:$0xff] %v5947_v44  ;;  %v8158_v44 = vld [vmem:[#allocation51_spill] sm:$0xff]  ;;  %v8160_v18 = vld [vmem:[#allocation54_spill] sm:$0xff] }
 0x2d7   :  { %8065 = vst [vmem:[#allocation151_spill] sm:$0xff] %v5951_v6  ;;  %8067 = vst [vmem:[#allocation153_spill] sm:$0xff] %v5955_v29  ;;  %v8076_v6 = vld [vmem:[#allocation9_spill] sm:$0xff]  ;;  %v8078_v29 = vld [vmem:[#allocation6_spill] sm:$0xff] }
 0x2d8   :  { %8069 = vst [vmem:[#allocation156_spill] sm:$0xff] %v5959_v1  ;;  %8071 = vst [vmem:[#allocation157_spill] sm:$0xff] %v5963_v56  ;;  %v5975_v2 = vadd.f32 %v5899_v33, %v8076_v6  ;;  %v5979_v43 = vadd.f32 %v5899_v33, %v8078_v29  ;;  %v8080_v1 = vld [vmem:[#allocation8_spill] sm:$0xff]  ;;  %v8082_v56 = vld [vmem:[#allocation11_spill] sm:$0xff] }
 0x2d9   :  { %8073 = vst [vmem:[#allocation155_spill] sm:$0xff] %v5967_v27  ;;  %8075 = vst [vmem:[#allocation3_spill] sm:$0xff] %v5971_v59  ;;  %v5983_v17 = vadd.f32 %v5899_v33, %v8080_v1  ;;  %v5987_v39 = vadd.f32 %v5899_v33, %v8082_v56  ;;  %v8084_v27 = vld [vmem:[#allocation13_spill] sm:$0xff]  ;;  %v8086_v59 = vld [vmem:[#allocation10_spill] sm:$0xff] }
 0x2da   :  { %8077 = vst [vmem:[#allocation5_spill] sm:$0xff] %v5975_v2  ;;  %8079 = vst [vmem:[#allocation2_spill] sm:$0xff] %v5979_v43  ;;  %v5991_v5 = vadd.f32 %v5899_v33, %v8084_v27  ;;  %v5995_v6 = vadd.f32 %v5899_v33, %v8086_v59  ;;  %v8088_v2 = vld [vmem:[#allocation12_spill] sm:$0xff]  ;;  %v8090_v43 = vld [vmem:[#allocation15_spill] sm:$0xff] }
 0x2db   :  { %8081 = vst [vmem:[#allocation4_spill] sm:$0xff] %v5983_v17  ;;  %8083 = vst [vmem:[#allocation7_spill] sm:$0xff] %v5987_v39  ;;  %v5999_v29 = vadd.f32 %v5899_v33, %v8088_v2  ;;  %v6003_v1 = vadd.f32 %v5899_v33, %v8090_v43  ;;  %v8092_v17 = vld [vmem:[#allocation17_spill] sm:$0xff]  ;;  %v8094_v39 = vld [vmem:[#allocation14_spill] sm:$0xff] }
 0x2dc   :  { %8085 = vst [vmem:[#allocation9_spill] sm:$0xff] %v5991_v5  ;;  %8087 = vst [vmem:[#allocation6_spill] sm:$0xff] %v5995_v6  ;;  %v6007_v56 = vadd.f32 %v5899_v33, %v8092_v17  ;;  %v6011_v27 = vadd.f32 %v5899_v33, %v8094_v39  ;;  %v8096_v5 = vld [vmem:[#allocation16_spill] sm:$0xff]  ;;  %v8098_v6 = vld [vmem:[#allocation19_spill] sm:$0xff] }
 0x2dd   :  { %8089 = vst [vmem:[#allocation8_spill] sm:$0xff] %v5999_v29  ;;  %8091 = vst [vmem:[#allocation11_spill] sm:$0xff] %v6003_v1  ;;  %v6015_v59 = vadd.f32 %v5899_v33, %v8096_v5  ;;  %v6019_v2 = vadd.f32 %v5899_v33, %v8098_v6  ;;  %v8100_v29 = vld [vmem:[#allocation21_spill] sm:$0xff]  ;;  %v8102_v1 = vld [vmem:[#allocation18_spill] sm:$0xff] }
 0x2de   :  { %8093 = vst [vmem:[#allocation13_spill] sm:$0xff] %v6007_v56  ;;  %8095 = vst [vmem:[#allocation10_spill] sm:$0xff] %v6011_v27  ;;  %v6023_v43 = vadd.f32 %v5899_v33, %v8100_v29  ;;  %v6027_v17 = vadd.f32 %v5899_v33, %v8102_v1  ;;  %v8104_v56 = vld [vmem:[#allocation20_spill] sm:$0xff]  ;;  %v8106_v27 = vld [vmem:[#allocation23_spill] sm:$0xff] }
 0x2df   :  { %8097 = vst [vmem:[#allocation12_spill] sm:$0xff] %v6015_v59  ;;  %8099 = vst [vmem:[#allocation15_spill] sm:$0xff] %v6019_v2  ;;  %v6031_v39 = vadd.f32 %v5899_v33, %v8104_v56  ;;  %v6035_v5 = vadd.f32 %v5899_v33, %v8106_v27  ;;  %v8108_v59 = vld [vmem:[#allocation25_spill] sm:$0xff]  ;;  %v8110_v2 = vld [vmem:[#allocation22_spill] sm:$0xff] }
 0x2e0   :  { %8101 = vst [vmem:[#allocation17_spill] sm:$0xff] %v6023_v43  ;;  %8103 = vst [vmem:[#allocation14_spill] sm:$0xff] %v6027_v17  ;;  %v6039_v6 = vadd.f32 %v5899_v33, %v8108_v59  ;;  %v6043_v29 = vadd.f32 %v5899_v33, %v8110_v2  ;;  %v8112_v43 = vld [vmem:[#allocation24_spill] sm:$0xff]  ;;  %v8114_v17 = vld [vmem:[#allocation27_spill] sm:$0xff] }
 0x2e1   :  { %8105 = vst [vmem:[#allocation16_spill] sm:$0xff] %v6031_v39  ;;  %8107 = vst [vmem:[#allocation19_spill] sm:$0xff] %v6035_v5  ;;  %v6047_v1 = vadd.f32 %v5899_v33, %v8112_v43  ;;  %v6051_v56 = vadd.f32 %v5899_v33, %v8114_v17  ;;  %v8116_v39 = vld [vmem:[#allocation29_spill] sm:$0xff]  ;;  %v8118_v5 = vld [vmem:[#allocation26_spill] sm:$0xff] }
 0x2e2   :  { %8109 = vst [vmem:[#allocation21_spill] sm:$0xff] %v6039_v6  ;;  %8111 = vst [vmem:[#allocation18_spill] sm:$0xff] %v6043_v29  ;;  %v6055_v27 = vadd.f32 %v5899_v33, %v8116_v39  ;;  %v6059_v59 = vadd.f32 %v5899_v33, %v8118_v5  ;;  %v8120_v6 = vld [vmem:[#allocation28_spill] sm:$0xff]  ;;  %v8122_v29 = vld [vmem:[#allocation31_spill] sm:$0xff] }
 0x2e3   :  { %8113 = vst [vmem:[#allocation20_spill] sm:$0xff] %v6047_v1  ;;  %8115 = vst [vmem:[#allocation23_spill] sm:$0xff] %v6051_v56  ;;  %v6063_v2 = vadd.f32 %v5899_v33, %v8120_v6  ;;  %v6067_v43 = vadd.f32 %v5899_v33, %v8122_v29  ;;  %v8124_v1 = vld [vmem:[#allocation33_spill] sm:$0xff]  ;;  %v8126_v56 = vld [vmem:[#allocation30_spill] sm:$0xff] }
 0x2e4   :  { %8117 = vst [vmem:[#allocation25_spill] sm:$0xff] %v6055_v27  ;;  %8119 = vst [vmem:[#allocation22_spill] sm:$0xff] %v6059_v59  ;;  %v6071_v17 = vadd.f32 %v5899_v33, %v8124_v1  ;;  %v6075_v39 = vadd.f32 %v5899_v33, %v8126_v56  ;;  %v8128_v27 = vld [vmem:[#allocation32_spill] sm:$0xff]  ;;  %v8130_v59 = vld [vmem:[#allocation35_spill] sm:$0xff] }
 0x2e5   :  { %8121 = vst [vmem:[#allocation24_spill] sm:$0xff] %v6063_v2  ;;  %8123 = vst [vmem:[#allocation27_spill] sm:$0xff] %v6067_v43  ;;  %v6079_v5 = vadd.f32 %v5899_v33, %v8128_v27  ;;  %v6083_v6 = vadd.f32 %v5899_v33, %v8130_v59  ;;  %v8132_v2 = vld [vmem:[#allocation38_spill] sm:$0xff] }
 0x2e6   :  { %8125 = vst [vmem:[#allocation29_spill] sm:$0xff] %v6071_v17  ;;  %8127 = vst [vmem:[#allocation26_spill] sm:$0xff] %v6075_v39  ;;  %v6087_v29 = vadd.f32 %v5899_v33, %v8132_v2  ;;  %v8134_v43 = vld [vmem:[#allocation34_spill] sm:$0xff]  ;;  %v8136_v17 = vld [vmem:[#allocation36_spill] sm:$0xff] }
 0x2e7   :  { %8129 = vst [vmem:[#allocation28_spill] sm:$0xff] %v6079_v5  ;;  %8131 = vst [vmem:[#allocation31_spill] sm:$0xff] %v6083_v6  ;;  %v6091_v1 = vadd.f32 %v5899_v33, %v8134_v43  ;;  %v6095_v56 = vadd.f32 %v5899_v33, %v8136_v17  ;;  %v8138_v39 = vld [vmem:[#allocation41_spill] sm:$0xff]  ;;  %v8140_v5 = vld [vmem:[#allocation44_spill] sm:$0xff] }
 0x2e8   :  { %8133 = vst [vmem:[#allocation33_spill] sm:$0xff] %v6087_v29  ;;  %v6099_v27 = vadd.f32 %v5899_v33, %v8138_v39  ;;  %v6103_v59 = vadd.f32 %v5899_v33, %v8140_v5  ;;  %v8142_v6 = vld [vmem:[#allocation39_spill] sm:$0xff]  ;;  %v8144_v29 = vld [vmem:[#allocation42_spill] sm:$0xff] }
 0x2e9   :  { %8135 = vst [vmem:[#allocation30_spill] sm:$0xff] %v6091_v1  ;;  %8137 = vst [vmem:[#allocation32_spill] sm:$0xff] %v6095_v56  ;;  %v6107_v2 = vadd.f32 %v5899_v33, %v8142_v6  ;;  %v6111_v43 = vadd.f32 %v5899_v33, %v8144_v29  ;;  %v8146_v1 = vld [vmem:[#allocation47_spill] sm:$0xff]  ;;  %v8148_v56 = vld [vmem:[#allocation50_spill] sm:$0xff] }
 0x2ea   :  { %8139 = vst [vmem:[#allocation35_spill] sm:$0xff] %v6099_v27  ;;  %8141 = vst [vmem:[#allocation38_spill] sm:$0xff] %v6103_v59  ;;  %v6115_v17 = vadd.f32 %v5899_v33, %v8146_v1  ;;  %v6119_v39 = vadd.f32 %v5899_v33, %v8148_v56  ;;  %v8150_v27 = vld [vmem:[#allocation45_spill] sm:$0xff]  ;;  %v8152_v59 = vld [vmem:[#allocation48_spill] sm:$0xff]  ;;  %v6139_v56 = vadd.f32 %v5899_v33, %v8158_v44 }
 0x2eb   :  { %8143 = vst [vmem:[#allocation34_spill] sm:$0xff] %v6107_v2  ;;  %8145 = vst [vmem:[#allocation36_spill] sm:$0xff] %v6111_v43  ;;  %v6123_v5 = vadd.f32 %v5899_v33, %v8150_v27  ;;  %v6127_v6 = vadd.f32 %v5899_v33, %v8152_v59  ;;  %v8154_v2 = vld [vmem:[#allocation53_spill] sm:$0xff]  ;;  %v8156_v43 = vld [vmem:[#allocation56_spill] sm:$0xff]  ;;  %v6143_v27 = vadd.f32 %v5899_v33, %v8160_v18 }
 0x2ec   :  { %8147 = vst [vmem:[#allocation41_spill] sm:$0xff] %v6115_v17  ;;  %8149 = vst [vmem:[#allocation44_spill] sm:$0xff] %v6119_v39  ;;  %v6131_v29 = vadd.f32 %v5899_v33, %v8154_v2  ;;  %v6135_v1 = vadd.f32 %v5899_v33, %v8156_v43  ;;  %v6147_v59 = vadd.f32 %v5899_v33, %v8162_v62 }
 0x2ed   :  { %8151 = vst [vmem:[#allocation39_spill] sm:$0xff] %v6123_v5  ;;  %8153 = vst [vmem:[#allocation42_spill] sm:$0xff] %v6127_v6  ;;  %v6151_v2 = vadd.f32 %v5899_v33, %v8164_v16 }
 0x2ee   :  { %8155 = vst [vmem:[#allocation47_spill] sm:$0xff] %v6131_v29  ;;  %8157 = vst [vmem:[#allocation50_spill] sm:$0xff] %v6135_v1  ;;  %v8166_v29 = vld [vmem:[#allocation57_spill] sm:$0xff]  ;;  %v8168_v1 = vld [vmem:[#allocation60_spill] sm:$0xff] }
 0x2ef   :  { %8159 = vst [vmem:[#allocation45_spill] sm:$0xff] %v6139_v56  ;;  %8161 = vst [vmem:[#allocation48_spill] sm:$0xff] %v6143_v27  ;;  %v6155_v43 = vadd.f32 %v5899_v33, %v8166_v29  ;;  %v6159_v44 = vadd.f32 %v5899_v33, %v8168_v1  ;;  %v8170_v56 = vld [vmem:[#allocation65_spill] sm:$0xff]  ;;  %v8172_v27 = vld [vmem:[#allocation68_spill] sm:$0xff] }
 0x2f0   :  { %8163 = vst [vmem:[#allocation53_spill] sm:$0xff] %v6147_v59  ;;  %8165 = vst [vmem:[#allocation56_spill] sm:$0xff] %v6151_v2  ;;  %v6163_v18 = vadd.f32 %v5899_v33, %v8170_v56  ;;  %v6167_v62 = vadd.f32 %v5899_v33, %v8172_v27  ;;  %v8174_v59 = vld [vmem:[#allocation63_spill] sm:$0xff]  ;;  %v8176_v2 = vld [vmem:[#allocation66_spill] sm:$0xff] }
 0x2f1   :  { %8167 = vst [vmem:[#allocation51_spill] sm:$0xff] %v6155_v43  ;;  %8169 = vst [vmem:[#allocation54_spill] sm:$0xff] %v6159_v44  ;;  %v6171_v16 = vadd.f32 %v5899_v33, %v8174_v59  ;;  %v6175_v29 = vadd.f32 %v5899_v33, %v8176_v2  ;;  %v8178_v43 = vld [vmem:[#allocation71_spill] sm:$0xff]  ;;  %v8180_v44 = vld [vmem:[#allocation74_spill] sm:$0xff] }
 0x2f2   :  { %8171 = vst [vmem:[#allocation59_spill] sm:$0xff] %v6163_v18  ;;  %8173 = vst [vmem:[#allocation62_spill] sm:$0xff] %v6167_v62  ;;  %v6179_v1 = vadd.f32 %v5899_v33, %v8178_v43  ;;  %v6183_v56 = vadd.f32 %v5899_v33, %v8180_v44  ;;  %v8182_v18 = vld [vmem:[#allocation69_spill] sm:$0xff]  ;;  %v8184_v62 = vld [vmem:[#allocation72_spill] sm:$0xff] }
 0x2f3   :  { %8175 = vst [vmem:[#allocation57_spill] sm:$0xff] %v6171_v16  ;;  %8177 = vst [vmem:[#allocation60_spill] sm:$0xff] %v6175_v29  ;;  %v6187_v27 = vadd.f32 %v5899_v33, %v8182_v18  ;;  %v6191_v59 = vadd.f32 %v5899_v33, %v8184_v62  ;;  %v8186_v16 = vld [vmem:[#allocation77_spill] sm:$0xff]  ;;  %v8188_v29 = vld [vmem:[#allocation80_spill] sm:$0xff] }
 0x2f4   :  { %8179 = vst [vmem:[#allocation65_spill] sm:$0xff] %v6179_v1  ;;  %8181 = vst [vmem:[#allocation68_spill] sm:$0xff] %v6183_v56  ;;  %v6195_v2 = vadd.f32 %v5899_v33, %v8186_v16  ;;  %v6199_v43 = vadd.f32 %v5899_v33, %v8188_v29  ;;  %v8190_v1 = vld [vmem:[#allocation75_spill] sm:$0xff]  ;;  %v8192_v56 = vld [vmem:[#allocation78_spill] sm:$0xff] }
 0x2f5   :  { %8183 = vst [vmem:[#allocation63_spill] sm:$0xff] %v6187_v27  ;;  %8185 = vst [vmem:[#allocation66_spill] sm:$0xff] %v6191_v59  ;;  %v6203_v44 = vadd.f32 %v5899_v33, %v8190_v1  ;;  %v6207_v18 = vadd.f32 %v5899_v33, %v8192_v56  ;;  %v8194_v27 = vld [vmem:[#allocation82_spill] sm:$0xff]  ;;  %v8196_v59 = vld [vmem:[#allocation85_spill] sm:$0xff] }
 0x2f6   :  { %8187 = vst [vmem:[#allocation71_spill] sm:$0xff] %v6195_v2  ;;  %8189 = vst [vmem:[#allocation74_spill] sm:$0xff] %v6199_v43  ;;  %v6211_v62 = vadd.f32 %v5899_v33, %v8194_v27  ;;  %v6215_v16 = vadd.f32 %v5899_v33, %v8196_v59  ;;  %v8198_v2 = vld [vmem:[#allocation81_spill] sm:$0xff]  ;;  %v8200_v43 = vld [vmem:[#allocation83_spill] sm:$0xff] }
 0x2f7   :  { %8191 = vst [vmem:[#allocation69_spill] sm:$0xff] %v6203_v44  ;;  %8193 = vst [vmem:[#allocation72_spill] sm:$0xff] %v6207_v18  ;;  %v6219_v29 = vadd.f32 %v5899_v33, %v8198_v2  ;;  %v6223_v1 = vadd.f32 %v5899_v33, %v8200_v43  ;;  %v8202_v44 = vld [vmem:[#allocation87_spill] sm:$0xff]  ;;  %v8204_v18 = vld [vmem:[#allocation90_spill] sm:$0xff] }
 0x2f8   :  { %8195 = vst [vmem:[#allocation77_spill] sm:$0xff] %v6211_v62  ;;  %8197 = vst [vmem:[#allocation80_spill] sm:$0xff] %v6215_v16  ;;  %v6227_v56 = vadd.f32 %v5899_v33, %v8202_v44  ;;  %v6231_v27 = vadd.f32 %v5899_v33, %v8204_v18  ;;  %v8206_v62 = vld [vmem:[#allocation86_spill] sm:$0xff]  ;;  %v8208_v16 = vld [vmem:[#allocation88_spill] sm:$0xff] }
 0x2f9   :  { %8199 = vst [vmem:[#allocation75_spill] sm:$0xff] %v6219_v29  ;;  %8201 = vst [vmem:[#allocation78_spill] sm:$0xff] %v6223_v1  ;;  %v6235_v59 = vadd.f32 %v5899_v33, %v8206_v62  ;;  %v6239_v2 = vadd.f32 %v5899_v33, %v8208_v16  ;;  %v8210_v29 = vld [vmem:[#allocation92_spill] sm:$0xff]  ;;  %v8212_v1 = vld [vmem:[#allocation95_spill] sm:$0xff] }
 0x2fa   :  { %8203 = vst [vmem:[#allocation82_spill] sm:$0xff] %v6227_v56  ;;  %8205 = vst [vmem:[#allocation85_spill] sm:$0xff] %v6231_v27  ;;  %v6243_v43 = vadd.f32 %v5899_v33, %v8210_v29  ;;  %v6247_v44 = vadd.f32 %v5899_v33, %v8212_v1  ;;  %v8214_v56 = vld [vmem:[#allocation91_spill] sm:$0xff]  ;;  %v8216_v27 = vld [vmem:[#allocation93_spill] sm:$0xff] }
 0x2fb   :  { %8207 = vst [vmem:[#allocation81_spill] sm:$0xff] %v6235_v59  ;;  %8209 = vst [vmem:[#allocation83_spill] sm:$0xff] %v6239_v2  ;;  %v6251_v18 = vadd.f32 %v5899_v33, %v8214_v56  ;;  %v6255_v62 = vadd.f32 %v5899_v33, %v8216_v27  ;;  %v8218_v59 = vld [vmem:[#allocation97_spill] sm:$0xff]  ;;  %v8220_v2 = vld [vmem:[#allocation100_spill] sm:$0xff] }
 0x2fc   :  { %8211 = vst [vmem:[#allocation87_spill] sm:$0xff] %v6243_v43  ;;  %8213 = vst [vmem:[#allocation90_spill] sm:$0xff] %v6247_v44  ;;  %v6259_v16 = vadd.f32 %v5899_v33, %v8218_v59  ;;  %v6263_v29 = vadd.f32 %v5899_v33, %v8220_v2  ;;  %v8222_v43 = vld [vmem:[#allocation96_spill] sm:$0xff]  ;;  %v8224_v44 = vld [vmem:[#allocation98_spill] sm:$0xff] }
 0x2fd   :  { %8215 = vst [vmem:[#allocation86_spill] sm:$0xff] %v6251_v18  ;;  %8217 = vst [vmem:[#allocation88_spill] sm:$0xff] %v6255_v62  ;;  %v6267_v1 = vadd.f32 %v5899_v33, %v8222_v43  ;;  %v6271_v56 = vadd.f32 %v5899_v33, %v8224_v44  ;;  %v8226_v18 = vld [vmem:[#allocation102_spill] sm:$0xff]  ;;  %v8228_v62 = vld [vmem:[#allocation105_spill] sm:$0xff]  ;;  %v6287_v43 = vadd.f32 %v5899_v33, %v5496_v63 }
 0x2fe   :  { %8219 = vst [vmem:[#allocation92_spill] sm:$0xff] %v6259_v16  ;;  %8221 = vst [vmem:[#allocation95_spill] sm:$0xff] %v6263_v29  ;;  %v6275_v27 = vadd.f32 %v5899_v33, %v8226_v18  ;;  %v6279_v59 = vadd.f32 %v5899_v33, %v8228_v62  ;;  %v8230_v16 = vld [vmem:[#allocation101_spill] sm:$0xff]  ;;  %v6291_v44 = vadd.f32 %v5899_v33, %v5500_v3 }
 0x2ff   :  { %8223 = vst [vmem:[#allocation91_spill] sm:$0xff] %v6267_v1  ;;  %8225 = vst [vmem:[#allocation93_spill] sm:$0xff] %v6271_v56  ;;  %v6283_v2 = vadd.f32 %v5899_v33, %v8230_v16  ;;  %v8234_v56 = vld [vmem:[#allocation103_spill] sm:$0xff]  ;;  %v6303_v16 = vadd.f32 %v5899_v33, %v5512_v8  ;;  %v6307_v63 = vadd.f32 %v5899_v33, %v5516_v49 }
 0x300   :  { %8227 = vst [vmem:[#allocation97_spill] sm:$0xff] %v6275_v27  ;;  %8229 = vst [vmem:[#allocation100_spill] sm:$0xff] %v6279_v59  ;;  %v6295_v18 = vadd.f32 %v5899_v33, %v8234_v56  ;;  %v8236_v27 = vld [vmem:[#allocation107_spill] sm:$0xff]  ;;  %v6323_v8 = vadd.f32 %v5899_v33, %v5532_v0 }
 0x301   :  { %8231 = vst [vmem:[#allocation96_spill] sm:$0xff] %v6283_v2  ;;  %8232 = vst [vmem:[#allocation98_spill] sm:$0xff] %v6287_v43  ;;  %v6299_v62 = vadd.f32 %v5899_v33, %v8236_v27  ;;  %v8240_v43 = vld [vmem:[#allocation110_spill] sm:$0xff]  ;;  %v6319_v27 = vadd.f32 %v5899_v33, %v5528_v30  ;;  %v6339_v30 = vadd.f32 %v5899_v33, %v5548_v47 }
 0x302   :  { %8233 = vst [vmem:[#allocation102_spill] sm:$0xff] %v6291_v44  ;;  %8235 = vst [vmem:[#allocation105_spill] sm:$0xff] %v6295_v18  ;;  %v6311_v3 = vadd.f32 %v5899_v33, %v8240_v43  ;;  %v8241_v44 = vld [vmem:[#allocation106_spill] sm:$0xff] }
 0x303   :  { %8237 = vst [vmem:[#allocation101_spill] sm:$0xff] %v6299_v62  ;;  %8238 = vst [vmem:[#allocation103_spill] sm:$0xff] %v6303_v16  ;;  %v6315_v56 = vadd.f32 %v5899_v33, %v8241_v44  ;;  %v8244_v16 = vld [vmem:[#allocation108_spill] sm:$0xff]  ;;  %v6335_v44 = vadd.f32 %v5899_v33, %v5544_v28  ;;  %v6355_v28 = vadd.f32 %v5899_v33, %v5564_v40 }
 0x304   :  { %8239 = vst [vmem:[#allocation107_spill] sm:$0xff] %v6307_v63  ;;  %8242 = vst [vmem:[#allocation110_spill] sm:$0xff] %v6319_v27  ;;  %v6327_v49 = vadd.f32 %v5899_v33, %v8244_v16  ;;  %v8245_v63 = vld [vmem:[#allocation113_spill] sm:$0xff]  ;;  %v8248_v27 = vld [vmem:[#allocation116_spill] sm:$0xff] }
 0x305   :  { %8243 = vst [vmem:[#allocation106_spill] sm:$0xff] %v6323_v8  ;;  %v6331_v43 = vadd.f32 %v5899_v33, %v8245_v63  ;;  %8246 = vst [vmem:[#allocation108_spill] sm:$0xff] %v6335_v44  ;;  %v6343_v0 = vadd.f32 %v5899_v33, %v8248_v27  ;;  %v8249_v8 = vld [vmem:[#allocation111_spill] sm:$0xff]  ;;  %v6351_v63 = vadd.f32 %v5899_v33, %v5560_v31  ;;  %v8252_v44 = vld [vmem:[#allocation114_spill] sm:$0xff] }
 0x306   :  { %8247 = vst [vmem:[#allocation113_spill] sm:$0xff] %v6339_v30  ;;  %v6347_v16 = vadd.f32 %v5899_v33, %v8249_v8  ;;  %8251 = vst [vmem:[#allocation111_spill] sm:$0xff] %v6355_v28  ;;  %v6359_v47 = vadd.f32 %v5899_v33, %v8252_v44  ;;  %v8253_v30 = vld [vmem:[#allocation118_spill] sm:$0xff]  ;;  %v6367_v8 = vadd.f32 %v5899_v33, %v5576_v12  ;;  %v8257_v28 = vld [vmem:[#allocation117_spill] sm:$0xff] }
 0x307   :  { %8250 = vst [vmem:[#allocation116_spill] sm:$0xff] %v6351_v63  ;;  %v6363_v27 = vadd.f32 %v5899_v33, %v8253_v30  ;;  %v6371_v31 = vadd.f32 %v5899_v33, %v5580_v61  ;;  %v8256_v63 = vld [vmem:[#allocation121_spill] sm:$0xff]  ;;  %v6379_v44 = vadd.f32 %v5899_v33, %v8257_v28  ;;  %v6383_v30 = vadd.f32 %v5899_v33, %v5592_v20 }
 0x308   :  { %8254 = vst [vmem:[#allocation114_spill] sm:$0xff] %v6367_v8  ;;  %v6375_v40 = vadd.f32 %v5899_v33, %v8256_v63  ;;  %v6387_v12 = vadd.f32 %v5899_v33, %v5596_v25  ;;  %v8260_v8 = vld [vmem:[#allocation119_spill] sm:$0xff]  ;;  %v6399_v28 = vadd.f32 %v5899_v33, %v5608_v22  ;;  %v6403_v20 = vadd.f32 %v5899_v33, %v5612_v21 }
 0x309   :  { %8255 = vst [vmem:[#allocation118_spill] sm:$0xff] %v6371_v31  ;;  %8258 = vst [vmem:[#allocation121_spill] sm:$0xff] %v6383_v30  ;;  %v6391_v61 = vadd.f32 %v5899_v33, %v8260_v8  ;;  %v8261_v31 = vld [vmem:[#allocation123_spill] sm:$0xff]  ;;  %v8265_v30 = vld [vmem:[#allocation125_spill] sm:$0xff]  ;;  %v6419_v22 = vadd.f32 %v5899_v33, %v5628_v52 }
 0x30a   :  { %8259 = vst [vmem:[#allocation117_spill] sm:$0xff] %v6387_v12  ;;  %v6395_v63 = vadd.f32 %v5899_v33, %v8261_v31  ;;  %8263 = vst [vmem:[#allocation123_spill] sm:$0xff] %v6399_v28  ;;  %v6407_v25 = vadd.f32 %v5899_v33, %v8265_v30  ;;  %v8267_v12 = vld [vmem:[#allocation37_spill] sm:$0xff]  ;;  %v6415_v31 = vadd.f32 %v5899_v33, %v5624_v35  ;;  %v8271_v28 = vld [vmem:[#allocation40_spill] sm:$0xff] }
 0x30b   :  { %8264 = vst [vmem:[#allocation158_spill] sm:$0xff] %v6403_v20  ;;  %v6411_v8 = vadd.f32 %v5899_v33, %v8267_v12  ;;  %8270 = vst [vmem:[#allocation160_spill] sm:$0xff] %v6419_v22  ;;  %v6423_v21 = vadd.f32 %v5899_v33, %v8271_v28  ;;  %v8273_v20 = vld [vmem:[#allocation43_spill] sm:$0xff]  ;;  %v6431_v12 = vadd.f32 %v5899_v33, %v5640_v54  ;;  %v8279_v22 = vld [vmem:[#allocation49_spill] sm:$0xff] }
 0x30c   :  { %8262 = vst [vmem:[#allocation119_spill] sm:$0xff] %v6395_v63  ;;  %8266 = vst [vmem:[#allocation125_spill] sm:$0xff] %v6407_v25  ;;  %v6427_v30 = vadd.f32 %v5899_v33, %v8273_v20  ;;  %v6435_v35 = vadd.f32 %v5899_v33, %v5644_v10  ;;  %v6443_v28 = vadd.f32 %v5899_v33, %v8279_v22  ;;  %v8322_v25 = vld [vmem:[#allocation128_spill] sm:$0xff]  ;;  %v8324_v63 = vld [vmem:[#allocation129_spill] sm:$0xff] }
 0x30d   :  { %8268 = vst [vmem:[#allocation37_spill] sm:$0xff] %v6411_v8  ;;  %8269 = vst [vmem:[#allocation159_spill] sm:$0xff] %v6415_v31  ;;  %v8277_v31 = vld [vmem:[#allocation46_spill] sm:$0xff]  ;;  %v6447_v20 = vadd.f32 %v5899_v33, %v5656_v13  ;;  %v6451_v54 = vadd.f32 %v5899_v33, %v5660_v51  ;;  %v6463_v22 = vadd.f32 %v5899_v33, %v5672_v26  ;;  %v8319_v8 = vld [vmem:[#allocation127_spill] sm:$0xff] }
 0x30e   :  { %8272 = vst [vmem:[#allocation40_spill] sm:$0xff] %v6423_v21  ;;  %8274 = vst [vmem:[#allocation43_spill] sm:$0xff] %v6427_v30  ;;  %v6439_v52 = vadd.f32 %v5899_v33, %v8277_v31  ;;  %v8315_v30 = vld [vmem:[#allocation124_spill] sm:$0xff]  ;;  %v8317_v21 = vld [vmem:[#allocation122_spill] sm:$0xff] }
 0x30f   :  { %8275 = vst [vmem:[#allocation161_spill] sm:$0xff] %v6431_v12  ;;  %8276 = vst [vmem:[#allocation162_spill] sm:$0xff] %v6435_v35  ;;  %v8283_v12 = vld [vmem:[#allocation52_spill] sm:$0xff]  ;;  %v8285_v35 = vld [vmem:[#allocation55_spill] sm:$0xff] }
 0x310   :  { %8278 = vst [vmem:[#allocation46_spill] sm:$0xff] %v6439_v52  ;;  %8280 = vst [vmem:[#allocation49_spill] sm:$0xff] %v6443_v28  ;;  %v6455_v10 = vadd.f32 %v5899_v33, %v8283_v12  ;;  %v6459_v31 = vadd.f32 %v5899_v33, %v8285_v35  ;;  %v8288_v28 = vld [vmem:[#allocation58_spill] sm:$0xff]  ;;  %v6479_v35 = vadd.f32 %v5899_v33, %v5688_v38  ;;  %v8314_v52 = vld [vmem:[#allocation120_spill] sm:$0xff] }
 0x311   :  { %8281 = vst [vmem:[#allocation163_spill] sm:$0xff] %v6447_v20  ;;  %8282 = vst [vmem:[#allocation164_spill] sm:$0xff] %v6451_v54  ;;  %v6467_v13 = vadd.f32 %v5899_v33, %v8288_v28  ;;  %v8290_v20 = vld [vmem:[#allocation61_spill] sm:$0xff]  ;;  %v8292_v54 = vld [vmem:[#allocation64_spill] sm:$0xff]  ;;  %v6499_v38 = vadd.f32 %v5899_v33, %v5708_v58 }
 0x312   :  { %8284 = vst [vmem:[#allocation52_spill] sm:$0xff] %v6455_v10  ;;  %8286 = vst [vmem:[#allocation55_spill] sm:$0xff] %v6459_v31  ;;  %v6471_v51 = vadd.f32 %v5899_v33, %v8290_v20  ;;  %v6475_v12 = vadd.f32 %v5899_v33, %v8292_v54  ;;  %v8295_v31 = vld [vmem:[#allocation67_spill] sm:$0xff]  ;;  %v6495_v54 = vadd.f32 %v5899_v33, %v5704_v24  ;;  %v8313_v10 = vld [vmem:[#allocation112_spill] sm:$0xff] }
 0x313   :  { %8287 = vst [vmem:[#allocation165_spill] sm:$0xff] %v6463_v22  ;;  %8289 = vst [vmem:[#allocation58_spill] sm:$0xff] %v6467_v13  ;;  %v6483_v26 = vadd.f32 %v5899_v33, %v8295_v31  ;;  %v8297_v22 = vld [vmem:[#allocation70_spill] sm:$0xff]  ;;  %v8299_v13 = vld [vmem:[#allocation73_spill] sm:$0xff]  ;;  %v6515_v24 = vadd.f32 %v5899_v33, %v5724_v14 }
 0x314   :  { %8291 = vst [vmem:[#allocation61_spill] sm:$0xff] %v6471_v51  ;;  %8293 = vst [vmem:[#allocation64_spill] sm:$0xff] %v6475_v12  ;;  %v6487_v28 = vadd.f32 %v5899_v33, %v8297_v22  ;;  %v6491_v20 = vadd.f32 %v5899_v33, %v8299_v13  ;;  %v6511_v13 = vadd.f32 %v5899_v33, %v5720_v45  ;;  %v8311_v12 = vld [vmem:[#allocation109_spill] sm:$0xff]  ;;  %v8312_v51 = vld [vmem:[#allocation115_spill] sm:$0xff] }
 0x315   :  { %8294 = vst [vmem:[#allocation166_spill] sm:$0xff] %v6479_v35  ;;  %8296 = vst [vmem:[#allocation67_spill] sm:$0xff] %v6483_v26  ;;  %v8303_v35 = vld [vmem:[#allocation76_spill] sm:$0xff]  ;;  %v8305_v26 = vld [vmem:[#allocation79_spill] sm:$0xff]  ;;  %v6531_v45 = vadd.f32 %v5899_v33, %v5740_v32 }
 0x316   :  { %8298 = vst [vmem:[#allocation70_spill] sm:$0xff] %v6487_v28  ;;  %8300 = vst [vmem:[#allocation73_spill] sm:$0xff] %v6491_v20  ;;  %v6503_v31 = vadd.f32 %v5899_v33, %v8303_v35  ;;  %v6507_v22 = vadd.f32 %v5899_v33, %v8305_v26  ;;  %v6527_v26 = vadd.f32 %v5899_v33, %v5736_v60  ;;  %v8309_v20 = vld [vmem:[#allocation99_spill] sm:$0xff]  ;;  %v8310_v28 = vld [vmem:[#allocation104_spill] sm:$0xff] }
 0x317   :  { %8301 = vst [vmem:[#allocation167_spill] sm:$0xff] %v6495_v54  ;;  %8302 = vst [vmem:[#allocation168_spill] sm:$0xff] %v6499_v38  ;;  %v8306_v54 = vld [vmem:[#allocation84_spill] sm:$0xff]  ;;  %v8307_v38 = vld [vmem:[#allocation89_spill] sm:$0xff]  ;;  %v6547_v60 = vadd.f32 %v5899_v33, %v5756_v48  ;;  %v6551_v32 = vadd.f32 %v5899_v33, %v8310_v28  ;;  %v6567_v48 = vadd.f32 %v5899_v33, %v8312_v51 }
 0x318   :  { %8304 = vst [vmem:[#allocation76_spill] sm:$0xff] %v6503_v31  ;;  %v6519_v58 = vadd.f32 %v5899_v33, %v8306_v54  ;;  %v6523_v35 = vadd.f32 %v5899_v33, %v8307_v38  ;;  %v8308_v31 = vld [vmem:[#allocation94_spill] sm:$0xff]  ;;  %v6539_v54 = vadd.f32 %v5899_v33, %v8309_v20  ;;  %v6543_v38 = vadd.f32 %v5899_v33, %v5752_v15  ;;  %v8446_v59 = vld [vmem:[#allocation108_spill] sm:$0xff] }
 0x319   :  { %v6535_v14 = vadd.f32 %v5899_v33, %v8308_v31  ;;  %v6555_v31 = vadd.f32 %v5899_v33, %v8311_v12  ;;  %v6559_v20 = vadd.f32 %v5899_v33, %v5768_v41  ;;  %v6563_v15 = vadd.f32 %v5899_v33, %v5772_v9  ;;  %v8444_v29 = vld [vmem:[#allocation110_spill] sm:$0xff] }
 0x31a   :  { %v6571_v28 = vadd.f32 %v5899_v33, %v8313_v10  ;;  %v6575_v12 = vadd.f32 %v5899_v33, %v5784_v36  ;;  %v6579_v41 = vadd.f32 %v5899_v33, %v5788_v7  ;;  %v6583_v9 = vadd.f32 %v5899_v33, %v8314_v52  ;;  %v8445_v1 = vld [vmem:[#allocation106_spill] sm:$0xff] }
 0x31b   :  { %v6587_v51 = vadd.f32 %v5899_v33, %v8315_v30  ;;  %v6591_v10 = vadd.f32 %v5899_v33, %v5800_v4  ;;  %v6595_v36 = vadd.f32 %v5899_v33, %v5804_v37  ;;  %v6599_v7 = vadd.f32 %v5899_v33, %v8317_v21 }
 0x31c   :  { %v6603_v52 = vadd.f32 %v5899_v33, %v8319_v8  ;;  %v6607_v30 = vadd.f32 %v5899_v33, %v5816_v53  ;;  %v6611_v4 = vadd.f32 %v5899_v33, %v8322_v25  ;;  %v6615_v37 = vadd.f32 %v5899_v33, %v8324_v63 }
 0x31d   :  { %8316 = vst [vmem:[#allocation79_spill] sm:$0xff] %v6595_v36  ;;  %8318 = vst [vmem:[#allocation84_spill] sm:$0xff] %v6599_v7  ;;  %v8326_v36 = vld [vmem:[#allocation130_spill] sm:$0xff]  ;;  %v8328_v7 = vld [vmem:[#allocation131_spill] sm:$0xff]  ;;  %v2900_v17 = vmax.f32 %v8444_v29, %v6515_v24  ;;  %v2901_v18 = vmax.f32 %v8445_v1, %v6519_v58  ;;  %v2907_v29 = vmax.f32 %v6347_v16, %v6543_v38 }
 0x31e   :  { %8320 = vst [vmem:[#allocation89_spill] sm:$0xff] %v6603_v52  ;;  %8321 = vst [vmem:[#allocation94_spill] sm:$0xff] %v6607_v30  ;;  %v6619_v21 = vadd.f32 %v5899_v33, %v8326_v36  ;;  %v6623_v8 = vadd.f32 %v5899_v33, %v8328_v7  ;;  %v8330_v52 = vld [vmem:[#allocation132_spill] sm:$0xff]  ;;  %v8332_v30 = vld [vmem:[#allocation133_spill] sm:$0xff]  ;;  %v2914_v16 = vmax.f32 %v6375_v40, %v6571_v28 }
 0x31f   :  { %8323 = vst [vmem:[#allocation99_spill] sm:$0xff] %v6611_v4  ;;  %8325 = vst [vmem:[#allocation104_spill] sm:$0xff] %v6615_v37  ;;  %v6627_v53 = vadd.f32 %v5899_v33, %v8330_v52  ;;  %v6631_v25 = vadd.f32 %v5899_v33, %v8332_v30  ;;  %v8334_v4 = vld [vmem:[#allocation134_spill] sm:$0xff]  ;;  %v8336_v37 = vld [vmem:[#allocation135_spill] sm:$0xff] }
 0x320   :  { %8327 = vst [vmem:[#allocation109_spill] sm:$0xff] %v6619_v21  ;;  %8329 = vst [vmem:[#allocation115_spill] sm:$0xff] %v6623_v8  ;;  %v6635_v63 = vadd.f32 %v5899_v33, %v8334_v4  ;;  %v6639_v36 = vadd.f32 %v5899_v33, %v8336_v37  ;;  %v8338_v21 = vld [vmem:[#allocation136_spill] sm:$0xff]  ;;  %v8340_v8 = vld [vmem:[#allocation137_spill] sm:$0xff] }
 0x321   :  { %8331 = vst [vmem:[#allocation112_spill] sm:$0xff] %v6627_v53  ;;  %8333 = vst [vmem:[#allocation120_spill] sm:$0xff] %v6631_v25  ;;  %v6643_v7 = vadd.f32 %v5899_v33, %v8338_v21  ;;  %v6647_v52 = vadd.f32 %v5899_v33, %v8340_v8  ;;  %v8342_v53 = vld [vmem:[#allocation138_spill] sm:$0xff]  ;;  %v8344_v25 = vld [vmem:[#allocation139_spill] sm:$0xff] }
 0x322   :  { %8335 = vst [vmem:[#allocation124_spill] sm:$0xff] %v6635_v63  ;;  %8337 = vst [vmem:[#allocation122_spill] sm:$0xff] %v6639_v36  ;;  %v6651_v30 = vadd.f32 %v5899_v33, %v8342_v53  ;;  %v6655_v4 = vadd.f32 %v5899_v33, %v8344_v25  ;;  %v8346_v63 = vld [vmem:[#allocation126_spill] sm:$0xff]  ;;  %v8347_v36 = vld [vmem:[#allocation140_spill] sm:$0xff] }
 0x323   :  { %8339 = vst [vmem:[#allocation127_spill] sm:$0xff] %v6643_v7  ;;  %8341 = vst [vmem:[#allocation128_spill] sm:$0xff] %v6647_v52  ;;  %v6659_v37 = vadd.f32 %v5899_v33, %v8346_v63  ;;  %v6663_v21 = vadd.f32 %v5899_v33, %v8347_v36  ;;  %v8348_v7 = vld [vmem:[#allocation142_spill] sm:$0xff]  ;;  %v8349_v52 = vld [vmem:[#allocation141_spill] sm:$0xff]  ;;  %v6683_v36 = vadd.f32 %v5899_v33, %v5892_v57 }
 0x324   :  { %8343 = vst [vmem:[#allocation129_spill] sm:$0xff] %v6651_v30  ;;  %8345 = vst [vmem:[#allocation130_spill] sm:$0xff] %v6655_v4  ;;  %v6667_v8 = vadd.f32 %v5899_v33, %v8348_v7  ;;  %v6671_v53 = vadd.f32 %v5899_v33, %v8349_v52  ;;  %v8351_v30 = vld [vmem:[#allocation144_spill] sm:$0xff]  ;;  %v8353_v4 = vld [vmem:[#allocation146_spill] sm:$0xff]  ;;  %v6687_v7 = vadd.f32 %v5899_v33, %v5903_v19 }
 0x325   :  { %v6675_v25 = vadd.f32 %v5899_v33, %v8351_v30  ;;  %v6679_v63 = vadd.f32 %v5899_v33, %v8353_v4  ;;  %8355 = vst [vmem:[#allocation134_spill] sm:$0xff] %v6683_v36  ;;  %v6691_v52 = vadd.f32 %v5899_v33, %v5907_v55  ;;  %v6695_v30 = vadd.f32 %v5899_v33, %v5911_v11  ;;  %v8448_v1 = vld [vmem:[#allocation116_spill] sm:$0xff]  ;;  %v8450_v58 = vld [vmem:[#allocation114_spill] sm:$0xff]  ;;  %v8506_v57 = vld [vmem:[#allocation143_spill] sm:$0xff] }
 0x326   :  { %8350 = vst [vmem:[#allocation131_spill] sm:$0xff] %v6671_v53  ;;  %8356 = vst [vmem:[#allocation135_spill] sm:$0xff] %v6687_v7  ;;  %v6699_v4 = vadd.f32 %v5899_v33, %v5915_v46  ;;  %v2899_v46 = vmax.f32 %v6315_v56, %v6511_v13  ;;  %v2902_v19 = vmax.f32 %v6327_v49, %v6523_v35  ;;  %v8449_v49 = vld [vmem:[#allocation111_spill] sm:$0xff]  ;;  %v8458_v40 = vld [vmem:[#allocation158_spill] sm:$0xff] }
 0x327   :  { %8352 = vst [vmem:[#allocation132_spill] sm:$0xff] %v6675_v25  ;;  %8354 = vst [vmem:[#allocation133_spill] sm:$0xff] %v6679_v63  ;;  %v2898_v63 = vmax.f32 %v6311_v3, %v6507_v22  ;;  %v2903_v55 = vmax.f32 %v6331_v43, %v6527_v26  ;;  %v8447_v3 = vld [vmem:[#allocation113_spill] sm:$0xff]  ;;  %v2906_v56 = vmax.f32 %v6343_v0, %v6539_v54  ;;  %v8451_v0 = vld [vmem:[#allocation118_spill] sm:$0xff] }
 0x328   :  { %8357 = vst [vmem:[#allocation136_spill] sm:$0xff] %v6691_v52  ;;  %8358 = vst [vmem:[#allocation137_spill] sm:$0xff] %v6695_v30  ;;  %v2904_v52 = vmax.f32 %v8446_v59, %v6531_v45  ;;  %v2905_v22 = vmax.f32 %v8447_v3, %v6535_v14  ;;  %v2908_v13 = vmax.f32 %v8448_v1, %v6547_v60  ;;  %v8452_v14 = vld [vmem:[#allocation121_spill] sm:$0xff]  ;;  %v8454_v60 = vld [vmem:[#allocation119_spill] sm:$0xff] }
 0x329   :  { %8359 = vst [vmem:[#allocation138_spill] sm:$0xff] %v6699_v4  ;;  %v2909_v24 = vmax.f32 %v8449_v49, %v6551_v32  ;;  %v2910_v43 = vmax.f32 %v6359_v47, %v6555_v31  ;;  %v2911_v59 = vmax.f32 %v6363_v27, %v6559_v20  ;;  %v2912_v35 = vmax.f32 %v8450_v58, %v6563_v15  ;;  %v8453_v47 = vld [vmem:[#allocation117_spill] sm:$0xff]  ;;  %v8455_v31 = vld [vmem:[#allocation79_spill] sm:$0xff]  ;;  %v8461_v1 = vld [vmem:[#allocation94_spill] sm:$0xff] }
 0x32a   :  { %v2913_v26 = vmax.f32 %v8451_v0, %v6567_v48  ;;  %v2915_v45 = vmax.f32 %v6379_v44, %v6575_v12  ;;  %v2916_v54 = vmax.f32 %v8452_v14, %v6579_v41  ;;  %v2917_v38 = vmax.f32 %v8453_v47, %v6583_v9  ;;  %v8456_v20 = vld [vmem:[#allocation123_spill] sm:$0xff]  ;;  %v8457_v48 = vld [vmem:[#allocation84_spill] sm:$0xff]  ;;  %v8459_v3 = vld [vmem:[#allocation89_spill] sm:$0xff] }
 0x32b   :  { %v2918_v27 = vmax.f32 %v6391_v61, %v6587_v51  ;;  %v2919_v32 = vmax.f32 %v8454_v60, %v6591_v10  ;;  %v2920_v15 = vmax.f32 %v8456_v20, %v8455_v31  ;;  %v2921_v28 = vmax.f32 %v8458_v40, %v8457_v48  ;;  %v8460_v44 = vld [vmem:[#allocation125_spill] sm:$0xff]  ;;  %v8463_v58 = vld [vmem:[#allocation99_spill] sm:$0xff]  ;;  %v8465_v14 = vld [vmem:[#allocation104_spill] sm:$0xff] }
 0x32c   :  { %v2922_v12 = vmax.f32 %v8460_v44, %v8459_v3  ;;  %v8462_v41 = vld [vmem:[#allocation37_spill] sm:$0xff]  ;;  %v8464_v9 = vld [vmem:[#allocation159_spill] sm:$0xff]  ;;  %v8466_v61 = vld [vmem:[#allocation160_spill] sm:$0xff] }
 0x32d   :  { %v2923_v49 = vmax.f32 %v8462_v41, %v8461_v1  ;;  %v2924_v0 = vmax.f32 %v8464_v9, %v8463_v58  ;;  %v2925_v51 = vmax.f32 %v8466_v61, %v8465_v14  ;;  %v8467_v47 = vld [vmem:[#allocation109_spill] sm:$0xff]  ;;  %v8468_v10 = vld [vmem:[#allocation40_spill] sm:$0xff]  ;;  %v8469_v7 = vld [vmem:[#allocation115_spill] sm:$0xff] }
 0x32e   :  { %v2926_v60 = vmax.f32 %v8468_v10, %v8467_v47  ;;  %v8470_v31 = vld [vmem:[#allocation43_spill] sm:$0xff]  ;;  %v8471_v6 = vld [vmem:[#allocation112_spill] sm:$0xff]  ;;  %v8472_v48 = vld [vmem:[#allocation161_spill] sm:$0xff] }
 0x32f   :  { %v2927_v20 = vmax.f32 %v8470_v31, %v8469_v7  ;;  %v2928_v40 = vmax.f32 %v8472_v48, %v8471_v6  ;;  %v8473_v50 = vld [vmem:[#allocation120_spill] sm:$0xff]  ;;  %v8474_v3 = vld [vmem:[#allocation162_spill] sm:$0xff]  ;;  %v8478_v58 = vld [vmem:[#allocation49_spill] sm:$0xff] }
 0x330   :  { %v2929_v44 = vmax.f32 %v8474_v3, %v8473_v50  ;;  %v8475_v62 = vld [vmem:[#allocation124_spill] sm:$0xff]  ;;  %v8476_v1 = vld [vmem:[#allocation46_spill] sm:$0xff]  ;;  %v8479_v34 = vld [vmem:[#allocation127_spill] sm:$0xff] }
 0x331   :  { %v2930_v41 = vmax.f32 %v8476_v1, %v8475_v62  ;;  %v8477_v23 = vld [vmem:[#allocation122_spill] sm:$0xff]  ;;  %v8480_v14 = vld [vmem:[#allocation163_spill] sm:$0xff]  ;;  %v8481_v42 = vld [vmem:[#allocation128_spill] sm:$0xff] }
 0x332   :  { %v2931_v9 = vmax.f32 %v8478_v58, %v8477_v23  ;;  %v2932_v61 = vmax.f32 %v8480_v14, %v8479_v34  ;;  %v8482_v47 = vld [vmem:[#allocation164_spill] sm:$0xff]  ;;  %v8483_v4 = vld [vmem:[#allocation129_spill] sm:$0xff]  ;;  %v8485_v53 = vld [vmem:[#allocation130_spill] sm:$0xff] }
 0x333   :  { %v2933_v10 = vmax.f32 %v8482_v47, %v8481_v42  ;;  %v8484_v7 = vld [vmem:[#allocation52_spill] sm:$0xff]  ;;  %v8486_v6 = vld [vmem:[#allocation55_spill] sm:$0xff]  ;;  %v8487_v50 = vld [vmem:[#allocation165_spill] sm:$0xff] }
 0x334   :  { %v2934_v31 = vmax.f32 %v8484_v7, %v8483_v4  ;;  %v2935_v48 = vmax.f32 %v8486_v6, %v8485_v53  ;;  %v2936_v3 = vmax.f32 %v8487_v50, %v6659_v37  ;;  %v8488_v62 = vld [vmem:[#allocation58_spill] sm:$0xff]  ;;  %v8489_v23 = vld [vmem:[#allocation61_spill] sm:$0xff]  ;;  %v8490_v2 = vld [vmem:[#allocation131_spill] sm:$0xff] }
 0x335   :  { %v2937_v1 = vmax.f32 %v8488_v62, %v6663_v21  ;;  %v2938_v58 = vmax.f32 %v8489_v23, %v6667_v8  ;;  %v8491_v34 = vld [vmem:[#allocation64_spill] sm:$0xff]  ;;  %v8493_v42 = vld [vmem:[#allocation166_spill] sm:$0xff]  ;;  %v8494_v30 = vld [vmem:[#allocation133_spill] sm:$0xff] }
 0x336   :  { %v2939_v14 = vmax.f32 %v8491_v34, %v8490_v2  ;;  %v8492_v33 = vld [vmem:[#allocation132_spill] sm:$0xff]  ;;  %v8495_v4 = vld [vmem:[#allocation67_spill] sm:$0xff]  ;;  %v8496_v5 = vld [vmem:[#allocation134_spill] sm:$0xff] }
 0x337   :  { %v2940_v47 = vmax.f32 %v8493_v42, %v8492_v33  ;;  %v2941_v7 = vmax.f32 %v8495_v4, %v8494_v30  ;;  %v8497_v53 = vld [vmem:[#allocation70_spill] sm:$0xff]  ;;  %v8498_v39 = vld [vmem:[#allocation135_spill] sm:$0xff]  ;;  %v8499_v37 = vld [vmem:[#allocation73_spill] sm:$0xff] }
 0x338   :  { %v2942_v6 = vmax.f32 %v8497_v53, %v8496_v5  ;;  %v2943_v50 = vmax.f32 %v8499_v37, %v8498_v39  ;;  %v8500_v25 = vld [vmem:[#allocation136_spill] sm:$0xff]  ;;  %v8501_v21 = vld [vmem:[#allocation167_spill] sm:$0xff]  ;;  %v8502_v11 = vld [vmem:[#allocation137_spill] sm:$0xff] }
 0x339   :  { %v2944_v62 = vmax.f32 %v8501_v21, %v8500_v25  ;;  %v8503_v8 = vld [vmem:[#allocation168_spill] sm:$0xff]  ;;  %v8504_v36 = vld [vmem:[#allocation138_spill] sm:$0xff]  ;;  %v8507_v33 = vld [vmem:[#allocation41_spill] sm:$0xff] }
 0x33a   :  { %v2945_v23 = vmax.f32 %v8503_v8, %v8502_v11  ;;  %v8505_v2 = vld [vmem:[#allocation76_spill] sm:$0xff]  ;;  %v8508_v42 = vmax.f32 %v8506_v57, %v8507_v33  ;;  %v8509_v30 = vld [vmem:[#allocation145_spill] sm:$0xff]  ;;  %v8514_v21 = vld [vmem:[#allocation39_spill] sm:$0xff] }
 0x33b   :  { %v2946_v34 = vmax.f32 %v8505_v2, %v8504_v36  ;;  %v8510_v5 = vld [vmem:[#allocation44_spill] sm:$0xff]  ;;  %v8517_v11 = vld [vmem:[#allocation150_spill] sm:$0xff]  ;;  %v8521_v57 = vld [vmem:[#allocation147_spill] sm:$0xff] }
 0x33c   :  { %v2947_v4 = vmax.f32 %v8508_v42, %v2898_v63  ;;  %v8511_v53 = vmax.f32 %v8509_v30, %v8510_v5  ;;  %v8513_v39 = vld [vmem:[#allocation148_spill] sm:$0xff]  ;;  %v8518_v2 = vld [vmem:[#allocation42_spill] sm:$0xff]  ;;  %v8522_v42 = vld [vmem:[#allocation47_spill] sm:$0xff] }
 0x33d   :  { %v8515_v25 = vmax.f32 %v8513_v39, %v8514_v21  ;;  %v8519_v36 = vmax.f32 %v8517_v11, %v8518_v2  ;;  %v8523_v63 = vmax.f32 %v8521_v57, %v8522_v42  ;;  %v8524_v30 = vld [vmem:[#allocation149_spill] sm:$0xff]  ;;  %v8527_v21 = vld [vmem:[#allocation152_spill] sm:$0xff] }
 0x33e   :  { %v6903_v37 = vmax.f32 %v8511_v53, %v2899_v46  ;;  %v8525_v46 = vld [vmem:[#allocation50_spill] sm:$0xff]  ;;  %v8528_v39 = vld [vmem:[#allocation45_spill] sm:$0xff]  ;;  %v8531_v2 = vld [vmem:[#allocation48_spill] sm:$0xff] }
 0x33f   :  { %v6908_v8 = vmax.f32 %v8515_v25, %v2900_v17  ;;  %v6913_v33 = vmax.f32 %v8519_v36, %v2901_v18  ;;  %v6918_v5 = vmax.f32 %v8523_v63, %v2902_v19  ;;  %v8526_v53 = vmax.f32 %v8524_v30, %v8525_v46  ;;  %v8533_v36 = vld [vmem:[#allocation151_spill] sm:$0xff]  ;;  %v8536_v42 = vld [vmem:[#allocation153_spill] sm:$0xff]  ;;  %v8537_v63 = vld [vmem:[#allocation56_spill] sm:$0xff] }
 0x340   :  { %8512 = vst [vmem:[#allocation139_spill] sm:$0xff] %v6903_v37  ;;  %v8529_v17 = vmax.f32 %v8527_v21, %v8528_v39  ;;  %v8538_v30 = vmax.f32 %v8536_v42, %v8537_v63  ;;  %v8539_v46 = vld [vmem:[#allocation156_spill] sm:$0xff]  ;;  %v8542_v39 = vld [vmem:[#allocation157_spill] sm:$0xff] }
 0x341   :  { %8516 = vst [vmem:[#allocation126_spill] sm:$0xff] %v6908_v8  ;;  %8520 = vst [vmem:[#allocation140_spill] sm:$0xff] %v6913_v33  ;;  %v6923_v37 = vmax.f32 %v8526_v53, %v2903_v55  ;;  %v8530_v8 = vld [vmem:[#allocation154_spill] sm:$0xff]  ;;  %v8534_v33 = vld [vmem:[#allocation53_spill] sm:$0xff] }
 0x342   :  { %v6928_v25 = vmax.f32 %v8529_v17, %v2904_v52  ;;  %v8532_v11 = vmax.f32 %v8530_v8, %v8531_v2  ;;  %v8535_v57 = vmax.f32 %v8533_v36, %v8534_v33  ;;  %v6943_v55 = vmax.f32 %v8538_v30, %v2907_v29  ;;  %v8540_v53 = vld [vmem:[#allocation51_spill] sm:$0xff]  ;;  %v8543_v17 = vld [vmem:[#allocation54_spill] sm:$0xff]  ;;  %v8551_v63 = vld [vmem:[#allocation5_spill] sm:$0xff] }
 0x343   :  { %v8541_v21 = vmax.f32 %v8539_v46, %v8540_v53  ;;  %v8544_v8 = vmax.f32 %v8542_v39, %v8543_v17  ;;  %v8545_v2 = vld [vmem:[#allocation155_spill] sm:$0xff]  ;;  %v8552_v30 = vld [vmem:[#allocation57_spill] sm:$0xff]  ;;  %v8554_v53 = vld [vmem:[#allocation2_spill] sm:$0xff] }
 0x344   :  { %v6933_v18 = vmax.f32 %v8532_v11, %v2905_v22  ;;  %v6938_v19 = vmax.f32 %v8535_v57, %v2906_v56  ;;  %v8546_v11 = vld [vmem:[#allocation59_spill] sm:$0xff]  ;;  %v8549_v57 = vld [vmem:[#allocation62_spill] sm:$0xff]  ;;  %v8553_v46 = vmax.f32 %v8551_v63, %v8552_v30  ;;  %v8557_v17 = vld [vmem:[#allocation4_spill] sm:$0xff] }
 0x345   :  { %v6948_v52 = vmax.f32 %v8541_v21, %v2908_v13  ;;  %v6953_v22 = vmax.f32 %v8544_v8, %v2909_v24  ;;  %v8547_v33 = vmax.f32 %v8545_v2, %v8546_v11  ;;  %v8548_v36 = vld [vmem:[#allocation3_spill] sm:$0xff]  ;;  %v8555_v21 = vld [vmem:[#allocation60_spill] sm:$0xff]  ;;  %v8558_v8 = vld [vmem:[#allocation65_spill] sm:$0xff] }
 0x346   :  { %v8550_v42 = vmax.f32 %v8548_v36, %v8549_v57  ;;  %v6968_v13 = vmax.f32 %v8553_v46, %v2912_v35  ;;  %v8556_v39 = vmax.f32 %v8554_v53, %v8555_v21  ;;  %v8559_v2 = vmax.f32 %v8557_v17, %v8558_v8  ;;  %v8560_v11 = vld [vmem:[#allocation7_spill] sm:$0xff]  ;;  %v8563_v57 = vld [vmem:[#allocation9_spill] sm:$0xff]  ;;  %v8566_v30 = vld [vmem:[#allocation6_spill] sm:$0xff] }
 0x347   :  { %v6958_v56 = vmax.f32 %v8547_v33, %v2910_v43  ;;  %v8561_v33 = vld [vmem:[#allocation68_spill] sm:$0xff]  ;;  %v8567_v46 = vld [vmem:[#allocation66_spill] sm:$0xff]  ;;  %v8572_v8 = vld [vmem:[#allocation11_spill] sm:$0xff] }
 0x348   :  { %v6963_v29 = vmax.f32 %v8550_v42, %v2911_v59  ;;  %v6973_v24 = vmax.f32 %v8556_v39, %v2913_v26  ;;  %v6978_v43 = vmax.f32 %v8559_v2, %v2914_v16  ;;  %v8562_v36 = vmax.f32 %v8560_v11, %v8561_v33  ;;  %v8564_v42 = vld [vmem:[#allocation63_spill] sm:$0xff]  ;;  %v8569_v21 = vld [vmem:[#allocation8_spill] sm:$0xff]  ;;  %v8573_v2 = vld [vmem:[#allocation74_spill] sm:$0xff] }
 0x349   :  { %v8565_v63 = vmax.f32 %v8563_v57, %v8564_v42  ;;  %v8568_v53 = vmax.f32 %v8566_v30, %v8567_v46  ;;  %v8570_v39 = vld [vmem:[#allocation71_spill] sm:$0xff]  ;;  %v8574_v11 = vmax.f32 %v8572_v8, %v8573_v2  ;;  %v8575_v33 = vld [vmem:[#allocation13_spill] sm:$0xff]  ;;  %v8578_v42 = vld [vmem:[#allocation10_spill] sm:$0xff] }
 0x34a   :  { %v6983_v59 = vmax.f32 %v8562_v36, %v2915_v45  ;;  %v8571_v17 = vmax.f32 %v8569_v21, %v8570_v39  ;;  %v8576_v36 = vld [vmem:[#allocation69_spill] sm:$0xff]  ;;  %v8581_v46 = vld [vmem:[#allocation12_spill] sm:$0xff]  ;;  %v8584_v39 = vld [vmem:[#allocation15_spill] sm:$0xff] }
 0x34b   :  { %v6988_v35 = vmax.f32 %v8565_v63, %v2916_v54  ;;  %v6993_v26 = vmax.f32 %v8568_v53, %v2917_v38  ;;  %v7003_v45 = vmax.f32 %v8574_v11, %v2919_v32  ;;  %v8577_v57 = vmax.f32 %v8575_v33, %v8576_v36  ;;  %v8579_v63 = vld [vmem:[#allocation72_spill] sm:$0xff]  ;;  %v8582_v53 = vld [vmem:[#allocation77_spill] sm:$0xff]  ;;  %v8588_v11 = vld [vmem:[#allocation75_spill] sm:$0xff] }
 0x34c   :  { %v6998_v16 = vmax.f32 %v8571_v17, %v2918_v27  ;;  %v8580_v30 = vmax.f32 %v8578_v42, %v8579_v63  ;;  %v8583_v21 = vmax.f32 %v8581_v46, %v8582_v53  ;;  %v8585_v17 = vld [vmem:[#allocation80_spill] sm:$0xff]  ;;  %v8587_v2 = vld [vmem:[#allocation17_spill] sm:$0xff]  ;;  %v8590_v36 = vld [vmem:[#allocation14_spill] sm:$0xff] }
 0x34d   :  { %v7008_v54 = vmax.f32 %v8577_v57, %v2920_v15  ;;  %v8586_v8 = vmax.f32 %v8584_v39, %v8585_v17  ;;  %v8589_v33 = vmax.f32 %v8587_v2, %v8588_v11  ;;  %v8591_v57 = vld [vmem:[#allocation78_spill] sm:$0xff]  ;;  %v8593_v63 = vld [vmem:[#allocation16_spill] sm:$0xff]  ;;  %v8596_v53 = vld [vmem:[#allocation19_spill] sm:$0xff] }
 0x34e   :  { %v7013_v38 = vmax.f32 %v8580_v30, %v2921_v28  ;;  %v7018_v27 = vmax.f32 %v8583_v21, %v2922_v12  ;;  %v8592_v42 = vmax.f32 %v8590_v36, %v8591_v57  ;;  %v8594_v30 = vld [vmem:[#allocation82_spill] sm:$0xff]  ;;  %v8597_v21 = vld [vmem:[#allocation85_spill] sm:$0xff]  ;;  %v8605_v57 = vld [vmem:[#allocation20_spill] sm:$0xff] }
 0x34f   :  { %v7023_v32 = vmax.f32 %v8586_v8, %v2923_v49  ;;  %v7028_v15 = vmax.f32 %v8589_v33, %v2924_v0  ;;  %v8595_v46 = vmax.f32 %v8593_v63, %v8594_v30  ;;  %v8598_v39 = vmax.f32 %v8596_v53, %v8597_v21  ;;  %v8599_v17 = vld [vmem:[#allocation21_spill] sm:$0xff]  ;;  %v8602_v11 = vld [vmem:[#allocation18_spill] sm:$0xff]  ;;  %v8603_v33 = vld [vmem:[#allocation83_spill] sm:$0xff] }
 0x350   :  { %v7033_v28 = vmax.f32 %v8592_v42, %v2925_v51  ;;  %v8600_v8 = vld [vmem:[#allocation81_spill] sm:$0xff]  ;;  %v8604_v36 = vmax.f32 %v8602_v11, %v8603_v33  ;;  %v8606_v42 = vld [vmem:[#allocation87_spill] sm:$0xff]  ;;  %v8617_v33 = vld [vmem:[#allocation24_spill] sm:$0xff] }
 0x351   :  { %v7038_v12 = vmax.f32 %v8595_v46, %v2926_v60  ;;  %v7043_v49 = vmax.f32 %v8598_v39, %v2927_v20  ;;  %v8601_v2 = vmax.f32 %v8599_v17, %v8600_v8  ;;  %v8607_v63 = vmax.f32 %v8605_v57, %v8606_v42  ;;  %v8608_v30 = vld [vmem:[#allocation23_spill] sm:$0xff]  ;;  %v8609_v46 = vld [vmem:[#allocation90_spill] sm:$0xff]  ;;  %v8611_v21 = vld [vmem:[#allocation25_spill] sm:$0xff] }
 0x352   :  { %v7053_v51 = vmax.f32 %v8604_v36, %v2929_v44  ;;  %v8610_v53 = vmax.f32 %v8608_v30, %v8609_v46  ;;  %v8612_v39 = vld [vmem:[#allocation86_spill] sm:$0xff]  ;;  %v8618_v36 = vld [vmem:[#allocation92_spill] sm:$0xff]  ;;  %v8620_v42 = vld [vmem:[#allocation27_spill] sm:$0xff] }
 0x353   :  { %v7048_v0 = vmax.f32 %v8601_v2, %v2928_v40  ;;  %v7058_v60 = vmax.f32 %v8607_v63, %v2930_v41  ;;  %v8613_v17 = vmax.f32 %v8611_v21, %v8612_v39  ;;  %v8614_v8 = vld [vmem:[#allocation22_spill] sm:$0xff]  ;;  %v8615_v2 = vld [vmem:[#allocation88_spill] sm:$0xff]  ;;  %v8619_v57 = vmax.f32 %v8617_v33, %v8618_v36  ;;  %v8621_v63 = vld [vmem:[#allocation95_spill] sm:$0xff] }
 0x354   :  { %v7063_v20 = vmax.f32 %v8610_v53, %v2931_v9  ;;  %v8616_v11 = vmax.f32 %v8614_v8, %v8615_v2  ;;  %v8622_v30 = vmax.f32 %v8620_v42, %v8621_v63  ;;  %v8623_v46 = vld [vmem:[#allocation29_spill] sm:$0xff]  ;;  %v8624_v53 = vld [vmem:[#allocation91_spill] sm:$0xff]  ;;  %v8626_v39 = vld [vmem:[#allocation26_spill] sm:$0xff] }
 0x355   :  { %v7068_v40 = vmax.f32 %v8613_v17, %v2932_v61  ;;  %v7078_v41 = vmax.f32 %v8619_v57, %v2934_v31  ;;  %v8625_v21 = vmax.f32 %v8623_v46, %v8624_v53  ;;  %v8627_v17 = vld [vmem:[#allocation93_spill] sm:$0xff]  ;;  %v8629_v2 = vld [vmem:[#allocation28_spill] sm:$0xff]  ;;  %v8632_v36 = vld [vmem:[#allocation31_spill] sm:$0xff] }
 0x356   :  { %v7073_v44 = vmax.f32 %v8616_v11, %v2933_v10  ;;  %v7083_v9 = vmax.f32 %v8622_v30, %v2935_v48  ;;  %v8628_v8 = vmax.f32 %v8626_v39, %v8627_v17  ;;  %v8630_v11 = vld [vmem:[#allocation97_spill] sm:$0xff]  ;;  %v8633_v57 = vld [vmem:[#allocation100_spill] sm:$0xff]  ;;  %v8638_v53 = vld [vmem:[#allocation30_spill] sm:$0xff] }
 0x357   :  { %v7088_v61 = vmax.f32 %v8625_v21, %v2936_v3  ;;  %v8631_v33 = vmax.f32 %v8629_v2, %v8630_v11  ;;  %v8634_v42 = vmax.f32 %v8632_v36, %v8633_v57  ;;  %v8635_v63 = vld [vmem:[#allocation33_spill] sm:$0xff]  ;;  %v8636_v30 = vld [vmem:[#allocation96_spill] sm:$0xff]  ;;  %v8639_v21 = vld [vmem:[#allocation98_spill] sm:$0xff] }
 0x358   :  { %v7093_v10 = vmax.f32 %v8628_v8, %v2937_v1  ;;  %v8637_v46 = vmax.f32 %v8635_v63, %v8636_v30  ;;  %v8640_v39 = vmax.f32 %v8638_v53, %v8639_v21  ;;  %v8641_v17 = vld [vmem:[#allocation32_spill] sm:$0xff]  ;;  %v8642_v8 = vld [vmem:[#allocation102_spill] sm:$0xff]  ;;  %v8644_v11 = vld [vmem:[#allocation35_spill] sm:$0xff] }
 0x359   :  { %v7098_v31 = vmax.f32 %v8631_v33, %v2938_v58  ;;  %v7103_v48 = vmax.f32 %v8634_v42, %v2939_v14  ;;  %v8643_v2 = vmax.f32 %v8641_v17, %v8642_v8  ;;  %v8645_v33 = vld [vmem:[#allocation105_spill] sm:$0xff]  ;;  %v8648_v57 = vld [vmem:[#allocation38_spill] sm:$0xff]  ;;  %v8654_v21 = vld [vmem:[#allocation36_spill] sm:$0xff]  ;;  %v2996_v8 = vmax.f32 %v2947_v4, 0.0 }
 0x35a   :  { %v7108_v3 = vmax.f32 %v8637_v46, %v2940_v47  ;;  %v7113_v1 = vmax.f32 %v8640_v39, %v2941_v7  ;;  %v8646_v36 = vmax.f32 %v8644_v11, %v8645_v33  ;;  %v8649_v42 = vld [vmem:[#allocation101_spill] sm:$0xff]  ;;  %v8651_v30 = vld [vmem:[#allocation34_spill] sm:$0xff]  ;;  %v8652_v46 = vld [vmem:[#allocation103_spill] sm:$0xff]  ;;  %v3006_v4 = vmax.f32 %v6948_v52, 0.0 }
 0x35b   :  { %v7118_v58 = vmax.f32 %v8643_v2, %v2942_v6  ;;  %v8650_v63 = vmax.f32 %v8648_v57, %v8649_v42  ;;  %v8653_v53 = vmax.f32 %v8651_v30, %v8652_v46  ;;  %v8655_v39 = vld [vmem:[#allocation107_spill] sm:$0xff]  ;;  %v3001_v57 = vmax.f32 %v6923_v37, 0.0  ;;  %3045 = vst [vmem:[%s7339_s4] sm:$0xff] %v2996_v8 }
 0x35c   :  { %v7123_v14 = vmax.f32 %v8646_v36, %v2943_v50  ;;  %v8656_v17 = vmax.f32 %v8654_v21, %v8655_v39  ;;  %v8657_v2 = vld [vmem:[#allocation139_spill] sm:$0xff]  ;;  %v8658_v50 = vld [vmem:[#allocation126_spill] sm:$0xff]  ;;  %v8659_v36 = vld [vmem:[#allocation140_spill] sm:$0xff]  ;;  %v3002_v42 = vmax.f32 %v6928_v25, 0.0  ;;  %v3007_v30 = vmax.f32 %v6953_v22, 0.0  ;;  %3055 = vst [vmem:[%s7339_s4 + $0x50] sm:$0xff] %v3006_v4 }
 0x35d   :  { %v7128_v47 = vmax.f32 %v8650_v63, %v2944_v62  ;;  %v7133_v7 = vmax.f32 %v8653_v53, %v2945_v23  ;;  %v2997_v11 = vmax.f32 %v8657_v2, 0.0  ;;  %v2998_v33 = vmax.f32 %v8658_v50, 0.0  ;;  %3050 = vst [vmem:[%s7339_s4 + $0x28] sm:$0xff] %v3001_v57 }
 0x35e   :  { %8647 = vst [vmem:[#allocation142_spill] sm:$0xff] %v7123_v14  ;;  %v7138_v6 = vmax.f32 %v8656_v17, %v2946_v34  ;;  %v2999_v14 = vmax.f32 %v8659_v36, 0.0  ;;  %v3000_v62 = vmax.f32 %v6918_v5, 0.0  ;;  %v3003_v23 = vmax.f32 %v6933_v18, 0.0  ;;  %3051 = vst [vmem:[%s7339_s4 + $0x30] sm:$0xff] %v3002_v42 }
 0x35f   :  { %v3004_v63 = vmax.f32 %v6938_v19, 0.0  ;;  %v3005_v34 = vmax.f32 %v6943_v55, 0.0  ;;  %v3008_v5 = vmax.f32 %v6958_v56, 0.0  ;;  %3046 = vst [vmem:[%s7339_s4 + $0x8] sm:$0xff] %v2997_v11  ;;  %3047 = vst [vmem:[%s7339_s4 + $0x10] sm:$0xff] %v2998_v33  ;;  %v3009_v37 = vmax.f32 %v6963_v29, 0.0 }
 0x360   :  { %3048 = vst [vmem:[%s7339_s4 + $0x18] sm:$0xff] %v2999_v14  ;;  %3049 = vst [vmem:[%s7339_s4 + $0x20] sm:$0xff] %v3000_v62  ;;  %v3010_v25 = vmax.f32 %v6968_v13, 0.0  ;;  %v3011_v18 = vmax.f32 %v6973_v24, 0.0  ;;  %v3012_v19 = vmax.f32 %v6978_v43, 0.0  ;;  %v3013_v55 = vmax.f32 %v6983_v59, 0.0 }
 0x361   :  { %3052 = vst [vmem:[%s7339_s4 + $0x38] sm:$0xff] %v3003_v23  ;;  %3053 = vst [vmem:[%s7339_s4 + $0x40] sm:$0xff] %v3004_v63  ;;  %v3014_v52 = vmax.f32 %v6988_v35, 0.0  ;;  %v3015_v22 = vmax.f32 %v6993_v26, 0.0  ;;  %v3016_v56 = vmax.f32 %v6998_v16, 0.0  ;;  %v3017_v29 = vmax.f32 %v7003_v45, 0.0 }
 0x362   :  { %3054 = vst [vmem:[%s7339_s4 + $0x48] sm:$0xff] %v3005_v34  ;;  %3056 = vst [vmem:[%s7339_s4 + $0x58] sm:$0xff] %v3007_v30  ;;  %v3018_v13 = vmax.f32 %v7008_v54, 0.0  ;;  %v3019_v24 = vmax.f32 %v7013_v38, 0.0  ;;  %v3020_v43 = vmax.f32 %v7018_v27, 0.0  ;;  %v3021_v59 = vmax.f32 %v7023_v32, 0.0 }
 0x363   :  { %3057 = vst [vmem:[%s7339_s4 + $0x60] sm:$0xff] %v3008_v5  ;;  %3058 = vst [vmem:[%s7339_s4 + $0x68] sm:$0xff] %v3009_v37  ;;  %v3022_v35 = vmax.f32 %v7028_v15, 0.0  ;;  %v3023_v26 = vmax.f32 %v7033_v28, 0.0  ;;  %v3024_v16 = vmax.f32 %v7038_v12, 0.0  ;;  %v3025_v45 = vmax.f32 %v7043_v49, 0.0 }
 0x364   :  { %3059 = vst [vmem:[%s7339_s4 + $0x70] sm:$0xff] %v3010_v25  ;;  %3060 = vst [vmem:[%s7339_s4 + $0x78] sm:$0xff] %v3011_v18  ;;  %v3026_v54 = vmax.f32 %v7048_v0, 0.0  ;;  %v3027_v38 = vmax.f32 %v7053_v51, 0.0  ;;  %v3028_v27 = vmax.f32 %v7058_v60, 0.0  ;;  %v3029_v32 = vmax.f32 %v7063_v20, 0.0 }
 0x365   :  { %3061 = vst [vmem:[%s7339_s4 + $0x80] sm:$0xff] %v3012_v19  ;;  %3062 = vst [vmem:[%s7339_s4 + $0x88] sm:$0xff] %v3013_v55  ;;  %v3030_v15 = vmax.f32 %v7068_v40, 0.0  ;;  %v3031_v28 = vmax.f32 %v7073_v44, 0.0  ;;  %v3032_v12 = vmax.f32 %v7078_v41, 0.0  ;;  %v3033_v49 = vmax.f32 %v7083_v9, 0.0 }
 0x366   :  { %3063 = vst [vmem:[%s7339_s4 + $0x90] sm:$0xff] %v3014_v52  ;;  %3064 = vst [vmem:[%s7339_s4 + $0x98] sm:$0xff] %v3015_v22  ;;  %v3034_v0 = vmax.f32 %v7088_v61, 0.0  ;;  %v3035_v51 = vmax.f32 %v7093_v10, 0.0  ;;  %v3036_v60 = vmax.f32 %v7098_v31, 0.0  ;;  %v3037_v20 = vmax.f32 %v7103_v48, 0.0 }
 0x367   :  { %3065 = vst [vmem:[%s7339_s4 + $0xa0] sm:$0xff] %v3016_v56  ;;  %3066 = vst [vmem:[%s7339_s4 + $0xa8] sm:$0xff] %v3017_v29  ;;  %v3038_v40 = vmax.f32 %v7108_v3, 0.0  ;;  %v3039_v44 = vmax.f32 %v7113_v1, 0.0  ;;  %v3040_v41 = vmax.f32 %v7118_v58, 0.0  ;;  %v8660_v9 = vld [vmem:[#allocation142_spill] sm:$0xff] }
 0x368   :  { %3067 = vst [vmem:[%s7339_s4 + $0xb0] sm:$0xff] %v3018_v13  ;;  %3068 = vst [vmem:[%s7339_s4 + $0xb8] sm:$0xff] %v3019_v24  ;;  %v3041_v61 = vmax.f32 %v8660_v9, 0.0  ;;  %v3042_v10 = vmax.f32 %v7128_v47, 0.0  ;;  %v3043_v31 = vmax.f32 %v7133_v7, 0.0  ;;  %v3044_v48 = vmax.f32 %v7138_v6, 0.0 }
 0x369   :  { %3069 = vst [vmem:[%s7339_s4 + $0xc0] sm:$0xff] %v3020_v43  ;;  %3070 = vst [vmem:[%s7339_s4 + $0xc8] sm:$0xff] %v3021_v59 }
 0x36a   :  { %3071 = vst [vmem:[%s7339_s4 + $0xd0] sm:$0xff] %v3022_v35  ;;  %3072 = vst [vmem:[%s7339_s4 + $0xd8] sm:$0xff] %v3023_v26 }
 0x36b   :  { %3073 = vst [vmem:[%s7339_s4 + $0xe0] sm:$0xff] %v3024_v16  ;;  %3074 = vst [vmem:[%s7339_s4 + $0xe8] sm:$0xff] %v3025_v45 }
 0x36c   :  { %3075 = vst [vmem:[%s7339_s4 + $0xf0] sm:$0xff] %v3026_v54  ;;  %3076 = vst [vmem:[%s7339_s4 + $0xf8] sm:$0xff] %v3027_v38 }
 0x36d   :  { %3077 = vst [vmem:[%s7339_s4 + $0x100] sm:$0xff] %v3028_v27  ;;  %3078 = vst [vmem:[%s7339_s4 + $0x108] sm:$0xff] %v3029_v32 }
 0x36e   :  { %3079 = vst [vmem:[%s7339_s4 + $0x110] sm:$0xff] %v3030_v15  ;;  %3080 = vst [vmem:[%s7339_s4 + $0x118] sm:$0xff] %v3031_v28 }
 0x36f   :  { %3081 = vst [vmem:[%s7339_s4 + $0x120] sm:$0xff] %v3032_v12  ;;  %3082 = vst [vmem:[%s7339_s4 + $0x128] sm:$0xff] %v3033_v49 }
 0x370   :  { %3083 = vst [vmem:[%s7339_s4 + $0x130] sm:$0xff] %v3034_v0  ;;  %3084 = vst [vmem:[%s7339_s4 + $0x138] sm:$0xff] %v3035_v51 }
 0x371   :  { %3085 = vst [vmem:[%s7339_s4 + $0x140] sm:$0xff] %v3036_v60  ;;  %3086 = vst [vmem:[%s7339_s4 + $0x148] sm:$0xff] %v3037_v20 }
 0x372   :  { %3087 = vst [vmem:[%s7339_s4 + $0x150] sm:$0xff] %v3038_v40  ;;  %3088 = vst [vmem:[%s7339_s4 + $0x158] sm:$0xff] %v3039_v44 }
 0x373   :  { %3089 = vst [vmem:[%s7339_s4 + $0x160] sm:$0xff] %v3040_v41  ;;  %3090 = vst [vmem:[%s7339_s4 + $0x168] sm:$0xff] %v3041_v61 }
 0x374   :  { %3091 = vst [vmem:[%s7339_s4 + $0x170] sm:$0xff] %v3042_v10  ;;  %3092 = vst [vmem:[%s7339_s4 + $0x178] sm:$0xff] %v3043_v31 }
 0x375   :  { %3093 = vst [vmem:[%s7339_s4 + $0x180] sm:$0xff] %v3044_v48 }

// kernel: convnet_forward.4
= control target key start
LH: loop header
LB: loop body
LE: loop exit
PB: predicated region body
PF: predicated region fallthrough
CT: control target
= control target key end

     0   :  { %v2067_v0 = vmov 0   ;;  %s3004_s1 = inlined_call_operand.vmem [shape: bf16[512,128], index: 1, kind: input, shape index: {}]   ;;  %s3005_s0 = inlined_call_operand.vmem [shape: bf16[416,512], index: 0, kind: input, shape index: {}]   ;;  %s3006_s2 = inlined_call_operand.vmem [shape: f32[1,128], index: 2, kind: input, shape index: {}]   ;;  %s3007_s3 = inlined_call_operand.vmem [shape: f32[1,128], index: 3, kind: input, shape index: {}]   ;;  %s3008_s4 = inlined_call_operand.vmem [shape: f32[104,128], index: 4, kind: output, shape index: {}]  }
   0x1   :  { %898 = vmatprep.subr.bf16.mxu0 %v2067_v0  ;;  %1139 = vmatprep.subr.bf16.mxu1 %v2067_v0  ;;  %v1877_v1 = vld [vmem:[%s3004_s1 + $0x38] sm:$0xff]   ;;  %v1879_v3 = vld [vmem:[%s3004_s1 + $0x30] sm:$0xff]   ;;  %v1881_v5 = vld [vmem:[%s3004_s1 + $0x28] sm:$0xff]  }
   0x2   :  { %v1878_v2 = vld [vmem:[%s3004_s1 + $0xb8] sm:$0xff]   ;;  %899 = vmatpush1.bf16.msra.mxu0 %v1877_v1  ;;  %v1880_v4 = vld [vmem:[%s3004_s1 + $0xb0] sm:$0xff]   ;;  %v1882_v6 = vld [vmem:[%s3004_s1 + $0xa8] sm:$0xff]  }
   0x3   :  { %1140 = vmatpush1.bf16.msra.mxu1 %v1878_v2  ;;  %900 = vmatprep.subr.bf16.mxu0 %v2067_v0  ;;  %v1883_v7 = vld [vmem:[%s3004_s1 + $0x20] sm:$0xff]   ;;  %v1885_v9 = vld [vmem:[%s3004_s1 + $0x18] sm:$0xff]   ;;  %v1887_v11 = vld [vmem:[%s3004_s1 + $0x10] sm:$0xff]  }
   0x4   :  { %1141 = vmatprep.subr.bf16.mxu1 %v2067_v0  ;;  %v1884_v8 = vld [vmem:[%s3004_s1 + $0xa0] sm:$0xff]   ;;  %v1886_v10 = vld [vmem:[%s3004_s1 + $0x98] sm:$0xff]   ;;  %v1888_v12 = vld [vmem:[%s3004_s1 + $0x90] sm:$0xff]  }
   0x5   :  { %v1889_v13 = vld [vmem:[%s3004_s1 + $0x8] sm:$0xff]   ;;  %v1891_v15 = vld [vmem:[%s3004_s1] sm:$0xff]   ;;  %v1893_v17 = vld [vmem:[%s3004_s1 + $0x78] sm:$0xff]  }
   0x6   :  { %901 = vmatpush1.bf16.msra.mxu0 %v1879_v3  ;;  %v1890_v14 = vld [vmem:[%s3004_s1 + $0x88] sm:$0xff]   ;;  %v1892_v16 = vld [vmem:[%s3004_s1 + $0x80] sm:$0xff]   ;;  %v1894_v18 = vld [vmem:[%s3004_s1 + $0xf8] sm:$0xff]  }
   0x7   :  { %1142 = vmatpush1.bf16.msra.mxu1 %v1880_v4  ;;  %902 = vmatprep.subr.bf16.mxu0 %v2067_v0  ;;  %v1911_v19 = vld [vmem:[%s3005_s0 + $0x4] ss:$16 sps:$4 sm:$0xff]   ;;  %v1914_v21 = vld [vmem:[%s3005_s0 + $0xc] ss:$16 sps:$4 sm:$0xff]   ;;  %v1909_v35 = vld [vmem:[%s3005_s0] ss:$16 sps:$4 sm:$0xff]  }
   0x8   :  { %1143 = vmatprep.subr.bf16.mxu1 %v2067_v0  ;;  %v1895_v20 = vld [vmem:[%s3004_s1 + $0x70] sm:$0xff]   ;;  %930 = vmatprep.mubr.bf16.mxu0 %v1911_v19  ;;  %v1897_v23 = vld [vmem:[%s3004_s1 + $0x68] sm:$0xff]   ;;  %v1899_v25 = vld [vmem:[%s3004_s1 + $0x60] sm:$0xff]  }
   0x9   :  { %v1896_v22 = vld [vmem:[%s3004_s1 + $0xf0] sm:$0xff]   ;;  %1171 = vmatprep.mubr.bf16.mxu1 %v1914_v21  ;;  %v1898_v24 = vld [vmem:[%s3004_s1 + $0xe8] sm:$0xff]   ;;  %v1900_v26 = vld [vmem:[%s3004_s1 + $0xe0] sm:$0xff]  }
   0xa   :  { %903 = vmatpush1.bf16.msra.mxu0 %v1881_v5  ;;  %v1901_v27 = vld [vmem:[%s3004_s1 + $0x58] sm:$0xff]   ;;  %v1903_v29 = vld [vmem:[%s3004_s1 + $0x50] sm:$0xff]   ;;  %v1905_v31 = vld [vmem:[%s3004_s1 + $0x48] sm:$0xff]  }
   0xb   :  { %1144 = vmatpush1.bf16.msra.mxu1 %v1882_v6  ;;  %904 = vmatprep.subr.bf16.mxu0 %v2067_v0  ;;  %v1902_v28 = vld [vmem:[%s3004_s1 + $0xd8] sm:$0xff]   ;;  %v1904_v30 = vld [vmem:[%s3004_s1 + $0xd0] sm:$0xff]   ;;  %v1906_v32 = vld [vmem:[%s3004_s1 + $0xc8] sm:$0xff]  }
   0xc   :  { %1145 = vmatprep.subr.bf16.mxu1 %v2067_v0  ;;  %v1907_v33 = vld [vmem:[%s3004_s1 + $0x40] sm:$0xff]   ;;  %v1912_v36 = vld [vmem:[%s3005_s0 + $0x8] ss:$16 sps:$4 sm:$0xff]   ;;  %v1917_v38 = vld [vmem:[%s3005_s0 + $0x2c] ss:$16 sps:$4 sm:$0xff]  }
   0xd   :  { %v1908_v34 = vld [vmem:[%s3004_s1 + $0xc0] sm:$0xff]   ;;  %v1920_v40 = vld [vmem:[%s3005_s0 + $0x28] ss:$16 sps:$4 sm:$0xff]   ;;  %v1923_v42 = vld [vmem:[%s3005_s0 + $0x4c] ss:$16 sps:$4 sm:$0xff]  }
   0xe   :  { %905 = vmatpush1.bf16.msra.mxu0 %v1883_v7  ;;  %v1915_v37 = vld [vmem:[%s3005_s0 + $0x24] ss:$16 sps:$4 sm:$0xff]   ;;  %v1919_v39 = vld [vmem:[%s3005_s0 + $0x20] ss:$16 sps:$4 sm:$0xff]   ;;  %v1926_v44 = vld [vmem:[%s3005_s0 + $0x48] ss:$16 sps:$4 sm:$0xff]  }
   0xf   :  { %1146 = vmatpush1.bf16.msra.mxu1 %v1884_v8  ;;  %906 = vmatprep.subr.bf16.mxu0 %v2067_v0  ;;  %v1921_v41 = vld [vmem:[%s3005_s0 + $0x44] ss:$16 sps:$4 sm:$0xff]   ;;  %v1925_v43 = vld [vmem:[%s3005_s0 + $0x40] ss:$16 sps:$4 sm:$0xff]   ;;  %v1929_v46 = vld [vmem:[%s3005_s0 + $0x6c] ss:$16 sps:$4 sm:$0xff]  }
  0x10   :  { %1147 = vmatprep.subr.bf16.mxu1 %v2067_v0  ;;  %v1927_v45 = vld [vmem:[%s3005_s0 + $0x64] ss:$16 sps:$4 sm:$0xff]   ;;  %v1931_v47 = vld [vmem:[%s3005_s0 + $0x60] ss:$16 sps:$4 sm:$0xff]   ;;  %v1932_v48 = vld [vmem:[%s3005_s0 + $0x68] ss:$16 sps:$4 sm:$0xff]  }
  0x11   :  { %v1933_v49 = vld [vmem:[%s3005_s0 + $0x84] ss:$16 sps:$4 sm:$0xff]   ;;  %v1935_v50 = vld [vmem:[%s3005_s0 + $0x8c] ss:$16 sps:$4 sm:$0xff]   ;;  %v1937_v51 = vld [vmem:[%s3005_s0 + $0x80] ss:$16 sps:$4 sm:$0xff]  }
  0x12   :  { %907 = vmatpush1.bf16.msra.mxu0 %v1885_v9  ;;  %v1938_v52 = vld [vmem:[%s3005_s0 + $0x88] ss:$16 sps:$4 sm:$0xff]   ;;  %v1939_v53 = vld [vmem:[%s3005_s0 + $0xa4] ss:$16 sps:$4 sm:$0xff]   ;;  %v1941_v54 = vld [vmem:[%s3005_s0 + $0xac] ss:$16 sps:$4 sm:$0xff]  }
  0x13   :  { %1148 = vmatpush1.bf16.msra.mxu1 %v1886_v10  ;;  %908 = vmatprep.subr.bf16.mxu0 %v2067_v0  ;;  %v1943_v55 = vld [vmem:[%s3005_s0 + $0xa0] ss:$16 sps:$4 sm:$0xff]   ;;  %v1944_v56 = vld [vmem:[%s3005_s0 + $0xa8] ss:$16 sps:$4 sm:$0xff]   ;;  %v1945_v57 = vld [vmem:[%s3005_s0 + $0xc4] ss:$16 sps:$4 sm:$0xff]  }
  0x14   :  { %1149 = vmatprep.subr.bf16.mxu1 %v2067_v0  ;;  %v1947_v58 = vld [vmem:[%s3005_s0 + $0xcc] ss:$16 sps:$4 sm:$0xff]   ;;  %v1949_v59 = vld [vmem:[%s3005_s0 + $0xc0] ss:$16 sps:$4 sm:$0xff]   ;;  %v1950_v60 = vld [vmem:[%s3005_s0 + $0xc8] ss:$16 sps:$4 sm:$0xff]  }
  0x15   :  { %v1951_v61 = vld [vmem:[%s3005_s0 + $0xe4] ss:$16 sps:$4 sm:$0xff]   ;;  %v1953_v62 = vld [vmem:[%s3005_s0 + $0xec] ss:$16 sps:$4 sm:$0xff]   ;;  %v1955_v63 = vld [vmem:[%s3005_s0 + $0xe0] ss:$16 sps:$4 sm:$0xff]  }
  0x16   :  { %909 = vmatpush1.bf16.msra.mxu0 %v1887_v11  ;;  %v1957_v1 = vld [vmem:[%s3005_s0 + $0x104] ss:$16 sps:$4 sm:$0xff]   ;;  %v1959_v2 = vld [vmem:[%s3005_s0 + $0x10c] ss:$16 sps:$4 sm:$0xff]   ;;  %v1961_v3 = vld [vmem:[%s3005_s0 + $0x100] ss:$16 sps:$4 sm:$0xff]  }
  0x17   :  { %1150 = vmatpush1.bf16.msra.mxu1 %v1888_v12  ;;  %910 = vmatprep.subr.bf16.mxu0 %v2067_v0  ;;  %v1962_v4 = vld [vmem:[%s3005_s0 + $0x108] ss:$16 sps:$4 sm:$0xff]   ;;  %v1963_v5 = vld [vmem:[%s3005_s0 + $0x124] ss:$16 sps:$4 sm:$0xff]   ;;  %v1965_v6 = vld [vmem:[%s3005_s0 + $0x12c] ss:$16 sps:$4 sm:$0xff]  }
  0x18   :  { %1151 = vmatprep.subr.bf16.mxu1 %v2067_v0  ;;  %v1967_v7 = vld [vmem:[%s3005_s0 + $0x120] ss:$16 sps:$4 sm:$0xff]   ;;  %v1968_v8 = vld [vmem:[%s3005_s0 + $0x128] ss:$16 sps:$4 sm:$0xff]   ;;  %v1969_v9 = vld [vmem:[%s3005_s0 + $0x144] ss:$16 sps:$4 sm:$0xff]  }
  0x19   :  { %v1971_v10 = vld [vmem:[%s3005_s0 + $0x14c] ss:$16 sps:$4 sm:$0xff]   ;;  %v1973_v11 = vld [vmem:[%s3005_s0 + $0x140] ss:$16 sps:$4 sm:$0xff]   ;;  %v1974_v12 = vld [vmem:[%s3005_s0 + $0x148] ss:$16 sps:$4 sm:$0xff]  }
  0x1a   :  { %911 = vmatpush1.bf16.msra.mxu0 %v1889_v13  ;;  %v1975_v13 = vld [vmem:[%s3005_s0 + $0x164] ss:$16 sps:$4 sm:$0xff]   ;;  %v1985_v19 = vld [vmem:[%s3005_s0 + $0x180] ss:$16 sps:$4 sm:$0xff]  }
  0x1b   :  { %1152 = vmatpush1.bf16.msra.mxu1 %v1890_v14  ;;  %912 = vmatprep.subr.bf16.mxu0 %v2067_v0  ;;  %v1977_v14 = vld [vmem:[%s3005_s0 + $0x16c] ss:$16 sps:$4 sm:$0xff]   ;;  %v1987_v21 = vld [vmem:[%s3005_s0 + $0x1a4] ss:$16 sps:$4 sm:$0xff]  }
  0x1c   :  { %1153 = vmatprep.subr.bf16.mxu1 %v2067_v0 }
  0x1e   :  { %913 = vmatpush1.bf16.msra.mxu0 %v1891_v15  ;;  %v1979_v15 = vld [vmem:[%s3005_s0 + $0x160] ss:$16 sps:$4 sm:$0xff]  }
  0x1f   :  { %1154 = vmatpush1.bf16.msra.mxu1 %v1892_v16  ;;  %914 = vmatprep.subr.bf16.mxu0 %v2067_v0  ;;  %v1980_v16 = vld [vmem:[%s3005_s0 + $0x168] ss:$16 sps:$4 sm:$0xff]  }
  0x20   :  { %1155 = vmatprep.subr.bf16.mxu1 %v2067_v0 }
  0x22   :  { %915 = vmatpush2.bf16.msra.mxu0 %v1893_v17  ;;  %v1981_v17 = vld [vmem:[%s3005_s0 + $0x184] ss:$16 sps:$4 sm:$0xff]  }
  0x23   :  { %1156 = vmatpush2.bf16.msra.mxu1 %v1894_v18  ;;  %916 = vmatprep.subr.bf16.mxu0 %v2067_v0  ;;  %v1983_v18 = vld [vmem:[%s3005_s0 + $0x18c] ss:$16 sps:$4 sm:$0xff]  }
  0x24   :  { %1157 = vmatprep.subr.bf16.mxu1 %v2067_v0 }
  0x26   :  { %917 = vmatpush2.bf16.msra.mxu0 %v1895_v20  ;;  %v1986_v20 = vld [vmem:[%s3005_s0 + $0x188] ss:$16 sps:$4 sm:$0xff]  }
  0x27   :  { %1158 = vmatpush2.bf16.msra.mxu1 %v1896_v22  ;;  %918 = vmatprep.subr.bf16.mxu0 %v2067_v0  ;;  %v1989_v22 = vld [vmem:[%s3005_s0 + $0x1ac] ss:$16 sps:$4 sm:$0xff]  }
  0x28   :  { %1159 = vmatprep.subr.bf16.mxu1 %v2067_v0 }
  0x2a   :  { %919 = vmatpush2.bf16.msra.mxu0 %v1897_v23  ;;  %v1991_v23 = vld [vmem:[%s3005_s0 + $0x1a0] ss:$16 sps:$4 sm:$0xff]  }
  0x2b   :  { %1160 = vmatpush2.bf16.msra.mxu1 %v1898_v24  ;;  %920 = vmatprep.subr.bf16.mxu0 %v2067_v0  ;;  %v1992_v24 = vld [vmem:[%s3005_s0 + $0x1a8] ss:$16 sps:$4 sm:$0xff]  }
  0x2c   :  { %1161 = vmatprep.subr.bf16.mxu1 %v2067_v0 }
  0x2e   :  { %921 = vmatpush2.bf16.msra.mxu0 %v1899_v25  ;;  %v1993_v25 = vld [vmem:[%s3005_s0 + $0x1c4] ss:$16 sps:$4 sm:$0xff]  }
  0x2f   :  { %1162 = vmatpush2.bf16.msra.mxu1 %v1900_v26  ;;  %922 = vmatprep.subr.bf16.mxu0 %v2067_v0  ;;  %v1995_v26 = vld [vmem:[%s3005_s0 + $0x1cc] ss:$16 sps:$4 sm:$0xff]  }
  0x30   :  { %1163 = vmatprep.subr.bf16.mxu1 %v2067_v0 }
  0x32   :  { %923 = vmatpush2.bf16.msra.mxu0 %v1901_v27  ;;  %v1997_v27 = vld [vmem:[%s3005_s0 + $0x1c0] ss:$16 sps:$4 sm:$0xff]  }
  0x33   :  { %1164 = vmatpush2.bf16.msra.mxu1 %v1902_v28  ;;  %924 = vmatprep.subr.bf16.mxu0 %v2067_v0  ;;  %v1998_v28 = vld [vmem:[%s3005_s0 + $0x1c8] ss:$16 sps:$4 sm:$0xff]  }
  0x34   :  { %1165 = vmatprep.subr.bf16.mxu1 %v2067_v0 }
  0x36   :  { %925 = vmatpush2.bf16.msra.mxu0 %v1903_v29  ;;  %v1999_v29 = vld [vmem:[%s3005_s0 + $0x1e4] ss:$16 sps:$4 sm:$0xff]  }
  0x37   :  { %1166 = vmatpush2.bf16.msra.mxu1 %v1904_v30  ;;  %926 = vmatprep.subr.bf16.mxu0 %v2067_v0  ;;  %v2001_v30 = vld [vmem:[%s3005_s0 + $0x1ec] ss:$16 sps:$4 sm:$0xff]  }
  0x38   :  { %1167 = vmatprep.subr.bf16.mxu1 %v2067_v0 }
  0x3a   :  { %927 = vmatpush2.bf16.msra.mxu0 %v1905_v31  ;;  %v2003_v31 = vld [vmem:[%s3005_s0 + $0x1e0] ss:$16 sps:$4 sm:$0xff]  }
  0x3b   :  { %1168 = vmatpush2.bf16.msra.mxu1 %v1906_v32  ;;  %928 = vmatprep.subr.bf16.mxu0 %v2067_v0  ;;  %v2004_v32 = vld [vmem:[%s3005_s0 + $0x1e8] ss:$16 sps:$4 sm:$0xff]  }
  0x3c   :  { %1169 = vmatprep.subr.bf16.mxu1 %v2067_v0  ;;  %v1956_v0 = vld [vmem:[%s3005_s0 + $0xe8] ss:$16 sps:$4 sm:$0xff]  }
  0x3e   :  { %929 = vmatpush2.bf16.msra.mxu0 %v1907_v33  ;;  %v2005_v33 = vld [vmem:[%s3005_s0 + $0x204] ss:$16 sps:$4 sm:$0xff]  }
  0x3f   :  { %1170 = vmatpush2.bf16.msra.mxu1 %v1908_v34  ;;  %v2007_v34 = vld [vmem:[%s3005_s0 + $0x20c] ss:$16 sps:$4 sm:$0xff]  }
  0x41   :  { %931 = vmatmul.mubr.bf16.vlgmr.msra.gmra.mxu0 %v1909_v35  ;;  %v2009_v35 = vld [vmem:[%s3005_s0 + $0x200] ss:$16 sps:$4 sm:$0xff]  }
  0x42   :  { %1172 = vmatmul.mubr.bf16.vlgmr.msra.gmra.mxu1 %v1912_v36  ;;  %938 = vmatprep.mubr.bf16.mxu0 %v1915_v37  ;;  %v2010_v36 = vld [vmem:[%s3005_s0 + $0x208] ss:$16 sps:$4 sm:$0xff]   ;;  %v2011_v37 = vld [vmem:[%s3005_s0 + $0x224] ss:$16 sps:$4 sm:$0xff]  }
  0x43   :  { %1179 = vmatprep.mubr.bf16.mxu1 %v1917_v38  ;;  %v2013_v38 = vld [vmem:[%s3005_s0 + $0x22c] ss:$16 sps:$4 sm:$0xff]  }
  0x49   :  { %939 = vmatmul.mubr.bf16.gmra.mxu0 %v1919_v39  ;;  %v2015_v39 = vld [vmem:[%s3005_s0 + $0x220] ss:$16 sps:$4 sm:$0xff]  }
  0x4a   :  { %1180 = vmatmul.mubr.bf16.gmra.mxu1 %v1920_v40  ;;  %946 = vmatprep.mubr.bf16.mxu0 %v1921_v41  ;;  %v2016_v40 = vld [vmem:[%s3005_s0 + $0x228] ss:$16 sps:$4 sm:$0xff]   ;;  %v2017_v41 = vld [vmem:[%s3005_s0 + $0x244] ss:$16 sps:$4 sm:$0xff]  }
  0x4b   :  { %1187 = vmatprep.mubr.bf16.mxu1 %v1923_v42  ;;  %v2019_v42 = vld [vmem:[%s3005_s0 + $0x24c] ss:$16 sps:$4 sm:$0xff]  }
  0x51   :  { %947 = vmatmul.mubr.bf16.gmra.mxu0 %v1925_v43  ;;  %v2021_v43 = vld [vmem:[%s3005_s0 + $0x240] ss:$16 sps:$4 sm:$0xff]  }
  0x52   :  { %1188 = vmatmul.mubr.bf16.gmra.mxu1 %v1926_v44  ;;  %954 = vmatprep.mubr.bf16.mxu0 %v1927_v45  ;;  %v2022_v44 = vld [vmem:[%s3005_s0 + $0x248] ss:$16 sps:$4 sm:$0xff]   ;;  %v2023_v45 = vld [vmem:[%s3005_s0 + $0x264] ss:$16 sps:$4 sm:$0xff]  }
  0x53   :  { %1195 = vmatprep.mubr.bf16.mxu1 %v1929_v46  ;;  %v2025_v46 = vld [vmem:[%s3005_s0 + $0x26c] ss:$16 sps:$4 sm:$0xff]  }
  0x59   :  { %955 = vmatmul.mubr.bf16.gmra.mxu0 %v1931_v47  ;;  %v2027_v47 = vld [vmem:[%s3005_s0 + $0x260] ss:$16 sps:$4 sm:$0xff]  }
  0x5a   :  { %1196 = vmatmul.mubr.bf16.gmra.mxu1 %v1932_v48  ;;  %962 = vmatprep.mubr.bf16.mxu0 %v1933_v49  ;;  %v2028_v48 = vld [vmem:[%s3005_s0 + $0x268] ss:$16 sps:$4 sm:$0xff]   ;;  %v2029_v49 = vld [vmem:[%s3005_s0 + $0x284] ss:$16 sps:$4 sm:$0xff]  }
  0x5b   :  { %1203 = vmatprep.mubr.bf16.mxu1 %v1935_v50  ;;  %v2031_v50 = vld [vmem:[%s3005_s0 + $0x28c] ss:$16 sps:$4 sm:$0xff]  }
  0x61   :  { %963 = vmatmul.mubr.bf16.gmra.mxu0 %v1937_v51  ;;  %v2033_v51 = vld [vmem:[%s3005_s0 + $0x280] ss:$16 sps:$4 sm:$0xff]  }
  0x62   :  { %1204 = vmatmul.mubr.bf16.gmra.mxu1 %v1938_v52  ;;  %970 = vmatprep.mubr.bf16.mxu0 %v1939_v53  ;;  %v2034_v52 = vld [vmem:[%s3005_s0 + $0x288] ss:$16 sps:$4 sm:$0xff]   ;;  %v2035_v53 = vld [vmem:[%s3005_s0 + $0x2a4] ss:$16 sps:$4 sm:$0xff]  }
  0x63   :  { %1211 = vmatprep.mubr.bf16.mxu1 %v1941_v54  ;;  %v2037_v54 = vld [vmem:[%s3005_s0 + $0x2ac] ss:$16 sps:$4 sm:$0xff]  }
  0x69   :  { %971 = vmatmul.mubr.bf16.gmra.mxu0 %v1943_v55  ;;  %v2039_v55 = vld [vmem:[%s3005_s0 + $0x2a0] ss:$16 sps:$4 sm:$0xff]  }
  0x6a   :  { %1212 = vmatmul.mubr.bf16.gmra.mxu1 %v1944_v56  ;;  %978 = vmatprep.mubr.bf16.mxu0 %v1945_v57  ;;  %v2040_v56 = vld [vmem:[%s3005_s0 + $0x2a8] ss:$16 sps:$4 sm:$0xff]   ;;  %v2041_v57 = vld [vmem:[%s3005_s0 + $0x2c4] ss:$16 sps:$4 sm:$0xff]  }
  0x6b   :  { %1219 = vmatprep.mubr.bf16.mxu1 %v1947_v58  ;;  %v2043_v58 = vld [vmem:[%s3005_s0 + $0x2cc] ss:$16 sps:$4 sm:$0xff]  }
  0x71   :  { %979 = vmatmul.mubr.bf16.gmra.mxu0 %v1949_v59  ;;  %v2045_v59 = vld [vmem:[%s3005_s0 + $0x2c0] ss:$16 sps:$4 sm:$0xff]  }
  0x72   :  { %1220 = vmatmul.mubr.bf16.gmra.mxu1 %v1950_v60  ;;  %986 = vmatprep.mubr.bf16.mxu0 %v1951_v61  ;;  %v2046_v60 = vld [vmem:[%s3005_s0 + $0x2c8] ss:$16 sps:$4 sm:$0xff]   ;;  %v2047_v61 = vld [vmem:[%s3005_s0 + $0x2e4] ss:$16 sps:$4 sm:$0xff]  }
  0x73   :  { %1227 = vmatprep.mubr.bf16.mxu1 %v1953_v62  ;;  %v2049_v62 = vld [vmem:[%s3005_s0 + $0x2ec] ss:$16 sps:$4 sm:$0xff]  }
  0x79   :  { %987 = vmatmul.mubr.bf16.gmra.mxu0 %v1955_v63  ;;  %v2051_v63 = vld [vmem:[%s3005_s0 + $0x2e0] ss:$16 sps:$4 sm:$0xff]  }
  0x7a   :  { %1228 = vmatmul.mubr.bf16.gmra.mxu1 %v1956_v0  ;;  %994 = vmatprep.mubr.bf16.mxu0 %v1957_v1  ;;  %v2052_v0 = vld [vmem:[%s3005_s0 + $0x2e8] ss:$16 sps:$4 sm:$0xff]   ;;  %v2053_v1 = vld [vmem:[%s3005_s0 + $0x304] ss:$16 sps:$4 sm:$0xff]  }
  0x7b   :  { %1235 = vmatprep.mubr.bf16.mxu1 %v1959_v2  ;;  %v2055_v2 = vld [vmem:[%s3005_s0 + $0x30c] ss:$16 sps:$4 sm:$0xff]  }
  0x81   :  { %995 = vmatmul.mubr.bf16.gmra.mxu0 %v1961_v3  ;;  %v2057_v3 = vld [vmem:[%s3005_s0 + $0x300] ss:$16 sps:$4 sm:$0xff]  }
  0x82   :  { %1236 = vmatmul.mubr.bf16.gmra.mxu1 %v1962_v4  ;;  %1002 = vmatprep.mubr.bf16.mxu0 %v1963_v5  ;;  %v2058_v4 = vld [vmem:[%s3005_s0 + $0x308] ss:$16 sps:$4 sm:$0xff]   ;;  %v2059_v5 = vld [vmem:[%s3005_s0 + $0x324] ss:$16 sps:$4 sm:$0xff]  }
  0x83   :  { %1243 = vmatprep.mubr.bf16.mxu1 %v1965_v6  ;;  %v2061_v6 = vld [vmem:[%s3005_s0 + $0x32c] ss:$16 sps:$4 sm:$0xff]  }
  0x89   :  { %1003 = vmatmul.mubr.bf16.gmra.mxu0 %v1967_v7 }
  0x8a   :  { %1244 = vmatmul.mubr.bf16.gmra.mxu1 %v1968_v8  ;;  %1010 = vmatprep.mubr.bf16.mxu0 %v1969_v9 }
  0x8b   :  { %1251 = vmatprep.mubr.bf16.mxu1 %v1971_v10 }
  0x91   :  { %1011 = vmatmul.mubr.bf16.gmra.mxu0 %v1973_v11 }
  0x92   :  { %1252 = vmatmul.mubr.bf16.gmra.mxu1 %v1974_v12  ;;  %1018 = vmatprep.mubr.bf16.mxu0 %v1975_v13  ;;  %v2063_v13 = vld [vmem:[%s3005_s0 + $0x320] ss:$16 sps:$4 sm:$0xff]  }
  0x93   :  { %1259 = vmatprep.mubr.bf16.mxu1 %v1977_v14 }
  0x99   :  { %1019 = vmatmul.mubr.bf16.gmra.mxu0 %v1979_v15  ;;  %v2064_v15 = vld [vmem:[%s3005_s0 + $0x328] ss:$16 sps:$4 sm:$0xff]  }
  0x9a   :  { %1260 = vmatmul.mubr.bf16.gmra.mxu1 %v1980_v16  ;;  %1026 = vmatprep.mubr.bf16.mxu0 %v1981_v17 }
  0x9b   :  { %1267 = vmatprep.mubr.bf16.mxu1 %v1983_v18 }
  0xa1   :  { %1027 = vmatmul.mubr.bf16.gmra.mxu0 %v1985_v19 }
  0xa2   :  { %1268 = vmatmul.mubr.bf16.gmra.mxu1 %v1986_v20  ;;  %1034 = vmatprep.mubr.bf16.mxu0 %v1987_v21 }
  0xa3   :  { %1275 = vmatprep.mubr.bf16.mxu1 %v1989_v22 }
  0xa9   :  { %1035 = vmatmul.mubr.bf16.gmra.mxu0 %v1991_v23 }
  0xaa   :  { %1276 = vmatmul.mubr.bf16.gmra.mxu1 %v1992_v24  ;;  %1042 = vmatprep.mubr.bf16.mxu0 %v1993_v25 }
  0xab   :  { %1283 = vmatprep.mubr.bf16.mxu1 %v1995_v26 }
  0xb1   :  { %1043 = vmatmul.mubr.bf16.gmra.mxu0 %v1997_v27 }
  0xb2   :  { %1284 = vmatmul.mubr.bf16.gmra.mxu1 %v1998_v28  ;;  %1050 = vmatprep.mubr.bf16.mxu0 %v1999_v29 }
  0xb3   :  { %1291 = vmatprep.mubr.bf16.mxu1 %v2001_v30 }
  0xb9   :  { %1051 = vmatmul.mubr.bf16.gmra.mxu0 %v2003_v31 }
  0xba   :  { %1292 = vmatmul.mubr.bf16.gmra.mxu1 %v2004_v32  ;;  %1058 = vmatprep.mubr.bf16.mxu0 %v2005_v33 }
  0xbb   :  { %1299 = vmatprep.mubr.bf16.mxu1 %v2007_v34 }
  0xc1   :  { %1059 = vmatmul.mubr.bf16.gmra.mxu0 %v2009_v35 }
  0xc2   :  { %1300 = vmatmul.mubr.bf16.gmra.mxu1 %v2010_v36  ;;  %1066 = vmatprep.mubr.bf16.mxu0 %v2011_v37 }
  0xc3   :  { %1307 = vmatprep.mubr.bf16.mxu1 %v2013_v38 }
  0xc9   :  { %1067 = vmatmul.mubr.bf16.gmra.mxu0 %v2015_v39 }
  0xca   :  { %1308 = vmatmul.mubr.bf16.gmra.mxu1 %v2016_v40  ;;  %1074 = vmatprep.mubr.bf16.mxu0 %v2017_v41 }
  0xcb   :  { %1315 = vmatprep.mubr.bf16.mxu1 %v2019_v42 }
  0xd1   :  { %1075 = vmatmul.mubr.bf16.gmra.mxu0 %v2021_v43 }
  0xd2   :  { %1316 = vmatmul.mubr.bf16.gmra.mxu1 %v2022_v44  ;;  %1082 = vmatprep.mubr.bf16.mxu0 %v2023_v45 }
  0xd3   :  { %1323 = vmatprep.mubr.bf16.mxu1 %v2025_v46 }
  0xd9   :  { %1083 = vmatmul.mubr.bf16.gmra.mxu0 %v2027_v47 }
  0xda   :  { %1324 = vmatmul.mubr.bf16.gmra.mxu1 %v2028_v48  ;;  %1090 = vmatprep.mubr.bf16.mxu0 %v2029_v49 }
  0xdb   :  { %1331 = vmatprep.mubr.bf16.mxu1 %v2031_v50 }
  0xe1   :  { %1091 = vmatmul.mubr.bf16.gmra.mxu0 %v2033_v51 }
  0xe2   :  { %1332 = vmatmul.mubr.bf16.gmra.mxu1 %v2034_v52  ;;  %1098 = vmatprep.mubr.bf16.mxu0 %v2035_v53 }
  0xe3   :  { %1339 = vmatprep.mubr.bf16.mxu1 %v2037_v54 }
  0xe9   :  { %1099 = vmatmul.mubr.bf16.gmra.mxu0 %v2039_v55 }
  0xea   :  { %1340 = vmatmul.mubr.bf16.gmra.mxu1 %v2040_v56  ;;  %1106 = vmatprep.mubr.bf16.mxu0 %v2041_v57 }
  0xeb   :  { %1347 = vmatprep.mubr.bf16.mxu1 %v2043_v58 }
  0xf1   :  { %1107 = vmatmul.mubr.bf16.gmra.mxu0 %v2045_v59 }
  0xf2   :  { %1348 = vmatmul.mubr.bf16.gmra.mxu1 %v2046_v60  ;;  %1114 = vmatprep.mubr.bf16.mxu0 %v2047_v61 }
  0xf3   :  { %1355 = vmatprep.mubr.bf16.mxu1 %v2049_v62 }
  0xf9   :  { %1115 = vmatmul.mubr.bf16.gmra.mxu0 %v2051_v63 }
  0xfa   :  { %1356 = vmatmul.mubr.bf16.gmra.mxu1 %v2052_v0  ;;  %1122 = vmatprep.mubr.bf16.mxu0 %v2053_v1 }
  0xfb   :  { %1363 = vmatprep.mubr.bf16.mxu1 %v2055_v2 }
 0x101   :  { %v932_v7 = vpop.f32.mrf.mxu0  ;;  %1123 = vmatmul.mubr.bf16.gmra.mxu0 %v2057_v3 }
 0x102   :  { %v1173_v8 = vpop.f32.mrf.mxu1  ;;  %1364 = vmatmul.mubr.bf16.gmra.mxu1 %v2058_v4  ;;  %1130 = vmatprep.mubr.bf16.mxu0 %v2059_v5 }
 0x103   :  { %v2527_v9 = vadd.f32 %v1173_v8, %v932_v7  ;;  %v934_v10 = vpop.f32.mrf.mxu0  ;;  %1371 = vmatprep.mubr.bf16.mxu1 %v2061_v6 }
 0x104   :  { %v1175_v11 = vpop.f32.mrf.mxu1 }
 0x105   :  { %v935_v12 = vpop.f32.mrf.mxu0 }
 0x106   :  { %v1176_v14 = vpop.f32.mrf.mxu1 }
 0x107   :  { %v2535_v16 = vadd.f32 %v1176_v14, %v935_v12  ;;  %v937_v17 = vpop.f32.mrf.mxu0 }
 0x108   :  { %v1178_v18 = vpop.f32.mrf.mxu1 }
 0x109   :  { %v940_v19 = vpop.f32.mrf.mxu0  ;;  %1131 = vmatmul.mubr.bf16.gmra.mxu0 %v2063_v13 }
 0x10a   :  { %v1181_v20 = vpop.f32.mrf.mxu1  ;;  %1372 = vmatmul.mubr.bf16.gmra.mxu1 %v2064_v15 }
 0x10b   :  { %v2537_v21 = vadd.f32 %v1181_v20, %v940_v19  ;;  %v942_v22 = vpop.f32.mrf.mxu0 }
 0x10c   :  { %v1183_v23 = vpop.f32.mrf.mxu1 }
 0x10d   :  { %v943_v24 = vpop.f32.mrf.mxu0 }
 0x10e   :  { %v1184_v25 = vpop.f32.mrf.mxu1 }
 0x10f   :  { %v2539_v26 = vadd.f32 %v1184_v25, %v943_v24  ;;  %v945_v27 = vpop.f32.mrf.mxu0 }
 0x110   :  { %v1186_v28 = vpop.f32.mrf.mxu1 }
 0x111   :  { %v948_v29 = vpop.f32.mrf.mxu0 }
 0x112   :  { %v1189_v30 = vpop.f32.mrf.mxu1 }
 0x113   :  { %v2541_v31 = vadd.f32 %v1189_v30, %v948_v29  ;;  %v950_v32 = vpop.f32.mrf.mxu0 }
 0x114   :  { %v1191_v33 = vpop.f32.mrf.mxu1 }
 0x115   :  { %v951_v34 = vpop.f32.mrf.mxu0 }
 0x116   :  { %v1192_v35 = vpop.f32.mrf.mxu1 }
 0x117   :  { %v2543_v36 = vadd.f32 %v1192_v35, %v951_v34  ;;  %v953_v37 = vpop.f32.mrf.mxu0 }
 0x118   :  { %v1194_v38 = vpop.f32.mrf.mxu1 }
 0x119   :  { %v956_v39 = vpop.f32.mrf.mxu0 }
 0x11a   :  { %v1197_v40 = vpop.f32.mrf.mxu1 }
 0x11b   :  { %v2545_v41 = vadd.f32 %v1197_v40, %v956_v39  ;;  %v958_v42 = vpop.f32.mrf.mxu0 }
 0x11c   :  { %v1199_v43 = vpop.f32.mrf.mxu1 }
 0x11d   :  { %v959_v44 = vpop.f32.mrf.mxu0 }
 0x11e   :  { %v1200_v45 = vpop.f32.mrf.mxu1 }
 0x11f   :  { %v2547_v46 = vadd.f32 %v1200_v45, %v959_v44  ;;  %v961_v47 = vpop.f32.mrf.mxu0 }
 0x120   :  { %v1202_v48 = vpop.f32.mrf.mxu1 }
 0x121   :  { %v964_v49 = vpop.f32.mrf.mxu0 }
 0x122   :  { %v1205_v50 = vpop.f32.mrf.mxu1 }
 0x123   :  { %v2549_v51 = vadd.f32 %v1205_v50, %v964_v49  ;;  %v966_v52 = vpop.f32.mrf.mxu0 }
 0x124   :  { %v1207_v53 = vpop.f32.mrf.mxu1 }
 0x125   :  { %v967_v54 = vpop.f32.mrf.mxu0 }
 0x126   :  { %v1208_v55 = vpop.f32.mrf.mxu1 }
 0x127   :  { %v2551_v56 = vadd.f32 %v1208_v55, %v967_v54  ;;  %v969_v57 = vpop.f32.mrf.mxu0 }
 0x128   :  { %v1210_v58 = vpop.f32.mrf.mxu1 }
 0x129   :  { %v972_v59 = vpop.f32.mrf.mxu0 }
 0x12a   :  { %v1213_v60 = vpop.f32.mrf.mxu1 }
 0x12b   :  { %v2553_v61 = vadd.f32 %v1213_v60, %v972_v59  ;;  %v974_v62 = vpop.f32.mrf.mxu0 }
 0x12c   :  { %v1215_v63 = vpop.f32.mrf.mxu1 }
 0x12d   :  { %v975_v0 = vpop.f32.mrf.mxu0 }
 0x12e   :  { %v1216_v1 = vpop.f32.mrf.mxu1 }
 0x12f   :  { %v2555_v2 = vadd.f32 %v1216_v1, %v975_v0  ;;  %v977_v3 = vpop.f32.mrf.mxu0 }
 0x130   :  { %v1218_v4 = vpop.f32.mrf.mxu1 }
 0x131   :  { %v980_v5 = vpop.f32.mrf.mxu0 }
 0x132   :  { %v1221_v6 = vpop.f32.mrf.mxu1 }
 0x133   :  { %v2557_v7 = vadd.f32 %v1221_v6, %v980_v5  ;;  %v982_v8 = vpop.f32.mrf.mxu0 }
 0x134   :  { %v1223_v10 = vpop.f32.mrf.mxu1 }
 0x135   :  { %v983_v11 = vpop.f32.mrf.mxu0 }
 0x136   :  { %v1224_v12 = vpop.f32.mrf.mxu1 }
 0x137   :  { %v2559_v13 = vadd.f32 %v1224_v12, %v983_v11  ;;  %v985_v14 = vpop.f32.mrf.mxu0 }
 0x138   :  { %v1226_v15 = vpop.f32.mrf.mxu1 }
 0x139   :  { %v988_v17 = vpop.f32.mrf.mxu0 }
 0x13a   :  { %v1229_v18 = vpop.f32.mrf.mxu1 }
 0x13b   :  { %v2561_v19 = vadd.f32 %v1229_v18, %v988_v17  ;;  %v990_v20 = vpop.f32.mrf.mxu0 }
 0x13c   :  { %v1231_v22 = vpop.f32.mrf.mxu1 }
 0x13d   :  { %v991_v23 = vpop.f32.mrf.mxu0 }
 0x13e   :  { %v1232_v24 = vpop.f32.mrf.mxu1 }
 0x13f   :  { %v2563_v25 = vadd.f32 %v1232_v24, %v991_v23  ;;  %v993_v27 = vpop.f32.mrf.mxu0 }
 0x140   :  { %v1234_v28 = vpop.f32.mrf.mxu1 }
 0x141   :  { %v996_v29 = vpop.f32.mrf.mxu0 }
 0x142   :  { %v1237_v30 = vpop.f32.mrf.mxu1 }
 0x143   :  { %v2565_v32 = vadd.f32 %v1237_v30, %v996_v29  ;;  %v998_v33 = vpop.f32.mrf.mxu0 }
 0x144   :  { %v1239_v34 = vpop.f32.mrf.mxu1 }
 0x145   :  { %v999_v35 = vpop.f32.mrf.mxu0 }
 0x146   :  { %v1240_v37 = vpop.f32.mrf.mxu1 }
 0x147   :  { %v2567_v38 = vadd.f32 %v1240_v37, %v999_v35  ;;  %v1001_v39 = vpop.f32.mrf.mxu0  ;;  %v1438_v35 = vmul.f32 %v2535_v16, %v2535_v16 }
 0x148   :  { %v1242_v40 = vpop.f32.mrf.mxu1 }
 0x149   :  { %v1004_v42 = vpop.f32.mrf.mxu0 }
 0x14a   :  { %v1245_v43 = vpop.f32.mrf.mxu1 }
 0x14b   :  { %v2569_v44 = vadd.f32 %v1245_v43, %v1004_v42  ;;  %v1006_v45 = vpop.f32.mrf.mxu0  ;;  %v1437_v42 = vmul.f32 %v2527_v9, %v2527_v9  ;;  %v1380_v43 = vadd.f32 %v2535_v16, %v2527_v9 }
 0x14c   :  { %v1247_v47 = vpop.f32.mrf.mxu1  ;;  %v1439_v45 = vmul.f32 %v2537_v21, %v2537_v21 }
 0x14d   :  { %v1007_v48 = vpop.f32.mrf.mxu0 }
 0x14e   :  { %v1248_v49 = vpop.f32.mrf.mxu1 }
 0x14f   :  { %v2571_v50 = vadd.f32 %v1248_v49, %v1007_v48  ;;  %v1009_v52 = vpop.f32.mrf.mxu0  ;;  %v1489_v49 = vadd.f32 %v1438_v35, %v1437_v42 }
 0x150   :  { %v1250_v53 = vpop.f32.mrf.mxu1  ;;  %v1381_v52 = vadd.f32 %v1380_v43, %v2537_v21 }
 0x151   :  { %v1012_v54 = vpop.f32.mrf.mxu0  ;;  %v1440_v53 = vmul.f32 %v2539_v26, %v2539_v26 }
 0x152   :  { %v1253_v55 = vpop.f32.mrf.mxu1 }
 0x153   :  { %v2573_v57 = vadd.f32 %v1253_v55, %v1012_v54  ;;  %v1014_v58 = vpop.f32.mrf.mxu0 }
 0x154   :  { %v1255_v59 = vpop.f32.mrf.mxu1 }
 0x155   :  { %v1015_v60 = vpop.f32.mrf.mxu0  ;;  %v1490_v59 = vadd.f32 %v1489_v49, %v1439_v45 }
 0x156   :  { %v1256_v62 = vpop.f32.mrf.mxu1 }
 0x157   :  { %v2575_v63 = vadd.f32 %v1256_v62, %v1015_v60  ;;  %v1017_v0 = vpop.f32.mrf.mxu0  ;;  %v1382_v60 = vadd.f32 %v1381_v52, %v2539_v26  ;;  %v1441_v62 = vmul.f32 %v2541_v31, %v2541_v31 }
 0x158   :  { %v1258_v1 = vpop.f32.mrf.mxu1 }
 0x159   :  { %v1020_v3 = vpop.f32.mrf.mxu0 }
 0x15a   :  { %v1261_v4 = vpop.f32.mrf.mxu1 }
 0x15b   :  { %v2577_v5 = vadd.f32 %v1261_v4, %v1020_v3  ;;  %v1022_v6 = vpop.f32.mrf.mxu0  ;;  %v1491_v3 = vadd.f32 %v1490_v59, %v1440_v53  ;;  %v1383_v4 = vadd.f32 %v1382_v60, %v2541_v31 }
 0x15c   :  { %v1263_v8 = vpop.f32.mrf.mxu1  ;;  %v1442_v6 = vmul.f32 %v2543_v36, %v2543_v36 }
 0x15d   :  { %v1023_v10 = vpop.f32.mrf.mxu0 }
 0x15e   :  { %v1264_v11 = vpop.f32.mrf.mxu1 }
 0x15f   :  { %v2579_v12 = vadd.f32 %v1264_v11, %v1023_v10  ;;  %v1025_v14 = vpop.f32.mrf.mxu0 }
 0x160   :  { %v1266_v15 = vpop.f32.mrf.mxu1  ;;  %v1492_v14 = vadd.f32 %v1491_v3, %v1441_v62 }
 0x161   :  { %v1028_v17 = vpop.f32.mrf.mxu0  ;;  %v1384_v15 = vadd.f32 %v1383_v4, %v2543_v36 }
 0x162   :  { %v1269_v18 = vpop.f32.mrf.mxu1 }
 0x163   :  { %v2581_v20 = vadd.f32 %v1269_v18, %v1028_v17  ;;  %v1030_v22 = vpop.f32.mrf.mxu0  ;;  %v1443_v17 = vmul.f32 %v2545_v41, %v2545_v41 }
 0x164   :  { %v1271_v23 = vpop.f32.mrf.mxu1 }
 0x165   :  { %v1031_v24 = vpop.f32.mrf.mxu0  ;;  %v1493_v23 = vadd.f32 %v1492_v14, %v1442_v6  ;;  %v1449_v14 = vmul.f32 %v2557_v7, %v2557_v7 }
 0x166   :  { %v1272_v27 = vpop.f32.mrf.mxu1 }
 0x167   :  { %v2583_v28 = vadd.f32 %v1272_v27, %v1031_v24  ;;  %v1033_v29 = vpop.f32.mrf.mxu0  ;;  %v1385_v24 = vadd.f32 %v1384_v15, %v2545_v41  ;;  %v1444_v27 = vmul.f32 %v2547_v46, %v2547_v46 }
 0x168   :  { %v1274_v30 = vpop.f32.mrf.mxu1 }
 0x169   :  { %v1036_v33 = vpop.f32.mrf.mxu0  ;;  %v1386_v35 = vadd.f32 %v1385_v24, %v2547_v46 }
 0x16a   :  { %v1277_v34 = vpop.f32.mrf.mxu1 }
 0x16b   :  { %v2587_v37 = vadd.f32 %v1277_v34, %v1036_v33  ;;  %v1038_v39 = vpop.f32.mrf.mxu0  ;;  %v1494_v34 = vadd.f32 %v1493_v23, %v1443_v17  ;;  %v1387_v45 = vadd.f32 %v1386_v35, %v2549_v51  ;;  %v1450_v23 = vmul.f32 %v2559_v13, %v2559_v13 }
 0x16c   :  { %v1279_v40 = vpop.f32.mrf.mxu1  ;;  %v1445_v39 = vmul.f32 %v2549_v51, %v2549_v51  ;;  %v1451_v35 = vmul.f32 %v2561_v19, %v2561_v19 }
 0x16d   :  { %v1039_v47 = vpop.f32.mrf.mxu0  ;;  %v1495_v43 = vadd.f32 %v1494_v34, %v1444_v27 }
 0x16e   :  { %v1280_v48 = vpop.f32.mrf.mxu1 }
 0x16f   :  { %v2598_v54 = vadd.f32 %v1280_v48, %v1039_v47  ;;  %v1041_v55 = vpop.f32.mrf.mxu0  ;;  %v1446_v47 = vmul.f32 %v2551_v56, %v2551_v56  ;;  %v1496_v53 = vadd.f32 %v1495_v43, %v1445_v39 }
 0x170   :  { %v1282_v58 = vpop.f32.mrf.mxu1  ;;  %v1388_v55 = vadd.f32 %v1387_v45, %v2551_v56  ;;  %v1452_v45 = vmul.f32 %v2563_v25, %v2563_v25 }
 0x171   :  { %3020 = vst [vmem:[#allocation2_spill] sm:$0xff] %v2598_v54  ;;  %v1044_v0 = vpop.f32.mrf.mxu0  ;;  %v1447_v58 = vmul.f32 %v2553_v61, %v2553_v61  ;;  %v1497_v62 = vadd.f32 %v1496_v53, %v1446_v47 }
 0x172   :  { %v1285_v1 = vpop.f32.mrf.mxu1 }
 0x173   :  { %v2606_v8 = vadd.f32 %v1285_v1, %v1044_v0  ;;  %v1046_v10 = vpop.f32.mrf.mxu0  ;;  %v1389_v0 = vadd.f32 %v1388_v55, %v2553_v61  ;;  %v1448_v1 = vmul.f32 %v2555_v2, %v2555_v2  ;;  %v1453_v55 = vmul.f32 %v2565_v32, %v2565_v32 }
 0x174   :  { %v1287_v11 = vpop.f32.mrf.mxu1  ;;  %v1498_v10 = vadd.f32 %v1497_v62, %v1447_v58 }
 0x175   :  { %v1047_v18 = vpop.f32.mrf.mxu0  ;;  %v1390_v11 = vadd.f32 %v1389_v0, %v2555_v2  ;;  %v1454_v0 = vmul.f32 %v2567_v38, %v2567_v38 }
 0x176   :  { %v1288_v22 = vpop.f32.mrf.mxu1 }
 0x177   :  { %v2614_v29 = vadd.f32 %v1288_v22, %v1047_v18  ;;  %v1049_v30 = vpop.f32.mrf.mxu0  ;;  %v1499_v18 = vadd.f32 %v1498_v10, %v1448_v1  ;;  %v1391_v22 = vadd.f32 %v1390_v11, %v2557_v7  ;;  %v1455_v11 = vmul.f32 %v2569_v44, %v2569_v44 }
 0x178   :  { %v1290_v33 = vpop.f32.mrf.mxu1 }
 0x179   :  { %v1052_v40 = vpop.f32.mrf.mxu0  ;;  %v1500_v33 = vadd.f32 %v1499_v18, %v1449_v14  ;;  %v1392_v34 = vadd.f32 %v1391_v22, %v2559_v13  ;;  %v1456_v22 = vmul.f32 %v2571_v50, %v2571_v50 }
 0x17a   :  { %v1293_v42 = vpop.f32.mrf.mxu1 }
 0x17b   :  { %v2622_v48 = vadd.f32 %v1293_v42, %v1052_v40  ;;  %v1054_v49 = vpop.f32.mrf.mxu0  ;;  %v1501_v42 = vadd.f32 %v1500_v33, %v1450_v23  ;;  %v1393_v43 = vadd.f32 %v1392_v34, %v2561_v19  ;;  %v1457_v34 = vmul.f32 %v2573_v57, %v2573_v57 }
 0x17c   :  { %v1295_v52 = vpop.f32.mrf.mxu1 }
 0x17d   :  { %3021 = vst [vmem:[#allocation3_spill] sm:$0xff] %v2622_v48  ;;  %v1055_v59 = vpop.f32.mrf.mxu0  ;;  %v1502_v52 = vadd.f32 %v1501_v42, %v1451_v35  ;;  %v1394_v53 = vadd.f32 %v1393_v43, %v2563_v25 }
 0x17e   :  { %v1296_v60 = vpop.f32.mrf.mxu1 }
 0x17f   :  { %v2630_v3 = vadd.f32 %v1296_v60, %v1055_v59  ;;  %v1057_v4 = vpop.f32.mrf.mxu0  ;;  %v1503_v60 = vadd.f32 %v1502_v52, %v1452_v45  ;;  %v1395_v62 = vadd.f32 %v1394_v53, %v2565_v32 }
 0x180   :  { %v1298_v6 = vpop.f32.mrf.mxu1 }
 0x181   :  { %v1060_v15 = vpop.f32.mrf.mxu0  ;;  %v1504_v6 = vadd.f32 %v1503_v60, %v1453_v55  ;;  %v1396_v10 = vadd.f32 %v1395_v62, %v2567_v38  ;;  %v1459_v60 = vmul.f32 %v2577_v5, %v2577_v5 }
 0x182   :  { %v1301_v17 = vpop.f32.mrf.mxu1 }
 0x183   :  { %v2638_v24 = vadd.f32 %v1301_v17, %v1060_v15  ;;  %v1062_v27 = vpop.f32.mrf.mxu0  ;;  %v1505_v17 = vadd.f32 %v1504_v6, %v1454_v0  ;;  %v1397_v18 = vadd.f32 %v1396_v10, %v2569_v44  ;;  %v1460_v6 = vmul.f32 %v2579_v12, %v2579_v12 }
 0x184   :  { %v1303_v30 = vpop.f32.mrf.mxu1 }
 0x185   :  { %v2643_v39 = vpop.f32.mrf.mxu0  ;;  %v1506_v30 = vadd.f32 %v1505_v17, %v1455_v11  ;;  %v1398_v33 = vadd.f32 %v1397_v18, %v2571_v50 }
 0x186   :  { %v2645_v40 = vpop.f32.mrf.mxu1 }
 0x187   :  { %v1065_v47 = vpop.f32.mrf.mxu0  ;;  %v1507_v43 = vadd.f32 %v1506_v30, %v1456_v22  ;;  %v1399_v45 = vadd.f32 %v1398_v33, %v2573_v57  ;;  %v1461_v22 = vmul.f32 %v2581_v20, %v2581_v20 }
 0x188   :  { %v1306_v49 = vpop.f32.mrf.mxu1  ;;  %v1458_v47 = vmul.f32 %v2575_v63, %v2575_v63 }
 0x189   :  { %v2653_v58 = vpop.f32.mrf.mxu0  ;;  %v1508_v53 = vadd.f32 %v1507_v43, %v1457_v34  ;;  %v1400_v55 = vadd.f32 %v1399_v45, %v2575_v63  ;;  %v1462_v34 = vmul.f32 %v2583_v28, %v2583_v28 }
 0x18a   :  { %v2655_v59 = vpop.f32.mrf.mxu1 }
 0x18b   :  { %v1070_v1 = vpop.f32.mrf.mxu0 }
 0x18c   :  { %v1311_v4 = vpop.f32.mrf.mxu1  ;;  %v1509_v1 = vadd.f32 %v1508_v53, %v1458_v47 }
 0x18d   :  { %v2663_v14 = vpop.f32.mrf.mxu0  ;;  %v1401_v4 = vadd.f32 %v1400_v55, %v2577_v5 }
 0x18e   :  { %v2665_v15 = vpop.f32.mrf.mxu1  ;;  %v1510_v17 = vadd.f32 %v1509_v1, %v1459_v60 }
 0x18f   :  { %v1073_v23 = vpop.f32.mrf.mxu0  ;;  %v1402_v18 = vadd.f32 %v1401_v4, %v2579_v12  ;;  %v1464_v4 = vmul.f32 %v2598_v54, %v2598_v54 }
 0x190   :  { %v1314_v27 = vpop.f32.mrf.mxu1  ;;  %v1511_v30 = vadd.f32 %v1510_v17, %v1460_v6 }
 0x191   :  { %v2673_v35 = vpop.f32.mrf.mxu0  ;;  %v1403_v33 = vadd.f32 %v1402_v18, %v2581_v20  ;;  %v1465_v18 = vmul.f32 %v2606_v8, %v2606_v8 }
 0x192   :  { %v2675_v42 = vpop.f32.mrf.mxu1  ;;  %v1512_v47 = vadd.f32 %v1511_v30, %v1461_v22 }
 0x193   :  { %v1078_v49 = vpop.f32.mrf.mxu0 }
 0x194   :  { %v1319_v52 = vpop.f32.mrf.mxu1  ;;  %v1404_v49 = vadd.f32 %v1403_v33, %v2583_v28  ;;  %v1513_v60 = vadd.f32 %v1512_v47, %v1462_v34  ;;  %v1466_v34 = vmul.f32 %v2614_v29, %v2614_v29 }
 0x195   :  { %v2683_v62 = vpop.f32.mrf.mxu0  ;;  %v1463_v52 = vmul.f32 %v2587_v37, %v2587_v37 }
 0x196   :  { %v2685_v0 = vpop.f32.mrf.mxu1  ;;  %v1405_v1 = vadd.f32 %v1404_v49, %v2587_v37 }
 0x197   :  { %v1081_v10 = vpop.f32.mrf.mxu0 }
 0x198   :  { %v1322_v11 = vpop.f32.mrf.mxu1  ;;  %v1406_v17 = vadd.f32 %v1405_v1, %v2598_v54 }
 0x199   :  { %v2693_v23 = vpop.f32.mrf.mxu0  ;;  %v1514_v11 = vadd.f32 %v1513_v60, %v1463_v52  ;;  %v1467_v52 = vmul.f32 %v2622_v48, %v2622_v48 }
 0x19a   :  { %v2695_v27 = vpop.f32.mrf.mxu1 }
 0x19b   :  { %v1086_v43 = vpop.f32.mrf.mxu0  ;;  %v1515_v33 = vadd.f32 %v1514_v11, %v1464_v4  ;;  %v1468_v4 = vmul.f32 %v2630_v3, %v2630_v3  ;;  %v2720_v11 = vadd.f32 %v2645_v40, %v2643_v39  ;;  %v2734_v40 = vadd.f32 %v2665_v15, %v2663_v14 }
 0x19c   :  { %v1327_v45 = vpop.f32.mrf.mxu1  ;;  %v1407_v43 = vadd.f32 %v1406_v17, %v2606_v8  ;;  %v2748_v15 = vadd.f32 %v2685_v0, %v2683_v62 }
 0x19d   :  { %v1087_v53 = vpop.f32.mrf.mxu0  ;;  %v1516_v49 = vadd.f32 %v1515_v33, %v1465_v18  ;;  %v1470_v39 = vmul.f32 %v2720_v11, %v2720_v11  ;;  %3022 = vst [vmem:[#allocation4_spill] sm:$0xff] %v2734_v40  ;;  %v1472_v14 = vmul.f32 %v2734_v40, %v2734_v40 }
 0x19e   :  { %v1328_v55 = vpop.f32.mrf.mxu1  ;;  %v1474_v62 = vmul.f32 %v2748_v15, %v2748_v15 }
 0x19f   :  { %v1089_v6 = vpop.f32.mrf.mxu0  ;;  %v2760_v0 = vadd.f32 %v1328_v55, %v1087_v53 }
 0x1a0   :  { %v1330_v10 = vpop.f32.mrf.mxu1  ;;  %v1408_v6 = vadd.f32 %v1407_v43, %v2614_v29  ;;  %v1469_v43 = vmul.f32 %v2638_v24, %v2638_v24 }
 0x1a1   :  { %v1092_v22 = vpop.f32.mrf.mxu0  ;;  %v1517_v10 = vadd.f32 %v1516_v49, %v1466_v34  ;;  %v2727_v34 = vadd.f32 %v2655_v59, %v2653_v58  ;;  %v2741_v59 = vadd.f32 %v2675_v42, %v2673_v35  ;;  %v2755_v42 = vadd.f32 %v2695_v27, %v2693_v23 }
 0x1a2   :  { %v1333_v30 = vpop.f32.mrf.mxu1  ;;  %v1409_v54 = vadd.f32 %v1408_v6, %v2622_v48 }
 0x1a3   :  { %v1094_v45 = vpop.f32.mrf.mxu0  ;;  %v1518_v18 = vadd.f32 %v1517_v10, %v1467_v52  ;;  %v1471_v58 = vmul.f32 %v2727_v34, %v2727_v34  ;;  %v1473_v35 = vmul.f32 %v2741_v59, %v2741_v59  ;;  %v2765_v23 = vadd.f32 %v1333_v30, %v1092_v22 }
 0x1a4   :  { %v1335_v47 = vpop.f32.mrf.mxu1  ;;  %v1410_v33 = vadd.f32 %v1409_v54, %v2630_v3 }
 0x1a5   :  { %v1095_v60 = vpop.f32.mrf.mxu0  ;;  %v1519_v6 = vadd.f32 %v1518_v18, %v1468_v4 }
 0x1a6   :  { %v1336_v1 = vpop.f32.mrf.mxu1  ;;  %v1411_v48 = vadd.f32 %v1410_v33, %v2638_v24 }
 0x1a7   :  { %v1097_v17 = vpop.f32.mrf.mxu0  ;;  %v1520_v10 = vadd.f32 %v1519_v6, %v1469_v43  ;;  %v2770_v53 = vadd.f32 %v1336_v1, %v1095_v60 }
 0x1a8   :  { %v1338_v45 = vpop.f32.mrf.mxu1  ;;  %v1412_v17 = vadd.f32 %v1411_v48, %v2720_v11 }
 0x1a9   :  { %v1100_v47 = vpop.f32.mrf.mxu0  ;;  %v1521_v18 = vadd.f32 %v1520_v10, %v1470_v39 }
 0x1aa   :  { %v1341_v49 = vpop.f32.mrf.mxu1  ;;  %v1413_v33 = vadd.f32 %v1412_v17, %v2727_v34 }
 0x1ab   :  { %v1102_v54 = vpop.f32.mrf.mxu0  ;;  %v1522_v6 = vadd.f32 %v1521_v18, %v1471_v58  ;;  %v2775_v22 = vadd.f32 %v1341_v49, %v1100_v47 }
 0x1ac   :  { %v1343_v52 = vpop.f32.mrf.mxu1  ;;  %v1414_v54 = vadd.f32 %v1413_v33, %v2734_v40 }
 0x1ad   :  { %v1103_v4 = vpop.f32.mrf.mxu0  ;;  %v1523_v10 = vadd.f32 %v1522_v6, %v1472_v14 }
 0x1ae   :  { %v1344_v45 = vpop.f32.mrf.mxu1  ;;  %v1415_v17 = vadd.f32 %v1414_v54, %v2741_v59  ;;  %v1476_v54 = vmul.f32 %v2760_v0, %v2760_v0 }
 0x1af   :  { %v1105_v48 = vpop.f32.mrf.mxu0  ;;  %v1524_v33 = vadd.f32 %v1523_v10, %v1473_v35  ;;  %v2780_v60 = vadd.f32 %v1344_v45, %v1103_v4 }
 0x1b0   :  { %v1346_v43 = vpop.f32.mrf.mxu1  ;;  %v1416_v48 = vadd.f32 %v1415_v17, %v2748_v15  ;;  %v1477_v17 = vmul.f32 %v2765_v23, %v2765_v23 }
 0x1b1   :  { %v1108_v39 = vpop.f32.mrf.mxu0  ;;  %v1475_v43 = vmul.f32 %v2755_v42, %v2755_v42  ;;  %v1525_v14 = vadd.f32 %v1524_v33, %v1474_v62 }
 0x1b2   :  { %v1349_v52 = vpop.f32.mrf.mxu1  ;;  %v1417_v6 = vadd.f32 %v1416_v48, %v2755_v42  ;;  %v1478_v48 = vmul.f32 %v2770_v53, %v2770_v53 }
 0x1b3   :  { %v1110_v58 = vpop.f32.mrf.mxu0  ;;  %v1526_v35 = vadd.f32 %v1525_v14, %v1475_v43  ;;  %v2785_v47 = vadd.f32 %v1349_v52, %v1108_v39 }
 0x1b4   :  { %v1351_v18 = vpop.f32.mrf.mxu1  ;;  %v1418_v10 = vadd.f32 %v1417_v6, %v2760_v0  ;;  %v1479_v6 = vmul.f32 %v2775_v22, %v2775_v22 }
 0x1b5   :  { %v1111_v27 = vpop.f32.mrf.mxu0  ;;  %v1527_v62 = vadd.f32 %v1526_v35, %v1476_v54  ;;  %3023 = vst [vmem:[#allocation5_spill] sm:$0xff] %v2785_v47 }
 0x1b6   :  { %v1352_v40 = vpop.f32.mrf.mxu1  ;;  %v1419_v33 = vadd.f32 %v1418_v10, %v2765_v23  ;;  %v1480_v10 = vmul.f32 %v2780_v60, %v2780_v60 }
 0x1b7   :  { %v1113_v55 = vpop.f32.mrf.mxu0  ;;  %v1528_v43 = vadd.f32 %v1527_v62, %v1477_v17  ;;  %v2790_v4 = vadd.f32 %v1352_v40, %v1111_v27 }
 0x1b8   :  { %v1354_v58 = vpop.f32.mrf.mxu1  ;;  %v1420_v14 = vadd.f32 %v1419_v33, %v2770_v53  ;;  %v1481_v33 = vmul.f32 %v2785_v47, %v2785_v47 }
 0x1b9   :  { %v1116_v30 = vpop.f32.mrf.mxu0  ;;  %v1529_v54 = vadd.f32 %v1528_v43, %v1478_v48  ;;  %3024 = vst [vmem:[#allocation6_spill] sm:$0xff] %v2790_v4 }
 0x1ba   :  { %v1357_v18 = vpop.f32.mrf.mxu1  ;;  %v1421_v35 = vadd.f32 %v1420_v14, %v2775_v22  ;;  %v1482_v14 = vmul.f32 %v2790_v4, %v2790_v4 }
 0x1bb   :  { %v1118_v1 = vpop.f32.mrf.mxu0  ;;  %v1530_v17 = vadd.f32 %v1529_v54, %v1479_v6  ;;  %v2795_v39 = vadd.f32 %v1357_v18, %v1116_v30 }
 0x1bc   :  { %v1359_v55 = vpop.f32.mrf.mxu1  ;;  %v1422_v62 = vadd.f32 %v1421_v35, %v2780_v60 }
 0x1bd   :  { %v1119_v49 = vpop.f32.mrf.mxu0  ;;  %3025 = vst [vmem:[#allocation7_spill] sm:$0xff] %v2795_v39  ;;  %v1531_v48 = vadd.f32 %v1530_v17, %v1480_v10  ;;  %v1483_v35 = vmul.f32 %v2795_v39, %v2795_v39 }
 0x1be   :  { %v1360_v58 = vpop.f32.mrf.mxu1  ;;  %v1423_v43 = vadd.f32 %v1422_v62, %v2785_v47 }
 0x1bf   :  { %v1121_v45 = vpop.f32.mrf.mxu0  ;;  %v2800_v40 = vadd.f32 %v1360_v58, %v1119_v49  ;;  %v1532_v6 = vadd.f32 %v1531_v48, %v1481_v33 }
 0x1c0   :  { %v1362_v1 = vpop.f32.mrf.mxu1  ;;  %v1424_v54 = vadd.f32 %v1423_v43, %v2790_v4 }
 0x1c1   :  { %v1124_v52 = vpop.f32.mrf.mxu0  ;;  %3026 = vst [vmem:[#allocation8_spill] sm:$0xff] %v2800_v40  ;;  %v1533_v10 = vadd.f32 %v1532_v6, %v1482_v14  ;;  %v1484_v62 = vmul.f32 %v2800_v40, %v2800_v40 }
 0x1c2   :  { %v1365_v55 = vpop.f32.mrf.mxu1  ;;  %v1425_v17 = vadd.f32 %v1424_v54, %v2795_v39 }
 0x1c3   :  { %v1126_v27 = vpop.f32.mrf.mxu0  ;;  %v2805_v30 = vadd.f32 %v1365_v55, %v1124_v52  ;;  %v1534_v33 = vadd.f32 %v1533_v10, %v1483_v35 }
 0x1c4   :  { %v1367_v45 = vpop.f32.mrf.mxu1  ;;  %v1426_v48 = vadd.f32 %v1425_v17, %v2800_v40 }
 0x1c5   :  { %3027 = vst [vmem:[#allocation9_spill] sm:$0xff] %v2805_v30  ;;  %v1127_v18 = vpop.f32.mrf.mxu0  ;;  %v1485_v43 = vmul.f32 %v2805_v30, %v2805_v30  ;;  %v1535_v45 = vadd.f32 %v1534_v33, %v1484_v62 }
 0x1c6   :  { %v1368_v1 = vpop.f32.mrf.mxu1  ;;  %v1427_v14 = vadd.f32 %v1426_v48, %v2805_v30 }
 0x1c7   :  { %v2810_v49 = vadd.f32 %v1368_v1, %v1127_v18  ;;  %v1129_v58 = vpop.f32.mrf.mxu0 }
 0x1c8   :  { %v1370_v27 = vpop.f32.mrf.mxu1  ;;  %v1536_v58 = vadd.f32 %v1535_v45, %v1485_v43 }
 0x1c9   :  { %3028 = vst [vmem:[#allocation10_spill] sm:$0xff] %v2810_v49  ;;  %v1132_v52 = vpop.f32.mrf.mxu0  ;;  %v1486_v6 = vmul.f32 %v2810_v49, %v2810_v49  ;;  %v1428_v35 = vadd.f32 %v1427_v14, %v2810_v49 }
 0x1ca   :  { %v1373_v55 = vpop.f32.mrf.mxu1 }
 0x1cb   :  { %v2818_v54 = vadd.f32 %v1373_v55, %v1132_v52  ;;  %v1134_v18 = vpop.f32.mrf.mxu0  ;;  %v1537_v40 = vadd.f32 %v1536_v58, %v1486_v6 }
 0x1cc   :  { %v1375_v1 = vpop.f32.mrf.mxu1 }
 0x1cd   :  { %3029 = vst [vmem:[#allocation11_spill] sm:$0xff] %v2818_v54  ;;  %v1487_v10 = vmul.f32 %v2818_v54, %v2818_v54  ;;  %v1135_v17 = vpop.f32.mrf.mxu0  ;;  %v1429_v62 = vadd.f32 %v1428_v35, %v2818_v54 }
 0x1ce   :  { %v1376_v27 = vpop.f32.mrf.mxu1 }
 0x1cf   :  { %v2824_v33 = vadd.f32 %v1376_v27, %v1135_v17  ;;  %v1137_v48 = vpop.f32.mrf.mxu0  ;;  %v1538_v39 = vadd.f32 %v1537_v40, %v1487_v10 }
 0x1d0   :  { %v1378_v30 = vpop.f32.mrf.mxu1 }
 0x1d1   :  { %3030 = vst [vmem:[#allocation12_spill] sm:$0xff] %v2824_v33  ;;  %v1430_v52 = vadd.f32 %v1429_v62, %v2824_v33  ;;  %v1488_v43 = vmul.f32 %v2824_v33, %v2824_v33  ;;  %v1557_v33 = vlaneseq }
 0x1d3   :  { %v1431_v55 = vrot.slane %v1430_v52, 4  ;;  %v1539_v45 = vadd.f32 %v1538_v39, %v1488_v43  ;;  %v1558_v47 = vshrl.u32 %v1557_v33, 7  ;;  %v1552_v39 = vld [vmem:[%s3006_s2] sm:$0x1] }
 0x1d5   :  { %v1432_v14 = vadd.f32 %v1431_v55, %v1430_v52  ;;  %v1540_v18 = vrot.slane %v1539_v45, 4  ;;  %v1559_v52 = vsub.s32 0, %v1558_v47 }
 0x1d7   :  { %v1433_v1 = vrot.slane %v1432_v14, 2  ;;  %v1541_v49 = vadd.f32 %v1540_v18, %v1539_v45 }
 0x1d9   :  { %v1434_v4 = vadd.f32 %v1433_v1, %v1432_v14  ;;  %v1542_v6 = vrot.slane %v1541_v49, 2 }
 0x1db   :  { %v1435_v58 = vrot.slane %v1434_v4, 1  ;;  %v1543_v35 = vadd.f32 %v1542_v6, %v1541_v49 }
 0x1dd   :  { %v1436_v17 = vadd.f32 %v1435_v58, %v1434_v4  ;;  %v1544_v27 = vrot.slane %v1543_v35, 1  ;;  %v1554_v4 = vld [vmem:[%s3007_s3] sm:$0x1] }
 0x1df   :  { %v1545_v48 = vadd.f32 %v1544_v27, %v1543_v35  ;;  %v1546_v30 = vmul.f32 0.0025510204, %v1436_v17 }
 0x1e1   :  { %v1547_v40 = vmul.f32 0.0025510204, %v1545_v48  ;;  %v1548_v10 = vmul.f32 %v1546_v30, %v1546_v30  ;;  %v3031_v48 = vld [vmem:[#allocation2_spill] sm:$0xff] }
 0x1e3   :  { %v1549_v62 = vsub.f32 %v1547_v40, %v1548_v10  ;;  %v3033_v40 = vld [vmem:[#allocation4_spill] sm:$0xff] }
 0x1e5   :  { %v1550_v54 = vadd.f32 1e-05, %v1549_v62 }
 0x1e7   :  { %2065 = vrsqrt.f32 %v1550_v54 }
 0x1f4   :  { %v2066_v43 = vpop.eup %2065 }
 0x1f5   :  { %v1553_v55 = vmul.f32 %v2066_v43, %v1552_v39  ;;  %v3034_v39 = vld [vmem:[#allocation5_spill] sm:$0xff]  ;;  %v3035_v43 = vld [vmem:[#allocation6_spill] sm:$0xff] }
 0x1f7   :  { %v1555_v49 = vmul.f32 %v1553_v55, %v1546_v30  ;;  %v1560_v45 = vrot.slane %v1553_v55, %v1559_v52  ;;  %v3032_v30 = vld [vmem:[#allocation3_spill] sm:$0xff] }
 0x1f9   :  { %v1556_v14 = vsub.f32 %v1554_v4, %v1555_v49  ;;  %v1561_v18 = vmul.f32 %v1560_v45, %v2527_v9  ;;  %v1562_v54 = vmul.f32 %v1560_v45, %v2535_v16  ;;  %v1563_v33 = vmul.f32 %v1560_v45, %v2537_v21  ;;  %v3036_v4 = vld [vmem:[#allocation7_spill] sm:$0xff]  ;;  %v3037_v49 = vld [vmem:[#allocation8_spill] sm:$0xff] }
 0x1fa   :  { %v1564_v1 = vmul.f32 %v1560_v45, %v2539_v26  ;;  %v1565_v6 = vmul.f32 %v1560_v45, %v2541_v31  ;;  %v1566_v47 = vmul.f32 %v1560_v45, %v2543_v36  ;;  %v1567_v58 = vmul.f32 %v1560_v45, %v2545_v41 }
 0x1fb   :  { %v1568_v35 = vmul.f32 %v1560_v45, %v2547_v46  ;;  %v1569_v17 = vmul.f32 %v1560_v45, %v2549_v51  ;;  %v1570_v27 = vmul.f32 %v1560_v45, %v2551_v56  ;;  %v1571_v9 = vmul.f32 %v1560_v45, %v2553_v61 }
 0x1fc   :  { %v1572_v16 = vmul.f32 %v1560_v45, %v2555_v2  ;;  %v1573_v21 = vmul.f32 %v1560_v45, %v2557_v7  ;;  %v1574_v26 = vmul.f32 %v1560_v45, %v2559_v13  ;;  %v1575_v31 = vmul.f32 %v1560_v45, %v2561_v19 }
 0x1fd   :  { %v1576_v36 = vmul.f32 %v1560_v45, %v2563_v25  ;;  %v1577_v41 = vmul.f32 %v1560_v45, %v2565_v32  ;;  %v1578_v46 = vmul.f32 %v1560_v45, %v2567_v38  ;;  %v1579_v51 = vmul.f32 %v1560_v45, %v2569_v44 }
 0x1fe   :  { %v1580_v56 = vmul.f32 %v1560_v45, %v2571_v50  ;;  %v1581_v61 = vmul.f32 %v1560_v45, %v2573_v57  ;;  %v1582_v2 = vmul.f32 %v1560_v45, %v2575_v63  ;;  %v1583_v7 = vmul.f32 %v1560_v45, %v2577_v5 }
 0x1ff   :  { %v1584_v13 = vmul.f32 %v1560_v45, %v2579_v12  ;;  %v1585_v19 = vmul.f32 %v1560_v45, %v2581_v20  ;;  %v1586_v25 = vmul.f32 %v1560_v45, %v2583_v28  ;;  %v1587_v32 = vmul.f32 %v1560_v45, %v2587_v37 }
 0x200   :  { %v1588_v38 = vmul.f32 %v1560_v45, %v3031_v48  ;;  %v1589_v44 = vmul.f32 %v1560_v45, %v2606_v8  ;;  %v1590_v50 = vmul.f32 %v1560_v45, %v2614_v29  ;;  %v1591_v57 = vmul.f32 %v1560_v45, %v3032_v30 }
 0x201   :  { %v1592_v63 = vmul.f32 %v1560_v45, %v2630_v3  ;;  %v1593_v5 = vmul.f32 %v1560_v45, %v2638_v24  ;;  %v1594_v12 = vmul.f32 %v1560_v45, %v2720_v11  ;;  %v1595_v20 = vmul.f32 %v1560_v45, %v2727_v34 }
 0x202   :  { %v1596_v28 = vmul.f32 %v1560_v45, %v3033_v40  ;;  %v1597_v37 = vmul.f32 %v1560_v45, %v2741_v59  ;;  %v1598_v10 = vmul.f32 %v1560_v45, %v2748_v15  ;;  %v1599_v8 = vmul.f32 %v1560_v45, %v2755_v42  ;;  %v3038_v42 = vld [vmem:[#allocation9_spill] sm:$0xff] }
 0x203   :  { %v1600_v29 = vmul.f32 %v1560_v45, %v2760_v0  ;;  %v1601_v62 = vmul.f32 %v1560_v45, %v2765_v23  ;;  %v1602_v3 = vmul.f32 %v1560_v45, %v2770_v53  ;;  %v1603_v24 = vmul.f32 %v1560_v45, %v2775_v22  ;;  %v3039_v0 = vld [vmem:[#allocation10_spill] sm:$0xff]  ;;  %v3040_v23 = vld [vmem:[#allocation11_spill] sm:$0xff]  ;;  %v3041_v22 = vld [vmem:[#allocation12_spill] sm:$0xff] }
 0x204   :  { %v1604_v11 = vmul.f32 %v1560_v45, %v2780_v60  ;;  %v1605_v34 = vmul.f32 %v1560_v45, %v3034_v39  ;;  %v1606_v55 = vmul.f32 %v1560_v45, %v3035_v43  ;;  %v1607_v59 = vmul.f32 %v1560_v45, %v3036_v4 }
 0x205   :  { %v1608_v15 = vmul.f32 %v1560_v45, %v3037_v49  ;;  %v1617_v48 = vrot.slane %v1556_v14, %v1559_v52  ;;  %v1609_v30 = vmul.f32 %v1560_v45, %v3038_v42  ;;  %v1610_v40 = vmul.f32 %v1560_v45, %v3039_v0 }
 0x206   :  { %v1611_v53 = vmul.f32 %v1560_v45, %v3040_v23  ;;  %v1612_v60 = vmul.f32 %v1560_v45, %v3041_v22 }
 0x207   :  { %v2887_v39 = vadd.f32 %v1617_v48, %v1561_v18  ;;  %v2889_v43 = vadd.f32 %v1617_v48, %v1562_v54  ;;  %v2891_v4 = vadd.f32 %v1617_v48, %v1563_v33  ;;  %v2893_v49 = vadd.f32 %v1617_v48, %v1564_v1 }
 0x208   :  { %v2895_v14 = vadd.f32 %v1617_v48, %v1565_v6  ;;  %v2897_v52 = vadd.f32 %v1617_v48, %v1566_v47  ;;  %v2899_v42 = vadd.f32 %v1617_v48, %v1567_v58  ;;  %v2901_v0 = vadd.f32 %v1617_v48, %v1568_v35 }
 0x209   :  { %v2903_v23 = vadd.f32 %v1617_v48, %v1569_v17  ;;  %v2905_v22 = vadd.f32 %v1617_v48, %v1570_v27  ;;  %v2907_v45 = vadd.f32 %v1617_v48, %v1571_v9  ;;  %v2909_v18 = vadd.f32 %v1617_v48, %v1572_v16 }
 0x20a   :  { %v2911_v54 = vadd.f32 %v1617_v48, %v1573_v21  ;;  %v2913_v33 = vadd.f32 %v1617_v48, %v1574_v26  ;;  %v2915_v1 = vadd.f32 %v1617_v48, %v1575_v31  ;;  %v2917_v6 = vadd.f32 %v1617_v48, %v1576_v36 }
 0x20b   :  { %3042 = vst [vmem:[#allocation2_spill] sm:$0xff] %v2903_v23  ;;  %3043 = vst [vmem:[#allocation3_spill] sm:$0xff] %v2905_v22  ;;  %v2919_v47 = vadd.f32 %v1617_v48, %v1577_v41  ;;  %v2921_v58 = vadd.f32 %v1617_v48, %v1578_v46  ;;  %v2923_v35 = vadd.f32 %v1617_v48, %v1579_v51 }
 0x20c   :  { %3044 = vst [vmem:[#allocation4_spill] sm:$0xff] %v2907_v45  ;;  %3045 = vst [vmem:[#allocation5_spill] sm:$0xff] %v2909_v18  ;;  %v2925_v17 = vadd.f32 %v1617_v48, %v1580_v56  ;;  %v2927_v27 = vadd.f32 %v1617_v48, %v1581_v61  ;;  %v2929_v9 = vadd.f32 %v1617_v48, %v1582_v2 }
 0x20d   :  { %3046 = vst [vmem:[#allocation6_spill] sm:$0xff] %v2911_v54  ;;  %v2931_v16 = vadd.f32 %v1617_v48, %v1583_v7  ;;  %v2933_v21 = vadd.f32 %v1617_v48, %v1584_v13  ;;  %v2935_v26 = vadd.f32 %v1617_v48, %v1585_v19  ;;  %v2937_v31 = vadd.f32 %v1617_v48, %v1586_v25 }
 0x20e   :  { %v1645_v36 = vadd.f32 %v1617_v48, %v1587_v32  ;;  %v1646_v41 = vadd.f32 %v1617_v48, %v1588_v38  ;;  %v1647_v46 = vadd.f32 %v1617_v48, %v1589_v44  ;;  %v1648_v54 = vadd.f32 %v1617_v48, %v1590_v50 }
 0x20f   :  { %3047 = vst [vmem:[#allocation7_spill] sm:$0xff] %v2931_v16  ;;  %3048 = vst [vmem:[#allocation8_spill] sm:$0xff] %v2933_v21  ;;  %v1649_v51 = vadd.f32 %v1617_v48, %v1591_v57  ;;  %v1650_v18 = vadd.f32 %v1617_v48, %v1592_v63  ;;  %v1651_v56 = vadd.f32 %v1617_v48, %v1593_v5 }
 0x210   :  { %3049 = vst [vmem:[#allocation9_spill] sm:$0xff] %v2935_v26  ;;  %3050 = vst [vmem:[#allocation10_spill] sm:$0xff] %v2937_v31  ;;  %v1652_v45 = vadd.f32 %v1617_v48, %v1594_v12  ;;  %v1653_v61 = vadd.f32 %v1617_v48, %v1595_v20  ;;  %v1654_v22 = vadd.f32 %v1617_v48, %v1596_v28 }
 0x211   :  { %v1655_v2 = vadd.f32 %v1617_v48, %v1597_v37  ;;  %v1656_v23 = vadd.f32 %v1617_v48, %v1598_v10  ;;  %v1657_v7 = vadd.f32 %v1617_v48, %v1599_v8  ;;  %v1658_v16 = vadd.f32 %v1617_v48, %v1600_v29 }
 0x212   :  { %v1659_v13 = vadd.f32 %v1617_v48, %v1601_v62  ;;  %v1660_v21 = vadd.f32 %v1617_v48, %v1602_v3  ;;  %v1661_v19 = vadd.f32 %v1617_v48, %v1603_v24  ;;  %v1662_v26 = vadd.f32 %v1617_v48, %v1604_v11  ;;  %v3051_v62 = vld [vmem:[#allocation2_spill] sm:$0xff]  ;;  %v3053_v11 = vld [vmem:[#allocation3_spill] sm:$0xff] }
 0x213   :  { %v1663_v25 = vadd.f32 %v1617_v48, %v1605_v34  ;;  %v1664_v31 = vadd.f32 %v1617_v48, %v1606_v55  ;;  %v1665_v32 = vadd.f32 %v1617_v48, %v1607_v59  ;;  %v1666_v38 = vadd.f32 %v1617_v48, %v1608_v15  ;;  %v3055_v59 = vld [vmem:[#allocation4_spill] sm:$0xff] }
 0x214   :  { %v1667_v44 = vadd.f32 %v1617_v48, %v1609_v30  ;;  %v1668_v50 = vadd.f32 %v1617_v48, %v1610_v40  ;;  %v1669_v57 = vadd.f32 %v1617_v48, %v1611_v53  ;;  %v1670_v63 = vadd.f32 %v1617_v48, %v1612_v60  ;;  %v3057_v30 = vld [vmem:[#allocation5_spill] sm:$0xff]  ;;  %v3059_v60 = vld [vmem:[#allocation6_spill] sm:$0xff] }
 0x215   :  { %v1671_v5 = vmax.f32 %v2887_v39, %v2913_v33  ;;  %v1672_v12 = vmax.f32 %v2889_v43, %v2915_v1  ;;  %v1673_v20 = vmax.f32 %v2891_v4, %v2917_v6  ;;  %v1674_v28 = vmax.f32 %v2893_v49, %v2919_v47 }
 0x216   :  { %v1675_v37 = vmax.f32 %v2895_v14, %v2921_v58  ;;  %v1676_v10 = vmax.f32 %v2897_v52, %v2923_v35  ;;  %v1677_v8 = vmax.f32 %v2899_v42, %v2925_v17  ;;  %v1678_v29 = vmax.f32 %v2901_v0, %v2927_v27  ;;  %v3052_v24 = vld [vmem:[#allocation7_spill] sm:$0xff]  ;;  %v3054_v55 = vld [vmem:[#allocation8_spill] sm:$0xff] }
 0x217   :  { %v1679_v3 = vmax.f32 %v3051_v62, %v2929_v9  ;;  %v1680_v34 = vmax.f32 %v3053_v11, %v3052_v24  ;;  %v1681_v15 = vmax.f32 %v3055_v59, %v3054_v55  ;;  %v3056_v48 = vld [vmem:[#allocation9_spill] sm:$0xff]  ;;  %v3058_v53 = vld [vmem:[#allocation10_spill] sm:$0xff]  ;;  %v1684_v43 = vmax.f32 %v1645_v36, %v1658_v16 }
 0x218   :  { %v1682_v40 = vmax.f32 %v3057_v30, %v3056_v48  ;;  %v1683_v39 = vmax.f32 %v3059_v60, %v3058_v53  ;;  %v1685_v4 = vmax.f32 %v1646_v41, %v1659_v13  ;;  %v1686_v49 = vmax.f32 %v1647_v46, %v1660_v21 }
 0x219   :  { %v1687_v14 = vmax.f32 %v1648_v54, %v1661_v19  ;;  %v1688_v52 = vmax.f32 %v1649_v51, %v1662_v26  ;;  %v1689_v42 = vmax.f32 %v1650_v18, %v1663_v25  ;;  %v1690_v0 = vmax.f32 %v1651_v56, %v1664_v31 }
 0x21a   :  { %v1691_v33 = vmax.f32 %v1652_v45, %v1665_v32  ;;  %v1692_v1 = vmax.f32 %v1653_v61, %v1666_v38  ;;  %v1693_v6 = vmax.f32 %v1654_v22, %v1667_v44  ;;  %v1694_v47 = vmax.f32 %v1655_v2, %v1668_v50 }
 0x21b   :  { %v1695_v58 = vmax.f32 %v1656_v23, %v1669_v57  ;;  %v1696_v35 = vmax.f32 %v1657_v7, %v1670_v63  ;;  %v1697_v17 = vmax.f32 %v1671_v5, %v1684_v43  ;;  %v1698_v27 = vmax.f32 %v1672_v12, %v1685_v4 }
 0x21c   :  { %v1699_v9 = vmax.f32 %v1673_v20, %v1686_v49  ;;  %v1700_v62 = vmax.f32 %v1674_v28, %v1687_v14  ;;  %v1701_v24 = vmax.f32 %v1675_v37, %v1688_v52  ;;  %v1702_v11 = vmax.f32 %v1676_v10, %v1689_v42 }
 0x21d   :  { %v1703_v55 = vmax.f32 %v1677_v8, %v1690_v0  ;;  %v1704_v16 = vmax.f32 %v1678_v29, %v1691_v33  ;;  %v1705_v36 = vmax.f32 %v1679_v3, %v1692_v1  ;;  %v1706_v21 = vmax.f32 %v1680_v34, %v1693_v6 }
 0x21e   :  { %v1707_v54 = vmax.f32 %v1681_v15, %v1694_v47  ;;  %v1708_v26 = vmax.f32 %v1682_v40, %v1695_v58  ;;  %v1709_v18 = vmax.f32 %v1683_v39, %v1696_v35  ;;  %v1710_v31 = vmax.f32 %v1697_v17, 0.0 }
 0x21f   :  { %v1711_v45 = vmax.f32 %v1698_v27, 0.0  ;;  %v1712_v41 = vmax.f32 %v1699_v9, 0.0  ;;  %v1713_v22 = vmax.f32 %v1700_v62, 0.0  ;;  %v1714_v46 = vmax.f32 %v1701_v24, 0.0 }
 0x220   :  { %v1715_v23 = vmax.f32 %v1702_v11, 0.0  ;;  %v1716_v51 = vmax.f32 %v1703_v55, 0.0  ;;  %v1717_v56 = vmax.f32 %v1704_v16, 0.0  ;;  %v1718_v61 = vmax.f32 %v1705_v36, 0.0  ;;  %1723 = vst [vmem:[%s3008_s4] sm:$0xff] %v1710_v31 }
 0x221   :  { %v1719_v2 = vmax.f32 %v1706_v21, 0.0  ;;  %v1720_v7 = vmax.f32 %v1707_v54, 0.0  ;;  %v1721_v13 = vmax.f32 %v1708_v26, 0.0  ;;  %v1722_v19 = vmax.f32 %v1709_v18, 0.0  ;;  %1724 = vst [vmem:[%s3008_s4 + $0x8] sm:$0xff] %v1711_v45  ;;  %1725 = vst [vmem:[%s3008_s4 + $0x10] sm:$0xff] %v1712_v41 }
 0x222   :  { %1726 = vst [vmem:[%s3008_s4 + $0x18] sm:$0xff] %v1713_v22  ;;  %1727 = vst [vmem:[%s3008_s4 + $0x20] sm:$0xff] %v1714_v46 }
 0x223   :  { %1728 = vst [vmem:[%s3008_s4 + $0x28] sm:$0xff] %v1715_v23  ;;  %1729 = vst [vmem:[%s3008_s4 + $0x30] sm:$0xff] %v1716_v51 }
 0x224   :  { %1730 = vst [vmem:[%s3008_s4 + $0x38] sm:$0xff] %v1717_v56  ;;  %1731 = vst [vmem:[%s3008_s4 + $0x40] sm:$0xff] %v1718_v61 }
 0x225   :  { %1732 = vst [vmem:[%s3008_s4 + $0x48] sm:$0xff] %v1719_v2  ;;  %1733 = vst [vmem:[%s3008_s4 + $0x50] sm:$0xff] %v1720_v7 }
 0x226   :  { %1734 = vst [vmem:[%s3008_s4 + $0x58] sm:$0xff] %v1721_v13  ;;  %1735 = vst [vmem:[%s3008_s4 + $0x60] sm:$0xff] %v1722_v19 }

// kernel: convnet_forward.5
= control target key start
LH: loop header
LB: loop body
LE: loop exit
PB: predicated region body
PF: predicated region fallthrough
CT: control target
= control target key end

     0   :  { %v227_v28 = vlaneseq  ;;  %v1579_v36 = vmov 1966171168   ;;  %s1927_s0 = inlined_call_operand.vmem [shape: bf16[2,1568], index: 0, kind: input, shape index: {}]   ;;  %s1928_s1 = inlined_call_operand.vmem [shape: bf16[1568,128], index: 1, kind: input, shape index: {}]   ;;  %s1929_s2 = inlined_call_operand.vmem [shape: f32[1,128], index: 2, kind: input, shape index: {}]   ;;  %s1930_s3 = inlined_call_operand.hbm [shape: f32[2,128], index: 3, kind: output, shape index: {}]  }
   0x1   :  { %v1457_v0 = vld [vmem:[%s1928_s1 + $0x78] sm:$0xff]   ;;  %v1461_v4 = vld [vmem:[%s1928_s1 + $0x70] sm:$0xff]   ;;  %v1465_v8 = vld [vmem:[%s1928_s1 + $0x68] sm:$0xff]   ;;  %v225_v37 = vunpack.c.l.s4 %v1579_v36 }
   0x2   :  { %v1458_v1 = vld [vmem:[%s1928_s1 + $0xf8] sm:$0xff]   ;;  %1310 = vmatprep.subr.bf16.mxu0 %v1457_v0  ;;  %v1462_v5 = vld [vmem:[%s1928_s1 + $0xf0] sm:$0xff]   ;;  %v1466_v9 = vld [vmem:[%s1928_s1 + $0xe8] sm:$0xff]   ;;  %v228_v33 = vshrl.u32 %v227_v28, 7 }
   0x3   :  { %v1459_v2 = vld [vmem:[%s1928_s1 + $0x38] sm:$0xff]   ;;  %1332 = vmatprep.subr.bf16.mxu1 %v1458_v1  ;;  %v1463_v6 = vld [vmem:[%s1928_s1 + $0x30] sm:$0xff]   ;;  %v1467_v10 = vld [vmem:[%s1928_s1 + $0x28] sm:$0xff]   ;;  %v226_v40 = vunpack.c.0.s8 %v225_v37 }
   0x4   :  { %v1460_v3 = vld [vmem:[%s1928_s1 + $0xb8] sm:$0xff]   ;;  %1311 = vmatpush3.bf16.msra.mxu0 %v1459_v2  ;;  %v1464_v7 = vld [vmem:[%s1928_s1 + $0xb0] sm:$0xff]   ;;  %v1468_v11 = vld [vmem:[%s1928_s1 + $0xa8] sm:$0xff]  }
   0x5   :  { %1333 = vmatpush3.bf16.msra.mxu1 %v1460_v3  ;;  %1312 = vmatprep.subr.bf16.mxu0 %v1461_v4  ;;  %v1469_v12 = vld [vmem:[%s1928_s1 + $0x60] sm:$0xff]   ;;  %v1473_v16 = vld [vmem:[%s1928_s1 + $0x58] sm:$0xff]   ;;  %v1477_v20 = vld [vmem:[%s1928_s1 + $0x50] sm:$0xff]   ;;  %v1708_v41 = vsub.s32 %v226_v40, %v228_v33 }
   0x6   :  { %1334 = vmatprep.subr.bf16.mxu1 %v1462_v5  ;;  %v1470_v13 = vld [vmem:[%s1928_s1 + $0xe0] sm:$0xff]   ;;  %v1474_v17 = vld [vmem:[%s1928_s1 + $0xd8] sm:$0xff]   ;;  %v1478_v21 = vld [vmem:[%s1928_s1 + $0xd0] sm:$0xff]  }
   0x7   :  { %v1471_v14 = vld [vmem:[%s1928_s1 + $0x20] sm:$0xff]   ;;  %v1475_v18 = vld [vmem:[%s1928_s1 + $0x18] sm:$0xff]   ;;  %v1479_v22 = vld [vmem:[%s1928_s1 + $0x10] sm:$0xff]  }
   0x8   :  { %1313 = vmatpush3.bf16.msra.mxu0 %v1463_v6  ;;  %v1472_v15 = vld [vmem:[%s1928_s1 + $0xa0] sm:$0xff]   ;;  %v1476_v19 = vld [vmem:[%s1928_s1 + $0x98] sm:$0xff]   ;;  %v1480_v23 = vld [vmem:[%s1928_s1 + $0x90] sm:$0xff]  }
   0x9   :  { %1335 = vmatpush3.bf16.msra.mxu1 %v1464_v7  ;;  %1314 = vmatprep.subr.bf16.mxu0 %v1465_v8  ;;  %v1481_v24 = vld [vmem:[%s1928_s1 + $0x48] sm:$0xff]   ;;  %v1485_v29 = vld [vmem:[%s1928_s1 + $0x40] sm:$0xff]   ;;  %v1490_v35 = vld [vmem:[%s1928_s1 + $0x178] sm:$0xff]  }
   0xa   :  { %1336 = vmatprep.subr.bf16.mxu1 %v1466_v9  ;;  %v1482_v25 = vld [vmem:[%s1928_s1 + $0xc8] sm:$0xff]   ;;  %v1486_v30 = vld [vmem:[%s1928_s1 + $0xc0] sm:$0xff]   ;;  %v1491_v38 = vld [vmem:[%s1928_s1 + $0x1f8] sm:$0xff]  }
   0xb   :  { %v1483_v26 = vld [vmem:[%s1928_s1 + $0x8] sm:$0xff]   ;;  %v1487_v31 = vld [vmem:[%s1928_s1] sm:$0xff]   ;;  %v1492_v48 = vld [vmem:[%s1928_s1 + $0x138] sm:$0xff]  }
   0xc   :  { %1315 = vmatpush3.bf16.msra.mxu0 %v1467_v10  ;;  %v1484_v27 = vld [vmem:[%s1928_s1 + $0x88] sm:$0xff]   ;;  %v1488_v32 = vld [vmem:[%s1928_s1 + $0x80] sm:$0xff]   ;;  %v1494_v51 = vld [vmem:[%s1928_s1 + $0x170] sm:$0xff]  }
   0xd   :  { %1337 = vmatpush3.bf16.msra.mxu1 %v1468_v11  ;;  %1316 = vmatprep.subr.bf16.mxu0 %v1469_v12  ;;  %v16_v34 = vld [vmem:[%s1927_s0] sm:$0xff]  ;;  %v1493_v53 = vld [vmem:[%s1928_s1 + $0x1b8] sm:$0xff]   ;;  %v1495_v54 = vld [vmem:[%s1928_s1 + $0x1f0] sm:$0xff]  }
   0xe   :  { %1338 = vmatprep.subr.bf16.mxu1 %v1470_v13  ;;  %v223_v39 = vcombine.high %v16_v34, %v16_v34  ;;  %v230_v42 = vrot.slane %v16_v34, %v1708_v41  ;;  %v1496_v56 = vld [vmem:[%s1928_s1 + $0x130] sm:$0xff]   ;;  %v1498_v57 = vld [vmem:[%s1928_s1 + $0x168] sm:$0xff]   ;;  %v1502_v61 = vld [vmem:[%s1928_s1 + $0x160] sm:$0xff]  }
   0xf   :  { %v1497_v58 = vld [vmem:[%s1928_s1 + $0x1b0] sm:$0xff]   ;;  %v1499_v59 = vld [vmem:[%s1928_s1 + $0x1e8] sm:$0xff]   ;;  %v1503_v63 = vld [vmem:[%s1928_s1 + $0x1e0] sm:$0xff]  }
  0x10   :  { %1317 = vmatpush3.bf16.msra.mxu0 %v1471_v14  ;;  %v1712_v43 = vrot.slane %v223_v39, %v1708_v41  ;;  %v238_v44 = vcombine.high %v230_v42, %v230_v42  ;;  %v246_v45 = vrot.slane %v230_v42, %v1708_v41  ;;  %v1500_v60 = vld [vmem:[%s1928_s1 + $0x128] sm:$0xff]   ;;  %v1504_v0 = vld [vmem:[%s1928_s1 + $0x120] sm:$0xff]   ;;  %v1506_v1 = vld [vmem:[%s1928_s1 + $0x158] sm:$0xff]  }
  0x11   :  { %1339 = vmatpush3.bf16.msra.mxu1 %v1472_v15  ;;  %1318 = vmatprep.subr.bf16.mxu0 %v1473_v16  ;;  %v1501_v62 = vld [vmem:[%s1928_s1 + $0x1a8] sm:$0xff]   ;;  %v1505_v2 = vld [vmem:[%s1928_s1 + $0x1a0] sm:$0xff]   ;;  %v1507_v3 = vld [vmem:[%s1928_s1 + $0x1d8] sm:$0xff]  }
  0x12   :  { %1340 = vmatprep.subr.bf16.mxu1 %v1474_v17  ;;  %v239_v46 = vcombine.high %v1712_v43, %v1712_v43  ;;  %v260_v47 = vrot.slane %v238_v44, %v1708_v41  ;;  %v268_v50 = vcombine.high %v246_v45, %v246_v45  ;;  %v1508_v4 = vld [vmem:[%s1928_s1 + $0x118] sm:$0xff]   ;;  %v1510_v5 = vld [vmem:[%s1928_s1 + $0x150] sm:$0xff]   ;;  %v1514_v9 = vld [vmem:[%s1928_s1 + $0x148] sm:$0xff]   ;;  %v253_v17 = vrot.slane %v1712_v43, %v1708_v41 }
  0x13   :  { %v1509_v6 = vld [vmem:[%s1928_s1 + $0x198] sm:$0xff]   ;;  %v1511_v7 = vld [vmem:[%s1928_s1 + $0x1d0] sm:$0xff]   ;;  %v1515_v11 = vld [vmem:[%s1928_s1 + $0x1c8] sm:$0xff]  }
  0x14   :  { %1319 = vmatpush3.bf16.msra.mxu0 %v1475_v18  ;;  %v267_v49 = vrot.slane %v239_v46, %v1708_v41  ;;  %947 = vmatprep.mubr.bf16.mxu0 %v260_v47  ;;  %v270_v52 = vcombine.high %v260_v47, %v260_v47  ;;  %v1512_v8 = vld [vmem:[%s1928_s1 + $0x110] sm:$0xff]   ;;  %v1516_v12 = vld [vmem:[%s1928_s1 + $0x108] sm:$0xff]   ;;  %v1518_v13 = vld [vmem:[%s1928_s1 + $0x140] sm:$0xff]  }
  0x15   :  { %1341 = vmatpush3.bf16.msra.mxu1 %v1476_v19  ;;  %1320 = vmatprep.subr.bf16.mxu0 %v1477_v20  ;;  %v1513_v10 = vld [vmem:[%s1928_s1 + $0x190] sm:$0xff]   ;;  %v1517_v14 = vld [vmem:[%s1928_s1 + $0x188] sm:$0xff]   ;;  %v1519_v15 = vld [vmem:[%s1928_s1 + $0x1c0] sm:$0xff]  }
  0x16   :  { %1342 = vmatprep.subr.bf16.mxu1 %v1478_v21  ;;  %v271_v55 = vcombine.high %v267_v49, %v267_v49  ;;  %987 = vmatprep.mubr.bf16.mxu1 %v270_v52  ;;  %v1520_v16 = vld [vmem:[%s1928_s1 + $0x100] sm:$0xff]   ;;  %v1522_v18 = vld [vmem:[%s1928_s1 + $0x278] sm:$0xff]   ;;  %v1529_v28 = vld [vmem:[%s1928_s1 + $0x2b0] sm:$0xff]  }
  0x17   :  { %v1521_v19 = vld [vmem:[%s1928_s1 + $0x180] sm:$0xff]   ;;  %v1523_v20 = vld [vmem:[%s1928_s1 + $0x2f8] sm:$0xff]   ;;  %v1542_v39 = vld [vmem:[%s1928_s1 + $0x250] sm:$0xff]  }
  0x18   :  { %1321 = vmatpush3.bf16.msra.mxu0 %v1479_v22  ;;  %v1524_v21 = vld [vmem:[%s1928_s1 + $0x238] sm:$0xff]   ;;  %v269_v22 = vcombine.high %v253_v17, %v253_v17  ;;  %v1535_v33 = vld [vmem:[%s1928_s1 + $0x2e0] sm:$0xff]   ;;  %v1543_v42 = vld [vmem:[%s1928_s1 + $0x2d0] sm:$0xff]  }
  0x19   :  { %1343 = vmatpush3.bf16.msra.mxu1 %v1480_v23  ;;  %1322 = vmatprep.subr.bf16.mxu0 %v1481_v24  ;;  %v1526_v23 = vld [vmem:[%s1928_s1 + $0x270] sm:$0xff]   ;;  %v1525_v24 = vld [vmem:[%s1928_s1 + $0x2b8] sm:$0xff]   ;;  %v1536_v34 = vld [vmem:[%s1928_s1 + $0x220] sm:$0xff]  }
  0x1a   :  { %1344 = vmatprep.subr.bf16.mxu1 %v1482_v25  ;;  %v1527_v25 = vld [vmem:[%s1928_s1 + $0x2f0] sm:$0xff]   ;;  %v1537_v36 = vld [vmem:[%s1928_s1 + $0x2a0] sm:$0xff]   ;;  %v1539_v37 = vld [vmem:[%s1928_s1 + $0x2d8] sm:$0xff]  }
  0x1b   :  { %v1541_v40 = vld [vmem:[%s1928_s1 + $0x298] sm:$0xff]   ;;  %v1544_v43 = vld [vmem:[%s1928_s1 + $0x210] sm:$0xff]   ;;  %v1546_v44 = vld [vmem:[%s1928_s1 + $0x248] sm:$0xff]  }
  0x1c   :  { %1323 = vmatpush3.bf16.msra.mxu0 %v1483_v26  ;;  %v1528_v26 = vld [vmem:[%s1928_s1 + $0x230] sm:$0xff]  }
  0x1d   :  { %1345 = vmatpush3.bf16.msra.mxu1 %v1484_v27  ;;  %1324 = vmatprep.subr.bf16.mxu0 %v1485_v29  ;;  %v1530_v27 = vld [vmem:[%s1928_s1 + $0x268] sm:$0xff]   ;;  %v1545_v46 = vld [vmem:[%s1928_s1 + $0x290] sm:$0xff]  }
  0x1e   :  { %1346 = vmatprep.subr.bf16.mxu1 %v1486_v30  ;;  %v1531_v29 = vld [vmem:[%s1928_s1 + $0x2e8] sm:$0xff]  }
  0x1f   :  { %v1532_v30 = vld [vmem:[%s1928_s1 + $0x228] sm:$0xff]  }
  0x20   :  { %1325 = vmatpush3.bf16.msra.mxu0 %v1487_v31  ;;  %v1534_v31 = vld [vmem:[%s1928_s1 + $0x260] sm:$0xff]  }
  0x21   :  { %1347 = vmatpush3.bf16.msra.mxu1 %v1488_v32  ;;  %1354 = vmatprep.subr.bf16.mxu0 %v1490_v35  ;;  %v1533_v32 = vld [vmem:[%s1928_s1 + $0x2a8] sm:$0xff]   ;;  %v1538_v35 = vld [vmem:[%s1928_s1 + $0x258] sm:$0xff]  }
  0x22   :  { %1376 = vmatprep.subr.bf16.mxu1 %v1491_v38  ;;  %v1540_v38 = vld [vmem:[%s1928_s1 + $0x218] sm:$0xff]  }
  0x23   :  { %948 = vmatmul.mubr.bf16.vlgmr.msra.gmra.mxu0 %v246_v45  ;;  %v17_v45 = vld [vmem:[%s1927_s0 + $0x8] sm:$0x1f] }
  0x24   :  { %1355 = vmatpush3.bf16.msra.mxu0 %v1492_v48  ;;  %988 = vmatmul.mubr.bf16.vlgmr.msra.gmra.mxu1 %v268_v50  ;;  %v279_v47 = vrot.slane %v17_v45, %v1708_v41  ;;  %v1547_v48 = vld [vmem:[%s1928_s1 + $0x2c8] sm:$0xff]  }
  0x25   :  { %1356 = vmatprep.subr.bf16.mxu0 %v1494_v51  ;;  %1377 = vmatpush3.bf16.msra.mxu1 %v1493_v53 }
  0x26   :  { %1027 = vmatprep.mubr.bf16.mxu0 %v267_v49  ;;  %1378 = vmatprep.subr.bf16.mxu1 %v1495_v54 }
  0x27   :  { %1067 = vmatprep.mubr.bf16.mxu1 %v271_v55 }
  0x28   :  { %1357 = vmatpush3.bf16.msra.mxu0 %v1496_v56 }
  0x29   :  { %1358 = vmatprep.subr.bf16.mxu0 %v1498_v57  ;;  %1379 = vmatpush3.bf16.msra.mxu1 %v1497_v58 }
  0x2a   :  { %1380 = vmatprep.subr.bf16.mxu1 %v1499_v59 }
  0x2c   :  { %1359 = vmatpush3.bf16.msra.mxu0 %v1500_v60 }
  0x2d   :  { %1360 = vmatprep.subr.bf16.mxu0 %v1502_v61  ;;  %1381 = vmatpush3.bf16.msra.mxu1 %v1501_v62 }
  0x2e   :  { %1382 = vmatprep.subr.bf16.mxu1 %v1503_v63 }
  0x30   :  { %1361 = vmatpush3.bf16.msra.mxu0 %v1504_v0 }
  0x31   :  { %1362 = vmatprep.subr.bf16.mxu0 %v1506_v1  ;;  %1383 = vmatpush3.bf16.msra.mxu1 %v1505_v2 }
  0x32   :  { %1384 = vmatprep.subr.bf16.mxu1 %v1507_v3 }
  0x34   :  { %1363 = vmatpush3.bf16.msra.mxu0 %v1508_v4 }
  0x35   :  { %1364 = vmatprep.subr.bf16.mxu0 %v1510_v5  ;;  %1385 = vmatpush3.bf16.msra.mxu1 %v1509_v6 }
  0x36   :  { %1386 = vmatprep.subr.bf16.mxu1 %v1511_v7 }
  0x38   :  { %1365 = vmatpush3.bf16.msra.mxu0 %v1512_v8 }
  0x39   :  { %1366 = vmatprep.subr.bf16.mxu0 %v1514_v9  ;;  %1387 = vmatpush3.bf16.msra.mxu1 %v1513_v10 }
  0x3a   :  { %1388 = vmatprep.subr.bf16.mxu1 %v1515_v11 }
  0x3c   :  { %1367 = vmatpush3.bf16.msra.mxu0 %v1516_v12 }
  0x3d   :  { %1368 = vmatprep.subr.bf16.mxu0 %v1518_v13  ;;  %1389 = vmatpush3.bf16.msra.mxu1 %v1517_v14 }
  0x3e   :  { %1390 = vmatprep.subr.bf16.mxu1 %v1519_v15 }
  0x40   :  { %1369 = vmatpush3.bf16.msra.mxu0 %v1520_v16 }
  0x41   :  { %1398 = vmatprep.subr.bf16.mxu0 %v1522_v18  ;;  %1391 = vmatpush3.bf16.msra.mxu1 %v1521_v19 }
  0x42   :  { %1420 = vmatprep.subr.bf16.mxu1 %v1523_v20 }
  0x43   :  { %1028 = vmatmul.mubr.bf16.vlgmr.msra.gmra.mxu0 %v253_v17 }
  0x44   :  { %1399 = vmatpush3.bf16.msra.mxu0 %v1524_v21  ;;  %1068 = vmatmul.mubr.bf16.vlgmr.msra.gmra.mxu1 %v269_v22 }
  0x45   :  { %1400 = vmatprep.subr.bf16.mxu0 %v1526_v23  ;;  %1421 = vmatpush3.bf16.msra.mxu1 %v1525_v24 }
  0x46   :  { %1422 = vmatprep.subr.bf16.mxu1 %v1527_v25 }
  0x48   :  { %1401 = vmatpush3.bf16.msra.mxu0 %v1528_v26 }
  0x49   :  { %1402 = vmatprep.subr.bf16.mxu0 %v1530_v27  ;;  %1423 = vmatpush3.bf16.msra.mxu1 %v1529_v28 }
  0x4a   :  { %1424 = vmatprep.subr.bf16.mxu1 %v1531_v29 }
  0x4c   :  { %1403 = vmatpush3.bf16.msra.mxu0 %v1532_v30 }
  0x4d   :  { %1404 = vmatprep.subr.bf16.mxu0 %v1534_v31  ;;  %1425 = vmatpush3.bf16.msra.mxu1 %v1533_v32 }
  0x4e   :  { %1426 = vmatprep.subr.bf16.mxu1 %v1535_v33 }
  0x50   :  { %1405 = vmatpush3.bf16.msra.mxu0 %v1536_v34 }
  0x51   :  { %1406 = vmatprep.subr.bf16.mxu0 %v1538_v35  ;;  %1427 = vmatpush3.bf16.msra.mxu1 %v1537_v36 }
  0x52   :  { %1428 = vmatprep.subr.bf16.mxu1 %v1539_v37 }
  0x54   :  { %1407 = vmatpush3.bf16.msra.mxu0 %v1540_v38 }
  0x55   :  { %1408 = vmatprep.subr.bf16.mxu0 %v1542_v39  ;;  %1429 = vmatpush3.bf16.msra.mxu1 %v1541_v40 }
  0x56   :  { %1430 = vmatprep.subr.bf16.mxu1 %v1543_v42 }
  0x57   :  { %8 = vsyncpa [#allocation3], 0  ;;  %v1548_v49 = vld [vmem:[%s1928_s1 + $0x208] sm:$0xff]   ;;  %v287_v50 = vcombine.high %v279_v47, %v279_v47  ;;  %v1550_v51 = vld [vmem:[%s1928_s1 + $0x240] sm:$0xff]   ;;  %v294_v57 = vrot.slane %v279_v47, %v1708_v41  ;;  %v272_v59 = vcombine.high %v17_v45, %v17_v45  ;;  %v1580_v62 = vmov 0.0   ;;  %s1582_s23 = smov [#allocation2]  }
  0x58   :  { %1409 = vmatpush3.bf16.msra.mxu0 %v1544_v43  ;;  %v1549_v52 = vld [vmem:[%s1928_s1 + $0x288] sm:$0xff]   ;;  %v1551_v54 = vld [vmem:[%s1928_s1 + $0x2c0] sm:$0xff]   ;;  %vm1581_vm0 = vmmov 0   ;;  %vm911_vm1 = vcmask 261120   ;;  %s1202_s24 = sshll.u32 %s1582_s23, 4  ;;  %s1203_s24 = int_to_ptr.vmem [resolvable:$true] %s1202_s24 }
  0x59   :  { %1410 = vmatprep.subr.bf16.mxu0 %v1546_v44  ;;  %1431 = vmatpush3.bf16.msra.mxu1 %v1545_v46  ;;  %v308_v53 = vrot.slane %v287_v50, %v1708_v41  ;;  %v1552_v55 = vld [vmem:[%s1928_s1 + $0x200] sm:$0xff]   ;;  %v1555_v60 = vld [vmem:[%s1928_s1 + $0x308] sm:$0xff]   ;;  %v309_v61 = vcombine.high %v294_v57, %v294_v57  ;;  %v286_v63 = vrot.slane %v272_v59, %v1708_v41  ;;  %p1562_p1 = scmp.lt.s32.totalorder %s1203_s24, %s1203_s24 }
  0x5a   :  { %1432 = vmatprep.subr.bf16.mxu1 %v1547_v48  ;;  %v1553_v58 = vld [vmem:[%s1928_s1 + $0x280] sm:$0xff]  }
  0x5b   :  { %1107 = vmatprep.mubr.bf16.mxu0 %v308_v53  ;;  %v310_v56 = vcombine.high %v308_v53, %v308_v53  ;;  %v1556_v0 = vld [vmem:[%s1928_s1 + $0x300] sm:$0xff]   ;;  %v301_v1 = vrot.slane %v286_v63, %v1708_v41 }
  0x5c   :  { %1411 = vmatpush3.bf16.msra.mxu0 %v1548_v49  ;;  %v1210_v18 = vld [vmem:[%s1929_s2] ss:$0 sm:$0xff]  ;;  %s1557_s2 = scalar_lea.vmem %s1203_s24, 32 }
  0x5d   :  { %1412 = vmatprep.subr.bf16.mxu0 %v1550_v51  ;;  %1433 = vmatpush3.bf16.msra.mxu1 %v1549_v52  ;;  %p1558_p0 = scmp.ne.s32.totalorder %s1203_s24, %s1557_s2  ;;  %p1563_p2 = scmp.lt.s32.totalorder %s1557_s2, %s1557_s2 }
  0x5e   :  { %1147 = vmatprep.mubr.bf16.mxu1 %v310_v56  ;;  %1434 = vmatprep.subr.bf16.mxu1 %v1551_v54 }
  0x5f   :  { %p1564_p3 = por %p1563_p2, %p1562_p1 }
  0x60   :  { %1413 = vmatpush3.bf16.msra.mxu0 %v1552_v55 }
  0x61   :  { %1445 = vmatprep.subr.bf16.mxu0 %v1580_v62  ;;  %1435 = vmatpush3.bf16.msra.mxu1 %v1553_v58  ;;  %p1565_p4 = pnand %p1564_p3, %p1558_p0 }
  0x63   :  { %1108 = vmatmul.mubr.bf16.vlgmr.msra.gmra.mxu0 %v294_v57 }
  0x64   :  { %1446 = vmatpush3.bf16.msra.mxu0 %v1555_v60  ;;  %1449 = vmatprep.mubr.msk.bf16.mxu0 %vm1581_vm0, %v1580_v62 }
  0x65   :  { %1148 = vmatmul.mubr.bf16.vlgmr.msra.gmra.mxu1 %v309_v61  ;;  %1447 = vmatprep.subr.bf16.mxu0 %v1580_v62 }
  0x68   :  { %1448 = vmatpush3.bf16.msra.mxu0 %v1556_v0 }
  0x6b   :  { %1450 = vmatmul.mubr.msk.bf16.vlgmr.msra.gmra.mxu0 %vm911_vm1, %v301_v1 }
  0xe3   :  { %v1326_v2 = vpop.f32.mrf.mxu0 }
  0xe4   :  { %v1348_v3 = vpop.f32.mrf.mxu1 }
  0xe5   :  { %v1327_v4 = vpop.f32.mrf.mxu0 }
  0xe6   :  { %v1349_v5 = vpop.f32.mrf.mxu1  ;;  %v1328_v41 = vadd.f32 %v1327_v4, %v1326_v2 }
  0xe7   :  { %v1329_v6 = vpop.f32.mrf.mxu0  ;;  %v1350_v20 = vadd.f32 %v1349_v5, %v1348_v3 }
  0xe8   :  { %v1351_v7 = vpop.f32.mrf.mxu1  ;;  %v950_v19 = vadd.f32 %v1328_v41, %v1210_v18 }
  0xe9   :  { %v1330_v8 = vpop.f32.mrf.mxu0 }
  0xea   :  { %v1352_v9 = vpop.f32.mrf.mxu1  ;;  %v990_v22 = vadd.f32 %v1350_v20, %v950_v19 }
 0x103   :  { %v1370_v10 = vpop.f32.mrf.mxu0 }
 0x104   :  { %v1392_v11 = vpop.f32.mrf.mxu1 }
 0x105   :  { %v1371_v12 = vpop.f32.mrf.mxu0 }
 0x106   :  { %v1393_v13 = vpop.f32.mrf.mxu1  ;;  %v1372_v21 = vadd.f32 %v1371_v12, %v1370_v10 }
 0x107   :  { %v1373_v14 = vpop.f32.mrf.mxu0  ;;  %v1394_v24 = vadd.f32 %v1393_v13, %v1392_v11 }
 0x108   :  { %v1395_v15 = vpop.f32.mrf.mxu1  ;;  %v1030_v23 = vadd.f32 %v1372_v21, %v990_v22 }
 0x109   :  { %v1374_v16 = vpop.f32.mrf.mxu0 }
 0x10a   :  { %v1396_v17 = vpop.f32.mrf.mxu1  ;;  %v1070_v28 = vadd.f32 %v1394_v24, %v1030_v23 }
 0x123   :  { %v1414_v25 = vpop.f32.mrf.mxu0 }
 0x125   :  { %v1436_v26 = vpop.f32.mrf.mxu1  ;;  %v1415_v27 = vpop.f32.mrf.mxu0 }
 0x126   :  { %v1416_v29 = vadd.f32 %v1415_v27, %v1414_v25 }
 0x127   :  { %v1437_v30 = vpop.f32.mrf.mxu1  ;;  %v1417_v31 = vpop.f32.mrf.mxu0 }
 0x128   :  { %v1110_v32 = vadd.f32 %v1416_v29, %v1070_v28  ;;  %v1438_v33 = vadd.f32 %v1437_v30, %v1436_v26 }
 0x129   :  { %v1439_v34 = vpop.f32.mrf.mxu1  ;;  %v1418_v35 = vpop.f32.mrf.mxu0 }
 0x12a   :  { %v1150_v36 = vadd.f32 %v1438_v33, %v1110_v32 }
 0x12b   :  { %v1440_v37 = vpop.f32.mrf.mxu1  ;;  %v1189_v38 = vpop.f32.mrf.mxu0 }
 0x12c   :  { %v1190_v39 = vadd.f32 %v1189_v38, %v1150_v36 }
 0x12d   :  { %v1451_v40 = vpop.f32.mrf.mxu0 }
 0x12e   :  { %1195 = vst [vmem:[#allocation2] sm:$0x3] %v1190_v39 }
 0x12f   :  { %v1192_v42 = vpop.f32.mrf.mxu0 }
 0x130   :  { %1568 = shalt.err (!%p1565_p4)
}
 0x131   :  { %1205 = dma.vmem_to_hbm [thread:$0]  %s1203_s24, 32, %s1930_s3, [#allocation3]   ;;  %v1452_v43 = vpop.f32.mrf.mxu0 }
 0x132   :  { %1577 = dma.done.wait [#allocation3], 32  }
 0x133   :  { %1578 = vsyncadd [#allocation3], 4294967264 }
 0x134   :  { %1209 = vsyncpa [#allocation3], 1 }

</bundles_post_ra>
